<compile_context>
chip_gen: v6e
topology: v6e:2x2x1
jax: 0.10.0
libtpu: 0.0.40
codegen_flags: <defaults>
</compile_context>

<pallas_src>
import jax
import jax.numpy as jnp
from jax.experimental import pallas as pl
from jax.experimental.pallas import tpu as pltpu

HIDDEN = 32      # hidden_dim (module uses 128; small shape per instructions)
INPUT = 16       # input_dim  (== number of Gene1 time columns)
OUTPUT = INPUT   # output_dim = input_dim in the module
LAYERS = 6
BATCH = 2
SEQ = 8
PAD_OUT = 128    # lane-padded FC output width (sliced to OUTPUT outside)


# ----------------------- fused 6-layer LSTM + FC kernel -----------------------
def _fused_lstm_fc_kernel(x_ref, wih0_ref, whh0_ref, b0_ref, wcat_ref, bcat_ref,
                          fcw_ref, fcb_ref, out_ref):
    """Whole network in one kernel invocation (wavefront over (layer, t)).

    x_ref    : (S*B, INPUT)        time-major flattened input
    wih0_ref : (INPUT, 4H)         layer-0 W_ih^T
    whh0_ref : (H, 4H)             layer-0 W_hh^T
    b0_ref   : (1, 4H)             layer-0 b_ih + b_hh
    wcat_ref : (LAYERS-1, 2H, 4H)  layers 1..5 stacked [W_ih^T ; W_hh^T]
    bcat_ref : (LAYERS-1, 1, 4H)   layers 1..5 b_ih + b_hh
    fcw_ref  : (H, PAD_OUT)        fc.weight^T, zero-padded to 128 lanes
    fcb_ref  : (1, PAD_OUT)        fc.bias,     zero-padded to 128 lanes
    out_ref  : (B, PAD_OUT)
    """
    B, H, S, L = BATCH, HIDDEN, SEQ, LAYERS

    def sig(v):
        # logistic(x) = 0.5 * (1 + tanh(x/2)) -> single EUP op
        return 0.5 * (jnp.tanh(0.5 * v) + 1.0)

    def cell(g, c_prev):
        # 3 transcendental pushes per cell: sig over the full (B,4H) tile,
        # tanh on the g-gate slice, tanh(c).
        s = sig(g)
        gg = jnp.tanh(g[:, 2 * H:3 * H])
        i = s[:, 0 * H:1 * H]
        f = s[:, 1 * H:2 * H]
        o = s[:, 3 * H:4 * H]
        c_new = f * c_prev + i * gg
        h_new = o * jnp.tanh(c_new)
        return h_new, c_new

    # Hoisted layer-0 input projection (off the critical path; one matmul for
    # the whole sequence).
    gates_x0 = jnp.dot(x_ref[...], wih0_ref[...],
                       preferred_element_type=jnp.float32) + b0_ref[...]  # (S*B, 4H)
    whh0_t = whh0_ref[...]                                                # (H, 4H)

    zeros = jnp.zeros((B, H), jnp.float32)
    h = [zeros] * L   # h[l] = hidden state of layer l at its latest computed t
    c = [zeros] * L   # c[l] = cell   state of layer l at its latest computed t

    # Diagonal wavefront: cells (layer, t) with layer + t == d are independent
    # of each other and depend only on wavefront d-1 results.
    for d in range(L + S - 1):                    # static: fully unrolled
        h_prev_wave = list(h)                     # snapshot of wavefront d-1
        lo = max(0, d - S + 1)
        hi = min(L - 1, d)
        for layer in range(lo, hi + 1):           # static: fully unrolled
            t = d - layer
            if layer == 0:
                g = gates_x0[t * B:(t + 1) * B, :] + jnp.dot(
                    h_prev_wave[0], whh0_t, preferred_element_type=jnp.float32)
            else:
                # Fuse input + recurrent matmuls: [h_below, h_prev] @ [Wih^T;Whh^T]
                hcat = jnp.concatenate(
                    [h_prev_wave[layer - 1], h_prev_wave[layer]], axis=1)  # (B, 2H)
                g = jnp.dot(hcat, wcat_ref[layer - 1],
                            preferred_element_type=jnp.float32) + bcat_ref[layer - 1]
            h[layer], c[layer] = cell(g, c[layer])

    # Final FC on the last layer's last-timestep hidden state (padded lanes).
    out_ref[...] = (jnp.dot(h[L - 1], fcw_ref[...],
                            preferred_element_type=jnp.float32)
                    + fcb_ref[...]).astype(out_ref.dtype)


# ------------------------------ weight packing --------------------------------
def pack_params(params):
    """Pre-pack / pre-transpose all weights ONCE (outside the jitted forward)."""
    H = HIDDEN
    lstm = params["lstm"]
    wih0_t = jnp.transpose(lstm[0][0])                                   # (Din, 4H)
    whh0_t = jnp.transpose(lstm[0][1])                                   # (H, 4H)
    b0 = (lstm[0][2] + lstm[0][3]).reshape(1, 4 * H)                     # (1, 4H)
    wcat = jnp.stack([
        jnp.concatenate([jnp.transpose(lstm[l][0]),
                         jnp.transpose(lstm[l][1])], axis=0)
        for l in range(1, LAYERS)])                                      # (5, 2H, 4H)
    bcat = jnp.stack([(lstm[l][2] + lstm[l][3]).reshape(1, 4 * H)
                      for l in range(1, LAYERS)])                        # (5, 1, 4H)
    fcw_pad = jnp.zeros((H, PAD_OUT), jnp.float32
                        ).at[:, :OUTPUT].set(jnp.transpose(params["fc_w"]))
    fcb_pad = jnp.zeros((1, PAD_OUT), jnp.float32
                        ).at[:, :OUTPUT].set(params["fc_b"])
    return {"wih0_t": wih0_t, "whh0_t": whh0_t, "b0": b0,
            "wcat": wcat, "bcat": bcat, "fcw_pad": fcw_pad, "fcb_pad": fcb_pad}


# --------------------------------- forward -----------------------------------
@jax.jit
def basic_lstm_forward(x, packed):
    """x: (B, S, INPUT), packed = pack_params(params) -> (B, OUTPUT)."""
    B, S, Din = x.shape

    # Time-major flatten so the layer-0 hoisted projection is one matmul and
    # each per-step slice is contiguous sublanes.
    x_tm = jnp.transpose(x, (1, 0, 2)).reshape(S * B, Din)

    vmem = pl.BlockSpec(memory_space=pltpu.MemorySpace.VMEM)
    out_pad = pl.pallas_call(
        _fused_lstm_fc_kernel,
        out_shape=jax.ShapeDtypeStruct((B, PAD_OUT), jnp.float32),
        in_specs=[vmem] * 8,
        out_specs=vmem,
    )(x_tm, packed["wih0_t"], packed["whh0_t"], packed["b0"],
      packed["wcat"], packed["bcat"], packed["fcw_pad"], packed["fcb_pad"])
    return out_pad[:, :OUTPUT]


# ------------------------------ params / reference ----------------------------
def init_params(key):
    params = {"lstm": []}
    bound = 1.0 / jnp.sqrt(jnp.float32(HIDDEN))
    for layer in range(LAYERS):
        din = INPUT if layer == 0 else HIDDEN
        key, k1, k2, k3, k4 = jax.random.split(key, 5)
        w_ih = jax.random.uniform(k1, (4 * HIDDEN, din), jnp.float32, -bound, bound)
        w_hh = jax.random.uniform(k2, (4 * HIDDEN, HIDDEN), jnp.float32, -bound, bound)
        b_ih = jax.random.uniform(k3, (4 * HIDDEN,), jnp.float32, -bound, bound)
        b_hh = jax.random.uniform(k4, (4 * HIDDEN,), jnp.float32, -bound, bound)
        params["lstm"].append((w_ih, w_hh, b_ih, b_hh))
    key, k1, k2 = jax.random.split(key, 3)
    params["fc_w"] = jax.random.uniform(k1, (OUTPUT, HIDDEN), jnp.float32, -bound, bound)
    params["fc_b"] = jax.random.uniform(k2, (OUTPUT,), jnp.float32, -bound, bound)
    return params


def reference_forward(x, params):
    """Pure-JAX reference mirroring torch.nn.LSTM (num_layers=6) + Linear."""
    B, S, _ = x.shape
    inp = x
    for layer in range(LAYERS):
        w_ih, w_hh, b_ih, b_hh = params["lstm"][layer]
        h = jnp.zeros((B, HIDDEN), jnp.float32)
        c = jnp.zeros((B, HIDDEN), jnp.float32)
        outs = []
        for t in range(S):
            gates = inp[:, t, :] @ w_ih.T + h @ w_hh.T + b_ih + b_hh
            i, f, g, o = jnp.split(gates, 4, axis=-1)
            i = jax.nn.sigmoid(i)
            f = jax.nn.sigmoid(f)
            g = jnp.tanh(g)
            o = jax.nn.sigmoid(o)
            c = f * c + i * g
            h = o * jnp.tanh(c)
            outs.append(h)
        inp = jnp.stack(outs, axis=1)
    return inp[:, -1, :] @ params["fc_w"].T + params["fc_b"]


if __name__ == "__main__":
    key = jax.random.PRNGKey(0)
    key, kx, kp = jax.random.split(key, 3)
    x = jax.random.normal(kx, (BATCH, SEQ, INPUT), jnp.float32)
    params = init_params(kp)
    packed = pack_params(params)          # packed once, outside the jit forward

    out = basic_lstm_forward(x, packed)
    out = jax.block_until_ready(out)

    ref = reference_forward(x, params)
    assert out.shape == (BATCH, OUTPUT)
    assert jnp.allclose(out, ref, atol=1e-4, rtol=1e-4), "mismatch vs reference"

    print("KERNEL_OK")
</pallas_src>

<mosaic_0001>
module attributes {stable_mosaic.version = 11 : i64} {
  func.func @_fused_lstm_fc_kernel(%arg0: memref<16x16xf32, #tpu.memory_space<vmem>>, %arg1: memref<16x128xf32, #tpu.memory_space<vmem>>, %arg2: memref<32x128xf32, #tpu.memory_space<vmem>>, %arg3: memref<1x128xf32, #tpu.memory_space<vmem>>, %arg4: memref<5x64x128xf32, #tpu.memory_space<vmem>>, %arg5: memref<5x1x128xf32, #tpu.memory_space<vmem>>, %arg6: memref<32x128xf32, #tpu.memory_space<vmem>>, %arg7: memref<1x128xf32, #tpu.memory_space<vmem>>, %arg8: memref<2x128xf32, #tpu.memory_space<vmem>>) attributes {dimension_semantics = [], scalar_prefetch = 0 : i64, scratch_operands = 0 : i64, tpu.core_type = #tpu.core_type<tc>} {
    %c0 = arith.constant 0 : index
    %c0_0 = arith.constant 0 : index
    %0 = vector.load %arg0[%c0, %c0_0] : memref<16x16xf32, #tpu.memory_space<vmem>>, vector<16x16xf32>
    %c0_1 = arith.constant 0 : index
    %c0_2 = arith.constant 0 : index
    %1 = vector.load %arg1[%c0_1, %c0_2] : memref<16x128xf32, #tpu.memory_space<vmem>>, vector<16x128xf32>
    %cst = arith.constant dense<0.000000e+00> : vector<16x128xf32>
    %2 = tpu.matmul %0, %1, %cst {dimension_numbers = #tpu.dot_dimension_numbers<[1], [0], [0], [1], [0, 0, 1, 1], [], []>} : vector<16x16xf32>, vector<16x128xf32>, vector<16x128xf32> -> vector<16x128xf32>
    %c0_3 = arith.constant 0 : index
    %c0_4 = arith.constant 0 : index
    %3 = vector.load %arg3[%c0_3, %c0_4] : memref<1x128xf32, #tpu.memory_space<vmem>>, vector<1x128xf32>
    %4 = vector.broadcast %3 : vector<1x128xf32> to vector<16x128xf32>
    %5 = arith.addf %2, %4 : vector<16x128xf32>
    %c0_5 = arith.constant 0 : index
    %c0_6 = arith.constant 0 : index
    %6 = vector.load %arg2[%c0_5, %c0_6] : memref<32x128xf32, #tpu.memory_space<vmem>>, vector<32x128xf32>
    %cst_7 = arith.constant 0.000000e+00 : f32
    %7 = vector.broadcast %cst_7 : f32 to vector<2x32xf32>
    %8 = vector.extract_strided_slice %5 {offsets = [0, 0], sizes = [2, 128], strides = [1, 1]} : vector<16x128xf32> to vector<2x128xf32>
    %cst_8 = arith.constant dense<0.000000e+00> : vector<2x128xf32>
    %9 = tpu.matmul %7, %6, %cst_8 {dimension_numbers = #tpu.dot_dimension_numbers<[1], [0], [0], [1], [0, 0, 1, 1], [], []>} : vector<2x32xf32>, vector<32x128xf32>, vector<2x128xf32> -> vector<2x128xf32>
    %10 = arith.addf %8, %9 : vector<2x128xf32>
    %cst_9 = arith.constant 5.000000e-01 : f32
    %11 = vector.broadcast %cst_9 : f32 to vector<2x128xf32>
    %12 = arith.mulf %11, %10 : vector<2x128xf32>
    %13 = math.tanh %12 : vector<2x128xf32>
    %cst_10 = arith.constant 1.000000e+00 : f32
    %14 = vector.broadcast %cst_10 : f32 to vector<2x128xf32>
    %15 = arith.addf %13, %14 : vector<2x128xf32>
    %cst_11 = arith.constant 5.000000e-01 : f32
    %16 = vector.broadcast %cst_11 : f32 to vector<2x128xf32>
    %17 = arith.mulf %16, %15 : vector<2x128xf32>
    %18 = vector.extract_strided_slice %10 {offsets = [0, 64], sizes = [2, 32], strides = [1, 1]} : vector<2x128xf32> to vector<2x32xf32>
    %19 = math.tanh %18 : vector<2x32xf32>
    %20 = vector.extract_strided_slice %17 {offsets = [0, 0], sizes = [2, 32], strides = [1, 1]} : vector<2x128xf32> to vector<2x32xf32>
    %21 = vector.extract_strided_slice %17 {offsets = [0, 32], sizes = [2, 32], strides = [1, 1]} : vector<2x128xf32> to vector<2x32xf32>
    %22 = vector.extract_strided_slice %17 {offsets = [0, 96], sizes = [2, 32], strides = [1, 1]} : vector<2x128xf32> to vector<2x32xf32>
    %23 = arith.mulf %21, %7 : vector<2x32xf32>
    %24 = arith.mulf %20, %19 : vector<2x32xf32>
    %25 = arith.addf %23, %24 : vector<2x32xf32>
    %26 = math.tanh %25 : vector<2x32xf32>
    %27 = arith.mulf %22, %26 : vector<2x32xf32>
    %28 = vector.extract_strided_slice %5 {offsets = [2, 0], sizes = [2, 128], strides = [1, 1]} : vector<16x128xf32> to vector<2x128xf32>
    %cst_12 = arith.constant dense<0.000000e+00> : vector<2x128xf32>
    %29 = tpu.matmul %27, %6, %cst_12 {dimension_numbers = #tpu.dot_dimension_numbers<[1], [0], [0], [1], [0, 0, 1, 1], [], []>} : vector<2x32xf32>, vector<32x128xf32>, vector<2x128xf32> -> vector<2x128xf32>
    %30 = arith.addf %28, %29 : vector<2x128xf32>
    %cst_13 = arith.constant 5.000000e-01 : f32
    %31 = vector.broadcast %cst_13 : f32 to vector<2x128xf32>
    %32 = arith.mulf %31, %30 : vector<2x128xf32>
    %33 = math.tanh %32 : vector<2x128xf32>
    %cst_14 = arith.constant 1.000000e+00 : f32
    %34 = vector.broadcast %cst_14 : f32 to vector<2x128xf32>
    %35 = arith.addf %33, %34 : vector<2x128xf32>
    %cst_15 = arith.constant 5.000000e-01 : f32
    %36 = vector.broadcast %cst_15 : f32 to vector<2x128xf32>
    %37 = arith.mulf %36, %35 : vector<2x128xf32>
    %38 = vector.extract_strided_slice %30 {offsets = [0, 64], sizes = [2, 32], strides = [1, 1]} : vector<2x128xf32> to vector<2x32xf32>
    %39 = math.tanh %38 : vector<2x32xf32>
    %40 = vector.extract_strided_slice %37 {offsets = [0, 0], sizes = [2, 32], strides = [1, 1]} : vector<2x128xf32> to vector<2x32xf32>
    %41 = vector.extract_strided_slice %37 {offsets = [0, 32], sizes = [2, 32], strides = [1, 1]} : vector<2x128xf32> to vector<2x32xf32>
    %42 = vector.extract_strided_slice %37 {offsets = [0, 96], sizes = [2, 32], strides = [1, 1]} : vector<2x128xf32> to vector<2x32xf32>
    %43 = arith.mulf %41, %25 : vector<2x32xf32>
    %44 = arith.mulf %40, %39 : vector<2x32xf32>
    %45 = arith.addf %43, %44 : vector<2x32xf32>
    %46 = math.tanh %45 : vector<2x32xf32>
    %47 = arith.mulf %42, %46 : vector<2x32xf32>
    %48 = tpu.concatenate %27, %7 in 1 : vector<2x32xf32>, vector<2x32xf32> -> vector<2x64xf32>
    %c0_16 = arith.constant 0 : index
    %c0_17 = arith.constant 0 : index
    %c0_18 = arith.constant 0 : index
    %49 = vector.load %arg4[%c0_16, %c0_17, %c0_18] : memref<5x64x128xf32, #tpu.memory_space<vmem>>, vector<1x64x128xf32>
    %50 = vector.shape_cast %49 : vector<1x64x128xf32> to vector<64x128xf32>
    %cst_19 = arith.constant dense<0.000000e+00> : vector<2x128xf32>
    %51 = tpu.matmul %48, %50, %cst_19 {dimension_numbers = #tpu.dot_dimension_numbers<[1], [0], [0], [1], [0, 0, 1, 1], [], []>} : vector<2x64xf32>, vector<64x128xf32>, vector<2x128xf32> -> vector<2x128xf32>
    %c0_20 = arith.constant 0 : index
    %c0_21 = arith.constant 0 : index
    %c0_22 = arith.constant 0 : index
    %52 = vector.load %arg5[%c0_20, %c0_21, %c0_22] : memref<5x1x128xf32, #tpu.memory_space<vmem>>, vector<1x1x128xf32>
    %53 = vector.shape_cast %52 : vector<1x1x128xf32> to vector<1x128xf32>
    %54 = vector.broadcast %53 : vector<1x128xf32> to vector<2x128xf32>
    %55 = arith.addf %51, %54 : vector<2x128xf32>
    %cst_23 = arith.constant 5.000000e-01 : f32
    %56 = vector.broadcast %cst_23 : f32 to vector<2x128xf32>
    %57 = arith.mulf %56, %55 : vector<2x128xf32>
    %58 = math.tanh %57 : vector<2x128xf32>
    %cst_24 = arith.constant 1.000000e+00 : f32
    %59 = vector.broadcast %cst_24 : f32 to vector<2x128xf32>
    %60 = arith.addf %58, %59 : vector<2x128xf32>
    %cst_25 = arith.constant 5.000000e-01 : f32
    %61 = vector.broadcast %cst_25 : f32 to vector<2x128xf32>
    %62 = arith.mulf %61, %60 : vector<2x128xf32>
    %63 = vector.extract_strided_slice %55 {offsets = [0, 64], sizes = [2, 32], strides = [1, 1]} : vector<2x128xf32> to vector<2x32xf32>
    %64 = math.tanh %63 : vector<2x32xf32>
    %65 = vector.extract_strided_slice %62 {offsets = [0, 0], sizes = [2, 32], strides = [1, 1]} : vector<2x128xf32> to vector<2x32xf32>
    %66 = vector.extract_strided_slice %62 {offsets = [0, 32], sizes = [2, 32], strides = [1, 1]} : vector<2x128xf32> to vector<2x32xf32>
    %67 = vector.extract_strided_slice %62 {offsets = [0, 96], sizes = [2, 32], strides = [1, 1]} : vector<2x128xf32> to vector<2x32xf32>
    %68 = arith.mulf %66, %7 : vector<2x32xf32>
    %69 = arith.mulf %65, %64 : vector<2x32xf32>
    %70 = arith.addf %68, %69 : vector<2x32xf32>
    %71 = math.tanh %70 : vector<2x32xf32>
    %72 = arith.mulf %67, %71 : vector<2x32xf32>
    %73 = vector.extract_strided_slice %5 {offsets = [4, 0], sizes = [2, 128], strides = [1, 1]} : vector<16x128xf32> to vector<2x128xf32>
    %cst_26 = arith.constant dense<0.000000e+00> : vector<2x128xf32>
    %74 = tpu.matmul %47, %6, %cst_26 {dimension_numbers = #tpu.dot_dimension_numbers<[1], [0], [0], [1], [0, 0, 1, 1], [], []>} : vector<2x32xf32>, vector<32x128xf32>, vector<2x128xf32> -> vector<2x128xf32>
    %75 = arith.addf %73, %74 : vector<2x128xf32>
    %cst_27 = arith.constant 5.000000e-01 : f32
    %76 = vector.broadcast %cst_27 : f32 to vector<2x128xf32>
    %77 = arith.mulf %76, %75 : vector<2x128xf32>
    %78 = math.tanh %77 : vector<2x128xf32>
    %cst_28 = arith.constant 1.000000e+00 : f32
    %79 = vector.broadcast %cst_28 : f32 to vector<2x128xf32>
    %80 = arith.addf %78, %79 : vector<2x128xf32>
    %cst_29 = arith.constant 5.000000e-01 : f32
    %81 = vector.broadcast %cst_29 : f32 to vector<2x128xf32>
    %82 = arith.mulf %81, %80 : vector<2x128xf32>
    %83 = vector.extract_strided_slice %75 {offsets = [0, 64], sizes = [2, 32], strides = [1, 1]} : vector<2x128xf32> to vector<2x32xf32>
    %84 = math.tanh %83 : vector<2x32xf32>
    %85 = vector.extract_strided_slice %82 {offsets = [0, 0], sizes = [2, 32], strides = [1, 1]} : vector<2x128xf32> to vector<2x32xf32>
    %86 = vector.extract_strided_slice %82 {offsets = [0, 32], sizes = [2, 32], strides = [1, 1]} : vector<2x128xf32> to vector<2x32xf32>
    %87 = vector.extract_strided_slice %82 {offsets = [0, 96], sizes = [2, 32], strides = [1, 1]} : vector<2x128xf32> to vector<2x32xf32>
    %88 = arith.mulf %86, %45 : vector<2x32xf32>
    %89 = arith.mulf %85, %84 : vector<2x32xf32>
    %90 = arith.addf %88, %89 : vector<2x32xf32>
    %91 = math.tanh %90 : vector<2x32xf32>
    %92 = arith.mulf %87, %91 : vector<2x32xf32>
    %93 = tpu.concatenate %47, %72 in 1 : vector<2x32xf32>, vector<2x32xf32> -> vector<2x64xf32>
    %c0_30 = arith.constant 0 : index
    %c0_31 = arith.constant 0 : index
    %c0_32 = arith.constant 0 : index
    %94 = vector.load %arg4[%c0_30, %c0_31, %c0_32] : memref<5x64x128xf32, #tpu.memory_space<vmem>>, vector<1x64x128xf32>
    %95 = vector.shape_cast %94 : vector<1x64x128xf32> to vector<64x128xf32>
    %cst_33 = arith.constant dense<0.000000e+00> : vector<2x128xf32>
    %96 = tpu.matmul %93, %95, %cst_33 {dimension_numbers = #tpu.dot_dimension_numbers<[1], [0], [0], [1], [0, 0, 1, 1], [], []>} : vector<2x64xf32>, vector<64x128xf32>, vector<2x128xf32> -> vector<2x128xf32>
    %c0_34 = arith.constant 0 : index
    %c0_35 = arith.constant 0 : index
    %c0_36 = arith.constant 0 : index
    %97 = vector.load %arg5[%c0_34, %c0_35, %c0_36] : memref<5x1x128xf32, #tpu.memory_space<vmem>>, vector<1x1x128xf32>
    %98 = vector.shape_cast %97 : vector<1x1x128xf32> to vector<1x128xf32>
    %99 = vector.broadcast %98 : vector<1x128xf32> to vector<2x128xf32>
    %100 = arith.addf %96, %99 : vector<2x128xf32>
    %cst_37 = arith.constant 5.000000e-01 : f32
    %101 = vector.broadcast %cst_37 : f32 to vector<2x128xf32>
    %102 = arith.mulf %101, %100 : vector<2x128xf32>
    %103 = math.tanh %102 : vector<2x128xf32>
    %cst_38 = arith.constant 1.000000e+00 : f32
    %104 = vector.broadcast %cst_38 : f32 to vector<2x128xf32>
    %105 = arith.addf %103, %104 : vector<2x128xf32>
    %cst_39 = arith.constant 5.000000e-01 : f32
    %106 = vector.broadcast %cst_39 : f32 to vector<2x128xf32>
    %107 = arith.mulf %106, %105 : vector<2x128xf32>
    %108 = vector.extract_strided_slice %100 {offsets = [0, 64], sizes = [2, 32], strides = [1, 1]} : vector<2x128xf32> to vector<2x32xf32>
    %109 = math.tanh %108 : vector<2x32xf32>
    %110 = vector.extract_strided_slice %107 {offsets = [0, 0], sizes = [2, 32], strides = [1, 1]} : vector<2x128xf32> to vector<2x32xf32>
    %111 = vector.extract_strided_slice %107 {offsets = [0, 32], sizes = [2, 32], strides = [1, 1]} : vector<2x128xf32> to vector<2x32xf32>
    %112 = vector.extract_strided_slice %107 {offsets = [0, 96], sizes = [2, 32], strides = [1, 1]} : vector<2x128xf32> to vector<2x32xf32>
    %113 = arith.mulf %111, %70 : vector<2x32xf32>
    %114 = arith.mulf %110, %109 : vector<2x32xf32>
    %115 = arith.addf %113, %114 : vector<2x32xf32>
    %116 = math.tanh %115 : vector<2x32xf32>
    %117 = arith.mulf %112, %116 : vector<2x32xf32>
    %118 = tpu.concatenate %72, %7 in 1 : vector<2x32xf32>, vector<2x32xf32> -> vector<2x64xf32>
    %c1 = arith.constant 1 : index
    %c0_40 = arith.constant 0 : index
    %c0_41 = arith.constant 0 : index
    %119 = vector.load %arg4[%c1, %c0_40, %c0_41] : memref<5x64x128xf32, #tpu.memory_space<vmem>>, vector<1x64x128xf32>
    %120 = vector.shape_cast %119 : vector<1x64x128xf32> to vector<64x128xf32>
    %cst_42 = arith.constant dense<0.000000e+00> : vector<2x128xf32>
    %121 = tpu.matmul %118, %120, %cst_42 {dimension_numbers = #tpu.dot_dimension_numbers<[1], [0], [0], [1], [0, 0, 1, 1], [], []>} : vector<2x64xf32>, vector<64x128xf32>, vector<2x128xf32> -> vector<2x128xf32>
    %c1_43 = arith.constant 1 : index
    %c0_44 = arith.constant 0 : index
    %c0_45 = arith.constant 0 : index
    %122 = vector.load %arg5[%c1_43, %c0_44, %c0_45] : memref<5x1x128xf32, #tpu.memory_space<vmem>>, vector<1x1x128xf32>
    %123 = vector.shape_cast %122 : vector<1x1x128xf32> to vector<1x128xf32>
    %124 = vector.broadcast %123 : vector<1x128xf32> to vector<2x128xf32>
    %125 = arith.addf %121, %124 : vector<2x128xf32>
    %cst_46 = arith.constant 5.000000e-01 : f32
    %126 = vector.broadcast %cst_46 : f32 to vector<2x128xf32>
    %127 = arith.mulf %126, %125 : vector<2x128xf32>
    %128 = math.tanh %127 : vector<2x128xf32>
    %cst_47 = arith.constant 1.000000e+00 : f32
    %129 = vector.broadcast %cst_47 : f32 to vector<2x128xf32>
    %130 = arith.addf %128, %129 : vector<2x128xf32>
    %cst_48 = arith.constant 5.000000e-01 : f32
    %131 = vector.broadcast %cst_48 : f32 to vector<2x128xf32>
    %132 = arith.mulf %131, %130 : vector<2x128xf32>
    %133 = vector.extract_strided_slice %125 {offsets = [0, 64], sizes = [2, 32], strides = [1, 1]} : vector<2x128xf32> to vector<2x32xf32>
    %134 = math.tanh %133 : vector<2x32xf32>
    %135 = vector.extract_strided_slice %132 {offsets = [0, 0], sizes = [2, 32], strides = [1, 1]} : vector<2x128xf32> to vector<2x32xf32>
    %136 = vector.extract_strided_slice %132 {offsets = [0, 32], sizes = [2, 32], strides = [1, 1]} : vector<2x128xf32> to vector<2x32xf32>
    %137 = vector.extract_strided_slice %132 {offsets = [0, 96], sizes = [2, 32], strides = [1, 1]} : vector<2x128xf32> to vector<2x32xf32>
    %138 = arith.mulf %136, %7 : vector<2x32xf32>
    %139 = arith.mulf %135, %134 : vector<2x32xf32>
    %140 = arith.addf %138, %139 : vector<2x32xf32>
    %141 = math.tanh %140 : vector<2x32xf32>
    %142 = arith.mulf %137, %141 : vector<2x32xf32>
    %143 = vector.extract_strided_slice %5 {offsets = [6, 0], sizes = [2, 128], strides = [1, 1]} : vector<16x128xf32> to vector<2x128xf32>
    %cst_49 = arith.constant dense<0.000000e+00> : vector<2x128xf32>
    %144 = tpu.matmul %92, %6, %cst_49 {dimension_numbers = #tpu.dot_dimension_numbers<[1], [0], [0], [1], [0, 0, 1, 1], [], []>} : vector<2x32xf32>, vector<32x128xf32>, vector<2x128xf32> -> vector<2x128xf32>
    %145 = arith.addf %143, %144 : vector<2x128xf32>
    %cst_50 = arith.constant 5.000000e-01 : f32
    %146 = vector.broadcast %cst_50 : f32 to vector<2x128xf32>
    %147 = arith.mulf %146, %145 : vector<2x128xf32>
    %148 = math.tanh %147 : vector<2x128xf32>
    %cst_51 = arith.constant 1.000000e+00 : f32
    %149 = vector.broadcast %cst_51 : f32 to vector<2x128xf32>
    %150 = arith.addf %148, %149 : vector<2x128xf32>
    %cst_52 = arith.constant 5.000000e-01 : f32
    %151 = vector.broadcast %cst_52 : f32 to vector<2x128xf32>
    %152 = arith.mulf %151, %150 : vector<2x128xf32>
    %153 = vector.extract_strided_slice %145 {offsets = [0, 64], sizes = [2, 32], strides = [1, 1]} : vector<2x128xf32> to vector<2x32xf32>
    %154 = math.tanh %153 : vector<2x32xf32>
    %155 = vector.extract_strided_slice %152 {offsets = [0, 0], sizes = [2, 32], strides = [1, 1]} : vector<2x128xf32> to vector<2x32xf32>
    %156 = vector.extract_strided_slice %152 {offsets = [0, 32], sizes = [2, 32], strides = [1, 1]} : vector<2x128xf32> to vector<2x32xf32>
    %157 = vector.extract_strided_slice %152 {offsets = [0, 96], sizes = [2, 32], strides = [1, 1]} : vector<2x128xf32> to vector<2x32xf32>
    %158 = arith.mulf %156, %90 : vector<2x32xf32>
    %159 = arith.mulf %155, %154 : vector<2x32xf32>
    %160 = arith.addf %158, %159 : vector<2x32xf32>
    %161 = math.tanh %160 : vector<2x32xf32>
    %162 = arith.mulf %157, %161 : vector<2x32xf32>
    %163 = tpu.concatenate %92, %117 in 1 : vector<2x32xf32>, vector<2x32xf32> -> vector<2x64xf32>
    %c0_53 = arith.constant 0 : index
    %c0_54 = arith.constant 0 : index
    %c0_55 = arith.constant 0 : index
    %164 = vector.load %arg4[%c0_53, %c0_54, %c0_55] : memref<5x64x128xf32, #tpu.memory_space<vmem>>, vector<1x64x128xf32>
    %165 = vector.shape_cast %164 : vector<1x64x128xf32> to vector<64x128xf32>
    %cst_56 = arith.constant dense<0.000000e+00> : vector<2x128xf32>
    %166 = tpu.matmul %163, %165, %cst_56 {dimension_numbers = #tpu.dot_dimension_numbers<[1], [0], [0], [1], [0, 0, 1, 1], [], []>} : vector<2x64xf32>, vector<64x128xf32>, vector<2x128xf32> -> vector<2x128xf32>
    %c0_57 = arith.constant 0 : index
    %c0_58 = arith.constant 0 : index
    %c0_59 = arith.constant 0 : index
    %167 = vector.load %arg5[%c0_57, %c0_58, %c0_59] : memref<5x1x128xf32, #tpu.memory_space<vmem>>, vector<1x1x128xf32>
    %168 = vector.shape_cast %167 : vector<1x1x128xf32> to vector<1x128xf32>
    %169 = vector.broadcast %168 : vector<1x128xf32> to vector<2x128xf32>
    %170 = arith.addf %166, %169 : vector<2x128xf32>
    %cst_60 = arith.constant 5.000000e-01 : f32
    %171 = vector.broadcast %cst_60 : f32 to vector<2x128xf32>
    %172 = arith.mulf %171, %170 : vector<2x128xf32>
    %173 = math.tanh %172 : vector<2x128xf32>
    %cst_61 = arith.constant 1.000000e+00 : f32
    %174 = vector.broadcast %cst_61 : f32 to vector<2x128xf32>
    %175 = arith.addf %173, %174 : vector<2x128xf32>
    %cst_62 = arith.constant 5.000000e-01 : f32
    %176 = vector.broadcast %cst_62 : f32 to vector<2x128xf32>
    %177 = arith.mulf %176, %175 : vector<2x128xf32>
    %178 = vector.extract_strided_slice %170 {offsets = [0, 64], sizes = [2, 32], strides = [1, 1]} : vector<2x128xf32> to vector<2x32xf32>
    %179 = math.tanh %178 : vector<2x32xf32>
    %180 = vector.extract_strided_slice %177 {offsets = [0, 0], sizes = [2, 32], strides = [1, 1]} : vector<2x128xf32> to vector<2x32xf32>
    %181 = vector.extract_strided_slice %177 {offsets = [0, 32], sizes = [2, 32], strides = [1, 1]} : vector<2x128xf32> to vector<2x32xf32>
    %182 = vector.extract_strided_slice %177 {offsets = [0, 96], sizes = [2, 32], strides = [1, 1]} : vector<2x128xf32> to vector<2x32xf32>
    %183 = arith.mulf %181, %115 : vector<2x32xf32>
    %184 = arith.mulf %180, %179 : vector<2x32xf32>
    %185 = arith.addf %183, %184 : vector<2x32xf32>
    %186 = math.tanh %185 : vector<2x32xf32>
    %187 = arith.mulf %182, %186 : vector<2x32xf32>
    %188 = tpu.concatenate %117, %142 in 1 : vector<2x32xf32>, vector<2x32xf32> -> vector<2x64xf32>
    %c1_63 = arith.constant 1 : index
    %c0_64 = arith.constant 0 : index
    %c0_65 = arith.constant 0 : index
    %189 = vector.load %arg4[%c1_63, %c0_64, %c0_65] : memref<5x64x128xf32, #tpu.memory_space<vmem>>, vector<1x64x128xf32>
    %190 = vector.shape_cast %189 : vector<1x64x128xf32> to vector<64x128xf32>
    %cst_66 = arith.constant dense<0.000000e+00> : vector<2x128xf32>
    %191 = tpu.matmul %188, %190, %cst_66 {dimension_numbers = #tpu.dot_dimension_numbers<[1], [0], [0], [1], [0, 0, 1, 1], [], []>} : vector<2x64xf32>, vector<64x128xf32>, vector<2x128xf32> -> vector<2x128xf32>
    %c1_67 = arith.constant 1 : index
    %c0_68 = arith.constant 0 : index
    %c0_69 = arith.constant 0 : index
    %192 = vector.load %arg5[%c1_67, %c0_68, %c0_69] : memref<5x1x128xf32, #tpu.memory_space<vmem>>, vector<1x1x128xf32>
    %193 = vector.shape_cast %192 : vector<1x1x128xf32> to vector<1x128xf32>
    %194 = vector.broadcast %193 : vector<1x128xf32> to vector<2x128xf32>
    %195 = arith.addf %191, %194 : vector<2x128xf32>
    %cst_70 = arith.constant 5.000000e-01 : f32
    %196 = vector.broadcast %cst_70 : f32 to vector<2x128xf32>
    %197 = arith.mulf %196, %195 : vector<2x128xf32>
    %198 = math.tanh %197 : vector<2x128xf32>
    %cst_71 = arith.constant 1.000000e+00 : f32
    %199 = vector.broadcast %cst_71 : f32 to vector<2x128xf32>
    %200 = arith.addf %198, %199 : vector<2x128xf32>
    %cst_72 = arith.constant 5.000000e-01 : f32
    %201 = vector.broadcast %cst_72 : f32 to vector<2x128xf32>
    %202 = arith.mulf %201, %200 : vector<2x128xf32>
    %203 = vector.extract_strided_slice %195 {offsets = [0, 64], sizes = [2, 32], strides = [1, 1]} : vector<2x128xf32> to vector<2x32xf32>
    %204 = math.tanh %203 : vector<2x32xf32>
    %205 = vector.extract_strided_slice %202 {offsets = [0, 0], sizes = [2, 32], strides = [1, 1]} : vector<2x128xf32> to vector<2x32xf32>
    %206 = vector.extract_strided_slice %202 {offsets = [0, 32], sizes = [2, 32], strides = [1, 1]} : vector<2x128xf32> to vector<2x32xf32>
    %207 = vector.extract_strided_slice %202 {offsets = [0, 96], sizes = [2, 32], strides = [1, 1]} : vector<2x128xf32> to vector<2x32xf32>
    %208 = arith.mulf %206, %140 : vector<2x32xf32>
    %209 = arith.mulf %205, %204 : vector<2x32xf32>
    %210 = arith.addf %208, %209 : vector<2x32xf32>
    %211 = math.tanh %210 : vector<2x32xf32>
    %212 = arith.mulf %207, %211 : vector<2x32xf32>
    %213 = tpu.concatenate %142, %7 in 1 : vector<2x32xf32>, vector<2x32xf32> -> vector<2x64xf32>
    %c2 = arith.constant 2 : index
    %c0_73 = arith.constant 0 : index
    %c0_74 = arith.constant 0 : index
    %214 = vector.load %arg4[%c2, %c0_73, %c0_74] : memref<5x64x128xf32, #tpu.memory_space<vmem>>, vector<1x64x128xf32>
    %215 = vector.shape_cast %214 : vector<1x64x128xf32> to vector<64x128xf32>
    %cst_75 = arith.constant dense<0.000000e+00> : vector<2x128xf32>
    %216 = tpu.matmul %213, %215, %cst_75 {dimension_numbers = #tpu.dot_dimension_numbers<[1], [0], [0], [1], [0, 0, 1, 1], [], []>} : vector<2x64xf32>, vector<64x128xf32>, vector<2x128xf32> -> vector<2x128xf32>
    %c2_76 = arith.constant 2 : index
    %c0_77 = arith.constant 0 : index
    %c0_78 = arith.constant 0 : index
    %217 = vector.load %arg5[%c2_76, %c0_77, %c0_78] : memref<5x1x128xf32, #tpu.memory_space<vmem>>, vector<1x1x128xf32>
    %218 = vector.shape_cast %217 : vector<1x1x128xf32> to vector<1x128xf32>
    %219 = vector.broadcast %218 : vector<1x128xf32> to vector<2x128xf32>
    %220 = arith.addf %216, %219 : vector<2x128xf32>
    %cst_79 = arith.constant 5.000000e-01 : f32
    %221 = vector.broadcast %cst_79 : f32 to vector<2x128xf32>
    %222 = arith.mulf %221, %220 : vector<2x128xf32>
    %223 = math.tanh %222 : vector<2x128xf32>
    %cst_80 = arith.constant 1.000000e+00 : f32
    %224 = vector.broadcast %cst_80 : f32 to vector<2x128xf32>
    %225 = arith.addf %223, %224 : vector<2x128xf32>
    %cst_81 = arith.constant 5.000000e-01 : f32
    %226 = vector.broadcast %cst_81 : f32 to vector<2x128xf32>
    %227 = arith.mulf %226, %225 : vector<2x128xf32>
    %228 = vector.extract_strided_slice %220 {offsets = [0, 64], sizes = [2, 32], strides = [1, 1]} : vector<2x128xf32> to vector<2x32xf32>
    %229 = math.tanh %228 : vector<2x32xf32>
    %230 = vector.extract_strided_slice %227 {offsets = [0, 0], sizes = [2, 32], strides = [1, 1]} : vector<2x128xf32> to vector<2x32xf32>
    %231 = vector.extract_strided_slice %227 {offsets = [0, 32], sizes = [2, 32], strides = [1, 1]} : vector<2x128xf32> to vector<2x32xf32>
    %232 = vector.extract_strided_slice %227 {offsets = [0, 96], sizes = [2, 32], strides = [1, 1]} : vector<2x128xf32> to vector<2x32xf32>
    %233 = arith.mulf %231, %7 : vector<2x32xf32>
    %234 = arith.mulf %230, %229 : vector<2x32xf32>
    %235 = arith.addf %233, %234 : vector<2x32xf32>
    %236 = math.tanh %235 : vector<2x32xf32>
    %237 = arith.mulf %232, %236 : vector<2x32xf32>
    %238 = vector.extract_strided_slice %5 {offsets = [8, 0], sizes = [2, 128], strides = [1, 1]} : vector<16x128xf32> to vector<2x128xf32>
    %cst_82 = arith.constant dense<0.000000e+00> : vector<2x128xf32>
    %239 = tpu.matmul %162, %6, %cst_82 {dimension_numbers = #tpu.dot_dimension_numbers<[1], [0], [0], [1], [0, 0, 1, 1], [], []>} : vector<2x32xf32>, vector<32x128xf32>, vector<2x128xf32> -> vector<2x128xf32>
    %240 = arith.addf %238, %239 : vector<2x128xf32>
    %cst_83 = arith.constant 5.000000e-01 : f32
    %241 = vector.broadcast %cst_83 : f32 to vector<2x128xf32>
    %242 = arith.mulf %241, %240 : vector<2x128xf32>
    %243 = math.tanh %242 : vector<2x128xf32>
    %cst_84 = arith.constant 1.000000e+00 : f32
    %244 = vector.broadcast %cst_84 : f32 to vector<2x128xf32>
    %245 = arith.addf %243, %244 : vector<2x128xf32>
    %cst_85 = arith.constant 5.000000e-01 : f32
    %246 = vector.broadcast %cst_85 : f32 to vector<2x128xf32>
    %247 = arith.mulf %246, %245 : vector<2x128xf32>
    %248 = vector.extract_strided_slice %240 {offsets = [0, 64], sizes = [2, 32], strides = [1, 1]} : vector<2x128xf32> to vector<2x32xf32>
    %249 = math.tanh %248 : vector<2x32xf32>
    %250 = vector.extract_strided_slice %247 {offsets = [0, 0], sizes = [2, 32], strides = [1, 1]} : vector<2x128xf32> to vector<2x32xf32>
    %251 = vector.extract_strided_slice %247 {offsets = [0, 32], sizes = [2, 32], strides = [1, 1]} : vector<2x128xf32> to vector<2x32xf32>
    %252 = vector.extract_strided_slice %247 {offsets = [0, 96], sizes = [2, 32], strides = [1, 1]} : vector<2x128xf32> to vector<2x32xf32>
    %253 = arith.mulf %251, %160 : vector<2x32xf32>
    %254 = arith.mulf %250, %249 : vector<2x32xf32>
    %255 = arith.addf %253, %254 : vector<2x32xf32>
    %256 = math.tanh %255 : vector<2x32xf32>
    %257 = arith.mulf %252, %256 : vector<2x32xf32>
    %258 = tpu.concatenate %162, %187 in 1 : vector<2x32xf32>, vector<2x32xf32> -> vector<2x64xf32>
    %c0_86 = arith.constant 0 : index
    %c0_87 = arith.constant 0 : index
    %c0_88 = arith.constant 0 : index
    %259 = vector.load %arg4[%c0_86, %c0_87, %c0_88] : memref<5x64x128xf32, #tpu.memory_space<vmem>>, vector<1x64x128xf32>
    %260 = vector.shape_cast %259 : vector<1x64x128xf32> to vector<64x128xf32>
    %cst_89 = arith.constant dense<0.000000e+00> : vector<2x128xf32>
    %261 = tpu.matmul %258, %260, %cst_89 {dimension_numbers = #tpu.dot_dimension_numbers<[1], [0], [0], [1], [0, 0, 1, 1], [], []>} : vector<2x64xf32>, vector<64x128xf32>, vector<2x128xf32> -> vector<2x128xf32>
    %c0_90 = arith.constant 0 : index
    %c0_91 = arith.constant 0 : index
    %c0_92 = arith.constant 0 : index
    %262 = vector.load %arg5[%c0_90, %c0_91, %c0_92] : memref<5x1x128xf32, #tpu.memory_space<vmem>>, vector<1x1x128xf32>
    %263 = vector.shape_cast %262 : vector<1x1x128xf32> to vector<1x128xf32>
    %264 = vector.broadcast %263 : vector<1x128xf32> to vector<2x128xf32>
    %265 = arith.addf %261, %264 : vector<2x128xf32>
    %cst_93 = arith.constant 5.000000e-01 : f32
    %266 = vector.broadcast %cst_93 : f32 to vector<2x128xf32>
    %267 = arith.mulf %266, %265 : vector<2x128xf32>
    %268 = math.tanh %267 : vector<2x128xf32>
    %cst_94 = arith.constant 1.000000e+00 : f32
    %269 = vector.broadcast %cst_94 : f32 to vector<2x128xf32>
    %270 = arith.addf %268, %269 : vector<2x128xf32>
    %cst_95 = arith.constant 5.000000e-01 : f32
    %271 = vector.broadcast %cst_95 : f32 to vector<2x128xf32>
    %272 = arith.mulf %271, %270 : vector<2x128xf32>
    %273 = vector.extract_strided_slice %265 {offsets = [0, 64], sizes = [2, 32], strides = [1, 1]} : vector<2x128xf32> to vector<2x32xf32>
    %274 = math.tanh %273 : vector<2x32xf32>
    %275 = vector.extract_strided_slice %272 {offsets = [0, 0], sizes = [2, 32], strides = [1, 1]} : vector<2x128xf32> to vector<2x32xf32>
    %276 = vector.extract_strided_slice %272 {offsets = [0, 32], sizes = [2, 32], strides = [1, 1]} : vector<2x128xf32> to vector<2x32xf32>
    %277 = vector.extract_strided_slice %272 {offsets = [0, 96], sizes = [2, 32], strides = [1, 1]} : vector<2x128xf32> to vector<2x32xf32>
    %278 = arith.mulf %276, %185 : vector<2x32xf32>
    %279 = arith.mulf %275, %274 : vector<2x32xf32>
    %280 = arith.addf %278, %279 : vector<2x32xf32>
    %281 = math.tanh %280 : vector<2x32xf32>
    %282 = arith.mulf %277, %281 : vector<2x32xf32>
    %283 = tpu.concatenate %187, %212 in 1 : vector<2x32xf32>, vector<2x32xf32> -> vector<2x64xf32>
    %c1_96 = arith.constant 1 : index
    %c0_97 = arith.constant 0 : index
    %c0_98 = arith.constant 0 : index
    %284 = vector.load %arg4[%c1_96, %c0_97, %c0_98] : memref<5x64x128xf32, #tpu.memory_space<vmem>>, vector<1x64x128xf32>
    %285 = vector.shape_cast %284 : vector<1x64x128xf32> to vector<64x128xf32>
    %cst_99 = arith.constant dense<0.000000e+00> : vector<2x128xf32>
    %286 = tpu.matmul %283, %285, %cst_99 {dimension_numbers = #tpu.dot_dimension_numbers<[1], [0], [0], [1], [0, 0, 1, 1], [], []>} : vector<2x64xf32>, vector<64x128xf32>, vector<2x128xf32> -> vector<2x128xf32>
    %c1_100 = arith.constant 1 : index
    %c0_101 = arith.constant 0 : index
    %c0_102 = arith.constant 0 : index
    %287 = vector.load %arg5[%c1_100, %c0_101, %c0_102] : memref<5x1x128xf32, #tpu.memory_space<vmem>>, vector<1x1x128xf32>
    %288 = vector.shape_cast %287 : vector<1x1x128xf32> to vector<1x128xf32>
    %289 = vector.broadcast %288 : vector<1x128xf32> to vector<2x128xf32>
    %290 = arith.addf %286, %289 : vector<2x128xf32>
    %cst_103 = arith.constant 5.000000e-01 : f32
    %291 = vector.broadcast %cst_103 : f32 to vector<2x128xf32>
    %292 = arith.mulf %291, %290 : vector<2x128xf32>
    %293 = math.tanh %292 : vector<2x128xf32>
    %cst_104 = arith.constant 1.000000e+00 : f32
    %294 = vector.broadcast %cst_104 : f32 to vector<2x128xf32>
    %295 = arith.addf %293, %294 : vector<2x128xf32>
    %cst_105 = arith.constant 5.000000e-01 : f32
    %296 = vector.broadcast %cst_105 : f32 to vector<2x128xf32>
    %297 = arith.mulf %296, %295 : vector<2x128xf32>
    %298 = vector.extract_strided_slice %290 {offsets = [0, 64], sizes = [2, 32], strides = [1, 1]} : vector<2x128xf32> to vector<2x32xf32>
    %299 = math.tanh %298 : vector<2x32xf32>
    %300 = vector.extract_strided_slice %297 {offsets = [0, 0], sizes = [2, 32], strides = [1, 1]} : vector<2x128xf32> to vector<2x32xf32>
    %301 = vector.extract_strided_slice %297 {offsets = [0, 32], sizes = [2, 32], strides = [1, 1]} : vector<2x128xf32> to vector<2x32xf32>
    %302 = vector.extract_strided_slice %297 {offsets = [0, 96], sizes = [2, 32], strides = [1, 1]} : vector<2x128xf32> to vector<2x32xf32>
    %303 = arith.mulf %301, %210 : vector<2x32xf32>
    %304 = arith.mulf %300, %299 : vector<2x32xf32>
    %305 = arith.addf %303, %304 : vector<2x32xf32>
    %306 = math.tanh %305 : vector<2x32xf32>
    %307 = arith.mulf %302, %306 : vector<2x32xf32>
    %308 = tpu.concatenate %212, %237 in 1 : vector<2x32xf32>, vector<2x32xf32> -> vector<2x64xf32>
    %c2_106 = arith.constant 2 : index
    %c0_107 = arith.constant 0 : index
    %c0_108 = arith.constant 0 : index
    %309 = vector.load %arg4[%c2_106, %c0_107, %c0_108] : memref<5x64x128xf32, #tpu.memory_space<vmem>>, vector<1x64x128xf32>
    %310 = vector.shape_cast %309 : vector<1x64x128xf32> to vector<64x128xf32>
    %cst_109 = arith.constant dense<0.000000e+00> : vector<2x128xf32>
    %311 = tpu.matmul %308, %310, %cst_109 {dimension_numbers = #tpu.dot_dimension_numbers<[1], [0], [0], [1], [0, 0, 1, 1], [], []>} : vector<2x64xf32>, vector<64x128xf32>, vector<2x128xf32> -> vector<2x128xf32>
    %c2_110 = arith.constant 2 : index
    %c0_111 = arith.constant 0 : index
    %c0_112 = arith.constant 0 : index
    %312 = vector.load %arg5[%c2_110, %c0_111, %c0_112] : memref<5x1x128xf32, #tpu.memory_space<vmem>>, vector<1x1x128xf32>
    %313 = vector.shape_cast %312 : vector<1x1x128xf32> to vector<1x128xf32>
    %314 = vector.broadcast %313 : vector<1x128xf32> to vector<2x128xf32>
    %315 = arith.addf %311, %314 : vector<2x128xf32>
    %cst_113 = arith.constant 5.000000e-01 : f32
    %316 = vector.broadcast %cst_113 : f32 to vector<2x128xf32>
    %317 = arith.mulf %316, %315 : vector<2x128xf32>
    %318 = math.tanh %317 : vector<2x128xf32>
    %cst_114 = arith.constant 1.000000e+00 : f32
    %319 = vector.broadcast %cst_114 : f32 to vector<2x128xf32>
    %320 = arith.addf %318, %319 : vector<2x128xf32>
    %cst_115 = arith.constant 5.000000e-01 : f32
    %321 = vector.broadcast %cst_115 : f32 to vector<2x128xf32>
    %322 = arith.mulf %321, %320 : vector<2x128xf32>
    %323 = vector.extract_strided_slice %315 {offsets = [0, 64], sizes = [2, 32], strides = [1, 1]} : vector<2x128xf32> to vector<2x32xf32>
    %324 = math.tanh %323 : vector<2x32xf32>
    %325 = vector.extract_strided_slice %322 {offsets = [0, 0], sizes = [2, 32], strides = [1, 1]} : vector<2x128xf32> to vector<2x32xf32>
    %326 = vector.extract_strided_slice %322 {offsets = [0, 32], sizes = [2, 32], strides = [1, 1]} : vector<2x128xf32> to vector<2x32xf32>
    %327 = vector.extract_strided_slice %322 {offsets = [0, 96], sizes = [2, 32], strides = [1, 1]} : vector<2x128xf32> to vector<2x32xf32>
    %328 = arith.mulf %326, %235 : vector<2x32xf32>
    %329 = arith.mulf %325, %324 : vector<2x32xf32>
    %330 = arith.addf %328, %329 : vector<2x32xf32>
    %331 = math.tanh %330 : vector<2x32xf32>
    %332 = arith.mulf %327, %331 : vector<2x32xf32>
    %333 = tpu.concatenate %237, %7 in 1 : vector<2x32xf32>, vector<2x32xf32> -> vector<2x64xf32>
    %c3 = arith.constant 3 : index
    %c0_116 = arith.constant 0 : index
    %c0_117 = arith.constant 0 : index
    %334 = vector.load %arg4[%c3, %c0_116, %c0_117] : memref<5x64x128xf32, #tpu.memory_space<vmem>>, vector<1x64x128xf32>
    %335 = vector.shape_cast %334 : vector<1x64x128xf32> to vector<64x128xf32>
    %cst_118 = arith.constant dense<0.000000e+00> : vector<2x128xf32>
    %336 = tpu.matmul %333, %335, %cst_118 {dimension_numbers = #tpu.dot_dimension_numbers<[1], [0], [0], [1], [0, 0, 1, 1], [], []>} : vector<2x64xf32>, vector<64x128xf32>, vector<2x128xf32> -> vector<2x128xf32>
    %c3_119 = arith.constant 3 : index
    %c0_120 = arith.constant 0 : index
    %c0_121 = arith.constant 0 : index
    %337 = vector.load %arg5[%c3_119, %c0_120, %c0_121] : memref<5x1x128xf32, #tpu.memory_space<vmem>>, vector<1x1x128xf32>
    %338 = vector.shape_cast %337 : vector<1x1x128xf32> to vector<1x128xf32>
    %339 = vector.broadcast %338 : vector<1x128xf32> to vector<2x128xf32>
    %340 = arith.addf %336, %339 : vector<2x128xf32>
    %cst_122 = arith.constant 5.000000e-01 : f32
    %341 = vector.broadcast %cst_122 : f32 to vector<2x128xf32>
    %342 = arith.mulf %341, %340 : vector<2x128xf32>
    %343 = math.tanh %342 : vector<2x128xf32>
    %cst_123 = arith.constant 1.000000e+00 : f32
    %344 = vector.broadcast %cst_123 : f32 to vector<2x128xf32>
    %345 = arith.addf %343, %344 : vector<2x128xf32>
    %cst_124 = arith.constant 5.000000e-01 : f32
    %346 = vector.broadcast %cst_124 : f32 to vector<2x128xf32>
    %347 = arith.mulf %346, %345 : vector<2x128xf32>
    %348 = vector.extract_strided_slice %340 {offsets = [0, 64], sizes = [2, 32], strides = [1, 1]} : vector<2x128xf32> to vector<2x32xf32>
    %349 = math.tanh %348 : vector<2x32xf32>
    %350 = vector.extract_strided_slice %347 {offsets = [0, 0], sizes = [2, 32], strides = [1, 1]} : vector<2x128xf32> to vector<2x32xf32>
    %351 = vector.extract_strided_slice %347 {offsets = [0, 32], sizes = [2, 32], strides = [1, 1]} : vector<2x128xf32> to vector<2x32xf32>
    %352 = vector.extract_strided_slice %347 {offsets = [0, 96], sizes = [2, 32], strides = [1, 1]} : vector<2x128xf32> to vector<2x32xf32>
    %353 = arith.mulf %351, %7 : vector<2x32xf32>
    %354 = arith.mulf %350, %349 : vector<2x32xf32>
    %355 = arith.addf %353, %354 : vector<2x32xf32>
    %356 = math.tanh %355 : vector<2x32xf32>
    %357 = arith.mulf %352, %356 : vector<2x32xf32>
    %358 = vector.extract_strided_slice %5 {offsets = [10, 0], sizes = [2, 128], strides = [1, 1]} : vector<16x128xf32> to vector<2x128xf32>
    %cst_125 = arith.constant dense<0.000000e+00> : vector<2x128xf32>
    %359 = tpu.matmul %257, %6, %cst_125 {dimension_numbers = #tpu.dot_dimension_numbers<[1], [0], [0], [1], [0, 0, 1, 1], [], []>} : vector<2x32xf32>, vector<32x128xf32>, vector<2x128xf32> -> vector<2x128xf32>
    %360 = arith.addf %358, %359 : vector<2x128xf32>
    %cst_126 = arith.constant 5.000000e-01 : f32
    %361 = vector.broadcast %cst_126 : f32 to vector<2x128xf32>
    %362 = arith.mulf %361, %360 : vector<2x128xf32>
    %363 = math.tanh %362 : vector<2x128xf32>
    %cst_127 = arith.constant 1.000000e+00 : f32
    %364 = vector.broadcast %cst_127 : f32 to vector<2x128xf32>
    %365 = arith.addf %363, %364 : vector<2x128xf32>
    %cst_128 = arith.constant 5.000000e-01 : f32
    %366 = vector.broadcast %cst_128 : f32 to vector<2x128xf32>
    %367 = arith.mulf %366, %365 : vector<2x128xf32>
    %368 = vector.extract_strided_slice %360 {offsets = [0, 64], sizes = [2, 32], strides = [1, 1]} : vector<2x128xf32> to vector<2x32xf32>
    %369 = math.tanh %368 : vector<2x32xf32>
    %370 = vector.extract_strided_slice %367 {offsets = [0, 0], sizes = [2, 32], strides = [1, 1]} : vector<2x128xf32> to vector<2x32xf32>
    %371 = vector.extract_strided_slice %367 {offsets = [0, 32], sizes = [2, 32], strides = [1, 1]} : vector<2x128xf32> to vector<2x32xf32>
    %372 = vector.extract_strided_slice %367 {offsets = [0, 96], sizes = [2, 32], strides = [1, 1]} : vector<2x128xf32> to vector<2x32xf32>
    %373 = arith.mulf %371, %255 : vector<2x32xf32>
    %374 = arith.mulf %370, %369 : vector<2x32xf32>
    %375 = arith.addf %373, %374 : vector<2x32xf32>
    %376 = math.tanh %375 : vector<2x32xf32>
    %377 = arith.mulf %372, %376 : vector<2x32xf32>
    %378 = tpu.concatenate %257, %282 in 1 : vector<2x32xf32>, vector<2x32xf32> -> vector<2x64xf32>
    %c0_129 = arith.constant 0 : index
    %c0_130 = arith.constant 0 : index
    %c0_131 = arith.constant 0 : index
    %379 = vector.load %arg4[%c0_129, %c0_130, %c0_131] : memref<5x64x128xf32, #tpu.memory_space<vmem>>, vector<1x64x128xf32>
    %380 = vector.shape_cast %379 : vector<1x64x128xf32> to vector<64x128xf32>
    %cst_132 = arith.constant dense<0.000000e+00> : vector<2x128xf32>
    %381 = tpu.matmul %378, %380, %cst_132 {dimension_numbers = #tpu.dot_dimension_numbers<[1], [0], [0], [1], [0, 0, 1, 1], [], []>} : vector<2x64xf32>, vector<64x128xf32>, vector<2x128xf32> -> vector<2x128xf32>
    %c0_133 = arith.constant 0 : index
    %c0_134 = arith.constant 0 : index
    %c0_135 = arith.constant 0 : index
    %382 = vector.load %arg5[%c0_133, %c0_134, %c0_135] : memref<5x1x128xf32, #tpu.memory_space<vmem>>, vector<1x1x128xf32>
    %383 = vector.shape_cast %382 : vector<1x1x128xf32> to vector<1x128xf32>
    %384 = vector.broadcast %383 : vector<1x128xf32> to vector<2x128xf32>
    %385 = arith.addf %381, %384 : vector<2x128xf32>
    %cst_136 = arith.constant 5.000000e-01 : f32
    %386 = vector.broadcast %cst_136 : f32 to vector<2x128xf32>
    %387 = arith.mulf %386, %385 : vector<2x128xf32>
    %388 = math.tanh %387 : vector<2x128xf32>
    %cst_137 = arith.constant 1.000000e+00 : f32
    %389 = vector.broadcast %cst_137 : f32 to vector<2x128xf32>
    %390 = arith.addf %388, %389 : vector<2x128xf32>
    %cst_138 = arith.constant 5.000000e-01 : f32
    %391 = vector.broadcast %cst_138 : f32 to vector<2x128xf32>
    %392 = arith.mulf %391, %390 : vector<2x128xf32>
    %393 = vector.extract_strided_slice %385 {offsets = [0, 64], sizes = [2, 32], strides = [1, 1]} : vector<2x128xf32> to vector<2x32xf32>
    %394 = math.tanh %393 : vector<2x32xf32>
    %395 = vector.extract_strided_slice %392 {offsets = [0, 0], sizes = [2, 32], strides = [1, 1]} : vector<2x128xf32> to vector<2x32xf32>
    %396 = vector.extract_strided_slice %392 {offsets = [0, 32], sizes = [2, 32], strides = [1, 1]} : vector<2x128xf32> to vector<2x32xf32>
    %397 = vector.extract_strided_slice %392 {offsets = [0, 96], sizes = [2, 32], strides = [1, 1]} : vector<2x128xf32> to vector<2x32xf32>
    %398 = arith.mulf %396, %280 : vector<2x32xf32>
    %399 = arith.mulf %395, %394 : vector<2x32xf32>
    %400 = arith.addf %398, %399 : vector<2x32xf32>
    %401 = math.tanh %400 : vector<2x32xf32>
    %402 = arith.mulf %397, %401 : vector<2x32xf32>
    %403 = tpu.concatenate %282, %307 in 1 : vector<2x32xf32>, vector<2x32xf32> -> vector<2x64xf32>
    %c1_139 = arith.constant 1 : index
    %c0_140 = arith.constant 0 : index
    %c0_141 = arith.constant 0 : index
    %404 = vector.load %arg4[%c1_139, %c0_140, %c0_141] : memref<5x64x128xf32, #tpu.memory_space<vmem>>, vector<1x64x128xf32>
    %405 = vector.shape_cast %404 : vector<1x64x128xf32> to vector<64x128xf32>
    %cst_142 = arith.constant dense<0.000000e+00> : vector<2x128xf32>
    %406 = tpu.matmul %403, %405, %cst_142 {dimension_numbers = #tpu.dot_dimension_numbers<[1], [0], [0], [1], [0, 0, 1, 1], [], []>} : vector<2x64xf32>, vector<64x128xf32>, vector<2x128xf32> -> vector<2x128xf32>
    %c1_143 = arith.constant 1 : index
    %c0_144 = arith.constant 0 : index
    %c0_145 = arith.constant 0 : index
    %407 = vector.load %arg5[%c1_143, %c0_144, %c0_145] : memref<5x1x128xf32, #tpu.memory_space<vmem>>, vector<1x1x128xf32>
    %408 = vector.shape_cast %407 : vector<1x1x128xf32> to vector<1x128xf32>
    %409 = vector.broadcast %408 : vector<1x128xf32> to vector<2x128xf32>
    %410 = arith.addf %406, %409 : vector<2x128xf32>
    %cst_146 = arith.constant 5.000000e-01 : f32
    %411 = vector.broadcast %cst_146 : f32 to vector<2x128xf32>
    %412 = arith.mulf %411, %410 : vector<2x128xf32>
    %413 = math.tanh %412 : vector<2x128xf32>
    %cst_147 = arith.constant 1.000000e+00 : f32
    %414 = vector.broadcast %cst_147 : f32 to vector<2x128xf32>
    %415 = arith.addf %413, %414 : vector<2x128xf32>
    %cst_148 = arith.constant 5.000000e-01 : f32
    %416 = vector.broadcast %cst_148 : f32 to vector<2x128xf32>
    %417 = arith.mulf %416, %415 : vector<2x128xf32>
    %418 = vector.extract_strided_slice %410 {offsets = [0, 64], sizes = [2, 32], strides = [1, 1]} : vector<2x128xf32> to vector<2x32xf32>
    %419 = math.tanh %418 : vector<2x32xf32>
    %420 = vector.extract_strided_slice %417 {offsets = [0, 0], sizes = [2, 32], strides = [1, 1]} : vector<2x128xf32> to vector<2x32xf32>
    %421 = vector.extract_strided_slice %417 {offsets = [0, 32], sizes = [2, 32], strides = [1, 1]} : vector<2x128xf32> to vector<2x32xf32>
    %422 = vector.extract_strided_slice %417 {offsets = [0, 96], sizes = [2, 32], strides = [1, 1]} : vector<2x128xf32> to vector<2x32xf32>
    %423 = arith.mulf %421, %305 : vector<2x32xf32>
    %424 = arith.mulf %420, %419 : vector<2x32xf32>
    %425 = arith.addf %423, %424 : vector<2x32xf32>
    %426 = math.tanh %425 : vector<2x32xf32>
    %427 = arith.mulf %422, %426 : vector<2x32xf32>
    %428 = tpu.concatenate %307, %332 in 1 : vector<2x32xf32>, vector<2x32xf32> -> vector<2x64xf32>
    %c2_149 = arith.constant 2 : index
    %c0_150 = arith.constant 0 : index
    %c0_151 = arith.constant 0 : index
    %429 = vector.load %arg4[%c2_149, %c0_150, %c0_151] : memref<5x64x128xf32, #tpu.memory_space<vmem>>, vector<1x64x128xf32>
    %430 = vector.shape_cast %429 : vector<1x64x128xf32> to vector<64x128xf32>
    %cst_152 = arith.constant dense<0.000000e+00> : vector<2x128xf32>
    %431 = tpu.matmul %428, %430, %cst_152 {dimension_numbers = #tpu.dot_dimension_numbers<[1], [0], [0], [1], [0, 0, 1, 1], [], []>} : vector<2x64xf32>, vector<64x128xf32>, vector<2x128xf32> -> vector<2x128xf32>
    %c2_153 = arith.constant 2 : index
    %c0_154 = arith.constant 0 : index
    %c0_155 = arith.constant 0 : index
    %432 = vector.load %arg5[%c2_153, %c0_154, %c0_155] : memref<5x1x128xf32, #tpu.memory_space<vmem>>, vector<1x1x128xf32>
    %433 = vector.shape_cast %432 : vector<1x1x128xf32> to vector<1x128xf32>
    %434 = vector.broadcast %433 : vector<1x128xf32> to vector<2x128xf32>
    %435 = arith.addf %431, %434 : vector<2x128xf32>
    %cst_156 = arith.constant 5.000000e-01 : f32
    %436 = vector.broadcast %cst_156 : f32 to vector<2x128xf32>
    %437 = arith.mulf %436, %435 : vector<2x128xf32>
    %438 = math.tanh %437 : vector<2x128xf32>
    %cst_157 = arith.constant 1.000000e+00 : f32
    %439 = vector.broadcast %cst_157 : f32 to vector<2x128xf32>
    %440 = arith.addf %438, %439 : vector<2x128xf32>
    %cst_158 = arith.constant 5.000000e-01 : f32
    %441 = vector.broadcast %cst_158 : f32 to vector<2x128xf32>
    %442 = arith.mulf %441, %440 : vector<2x128xf32>
    %443 = vector.extract_strided_slice %435 {offsets = [0, 64], sizes = [2, 32], strides = [1, 1]} : vector<2x128xf32> to vector<2x32xf32>
    %444 = math.tanh %443 : vector<2x32xf32>
    %445 = vector.extract_strided_slice %442 {offsets = [0, 0], sizes = [2, 32], strides = [1, 1]} : vector<2x128xf32> to vector<2x32xf32>
    %446 = vector.extract_strided_slice %442 {offsets = [0, 32], sizes = [2, 32], strides = [1, 1]} : vector<2x128xf32> to vector<2x32xf32>
    %447 = vector.extract_strided_slice %442 {offsets = [0, 96], sizes = [2, 32], strides = [1, 1]} : vector<2x128xf32> to vector<2x32xf32>
    %448 = arith.mulf %446, %330 : vector<2x32xf32>
    %449 = arith.mulf %445, %444 : vector<2x32xf32>
    %450 = arith.addf %448, %449 : vector<2x32xf32>
    %451 = math.tanh %450 : vector<2x32xf32>
    %452 = arith.mulf %447, %451 : vector<2x32xf32>
    %453 = tpu.concatenate %332, %357 in 1 : vector<2x32xf32>, vector<2x32xf32> -> vector<2x64xf32>
    %c3_159 = arith.constant 3 : index
    %c0_160 = arith.constant 0 : index
    %c0_161 = arith.constant 0 : index
    %454 = vector.load %arg4[%c3_159, %c0_160, %c0_161] : memref<5x64x128xf32, #tpu.memory_space<vmem>>, vector<1x64x128xf32>
    %455 = vector.shape_cast %454 : vector<1x64x128xf32> to vector<64x128xf32>
    %cst_162 = arith.constant dense<0.000000e+00> : vector<2x128xf32>
    %456 = tpu.matmul %453, %455, %cst_162 {dimension_numbers = #tpu.dot_dimension_numbers<[1], [0], [0], [1], [0, 0, 1, 1], [], []>} : vector<2x64xf32>, vector<64x128xf32>, vector<2x128xf32> -> vector<2x128xf32>
    %c3_163 = arith.constant 3 : index
    %c0_164 = arith.constant 0 : index
    %c0_165 = arith.constant 0 : index
    %457 = vector.load %arg5[%c3_163, %c0_164, %c0_165] : memref<5x1x128xf32, #tpu.memory_space<vmem>>, vector<1x1x128xf32>
    %458 = vector.shape_cast %457 : vector<1x1x128xf32> to vector<1x128xf32>
    %459 = vector.broadcast %458 : vector<1x128xf32> to vector<2x128xf32>
    %460 = arith.addf %456, %459 : vector<2x128xf32>
    %cst_166 = arith.constant 5.000000e-01 : f32
    %461 = vector.broadcast %cst_166 : f32 to vector<2x128xf32>
    %462 = arith.mulf %461, %460 : vector<2x128xf32>
    %463 = math.tanh %462 : vector<2x128xf32>
    %cst_167 = arith.constant 1.000000e+00 : f32
    %464 = vector.broadcast %cst_167 : f32 to vector<2x128xf32>
    %465 = arith.addf %463, %464 : vector<2x128xf32>
    %cst_168 = arith.constant 5.000000e-01 : f32
    %466 = vector.broadcast %cst_168 : f32 to vector<2x128xf32>
    %467 = arith.mulf %466, %465 : vector<2x128xf32>
    %468 = vector.extract_strided_slice %460 {offsets = [0, 64], sizes = [2, 32], strides = [1, 1]} : vector<2x128xf32> to vector<2x32xf32>
    %469 = math.tanh %468 : vector<2x32xf32>
    %470 = vector.extract_strided_slice %467 {offsets = [0, 0], sizes = [2, 32], strides = [1, 1]} : vector<2x128xf32> to vector<2x32xf32>
    %471 = vector.extract_strided_slice %467 {offsets = [0, 32], sizes = [2, 32], strides = [1, 1]} : vector<2x128xf32> to vector<2x32xf32>
    %472 = vector.extract_strided_slice %467 {offsets = [0, 96], sizes = [2, 32], strides = [1, 1]} : vector<2x128xf32> to vector<2x32xf32>
    %473 = arith.mulf %471, %355 : vector<2x32xf32>
    %474 = arith.mulf %470, %469 : vector<2x32xf32>
    %475 = arith.addf %473, %474 : vector<2x32xf32>
    %476 = math.tanh %475 : vector<2x32xf32>
    %477 = arith.mulf %472, %476 : vector<2x32xf32>
    %478 = tpu.concatenate %357, %7 in 1 : vector<2x32xf32>, vector<2x32xf32> -> vector<2x64xf32>
    %c4 = arith.constant 4 : index
    %c0_169 = arith.constant 0 : index
    %c0_170 = arith.constant 0 : index
    %479 = vector.load %arg4[%c4, %c0_169, %c0_170] : memref<5x64x128xf32, #tpu.memory_space<vmem>>, vector<1x64x128xf32>
    %480 = vector.shape_cast %479 : vector<1x64x128xf32> to vector<64x128xf32>
    %cst_171 = arith.constant dense<0.000000e+00> : vector<2x128xf32>
    %481 = tpu.matmul %478, %480, %cst_171 {dimension_numbers = #tpu.dot_dimension_numbers<[1], [0], [0], [1], [0, 0, 1, 1], [], []>} : vector<2x64xf32>, vector<64x128xf32>, vector<2x128xf32> -> vector<2x128xf32>
    %c4_172 = arith.constant 4 : index
    %c0_173 = arith.constant 0 : index
    %c0_174 = arith.constant 0 : index
    %482 = vector.load %arg5[%c4_172, %c0_173, %c0_174] : memref<5x1x128xf32, #tpu.memory_space<vmem>>, vector<1x1x128xf32>
    %483 = vector.shape_cast %482 : vector<1x1x128xf32> to vector<1x128xf32>
    %484 = vector.broadcast %483 : vector<1x128xf32> to vector<2x128xf32>
    %485 = arith.addf %481, %484 : vector<2x128xf32>
    %cst_175 = arith.constant 5.000000e-01 : f32
    %486 = vector.broadcast %cst_175 : f32 to vector<2x128xf32>
    %487 = arith.mulf %486, %485 : vector<2x128xf32>
    %488 = math.tanh %487 : vector<2x128xf32>
    %cst_176 = arith.constant 1.000000e+00 : f32
    %489 = vector.broadcast %cst_176 : f32 to vector<2x128xf32>
    %490 = arith.addf %488, %489 : vector<2x128xf32>
    %cst_177 = arith.constant 5.000000e-01 : f32
    %491 = vector.broadcast %cst_177 : f32 to vector<2x128xf32>
    %492 = arith.mulf %491, %490 : vector<2x128xf32>
    %493 = vector.extract_strided_slice %485 {offsets = [0, 64], sizes = [2, 32], strides = [1, 1]} : vector<2x128xf32> to vector<2x32xf32>
    %494 = math.tanh %493 : vector<2x32xf32>
    %495 = vector.extract_strided_slice %492 {offsets = [0, 0], sizes = [2, 32], strides = [1, 1]} : vector<2x128xf32> to vector<2x32xf32>
    %496 = vector.extract_strided_slice %492 {offsets = [0, 32], sizes = [2, 32], strides = [1, 1]} : vector<2x128xf32> to vector<2x32xf32>
    %497 = vector.extract_strided_slice %492 {offsets = [0, 96], sizes = [2, 32], strides = [1, 1]} : vector<2x128xf32> to vector<2x32xf32>
    %498 = arith.mulf %496, %7 : vector<2x32xf32>
    %499 = arith.mulf %495, %494 : vector<2x32xf32>
    %500 = arith.addf %498, %499 : vector<2x32xf32>
    %501 = math.tanh %500 : vector<2x32xf32>
    %502 = arith.mulf %497, %501 : vector<2x32xf32>
    %503 = vector.extract_strided_slice %5 {offsets = [12, 0], sizes = [2, 128], strides = [1, 1]} : vector<16x128xf32> to vector<2x128xf32>
    %cst_178 = arith.constant dense<0.000000e+00> : vector<2x128xf32>
    %504 = tpu.matmul %377, %6, %cst_178 {dimension_numbers = #tpu.dot_dimension_numbers<[1], [0], [0], [1], [0, 0, 1, 1], [], []>} : vector<2x32xf32>, vector<32x128xf32>, vector<2x128xf32> -> vector<2x128xf32>
    %505 = arith.addf %503, %504 : vector<2x128xf32>
    %cst_179 = arith.constant 5.000000e-01 : f32
    %506 = vector.broadcast %cst_179 : f32 to vector<2x128xf32>
    %507 = arith.mulf %506, %505 : vector<2x128xf32>
    %508 = math.tanh %507 : vector<2x128xf32>
    %cst_180 = arith.constant 1.000000e+00 : f32
    %509 = vector.broadcast %cst_180 : f32 to vector<2x128xf32>
    %510 = arith.addf %508, %509 : vector<2x128xf32>
    %cst_181 = arith.constant 5.000000e-01 : f32
    %511 = vector.broadcast %cst_181 : f32 to vector<2x128xf32>
    %512 = arith.mulf %511, %510 : vector<2x128xf32>
    %513 = vector.extract_strided_slice %505 {offsets = [0, 64], sizes = [2, 32], strides = [1, 1]} : vector<2x128xf32> to vector<2x32xf32>
    %514 = math.tanh %513 : vector<2x32xf32>
    %515 = vector.extract_strided_slice %512 {offsets = [0, 0], sizes = [2, 32], strides = [1, 1]} : vector<2x128xf32> to vector<2x32xf32>
    %516 = vector.extract_strided_slice %512 {offsets = [0, 32], sizes = [2, 32], strides = [1, 1]} : vector<2x128xf32> to vector<2x32xf32>
    %517 = vector.extract_strided_slice %512 {offsets = [0, 96], sizes = [2, 32], strides = [1, 1]} : vector<2x128xf32> to vector<2x32xf32>
    %518 = arith.mulf %516, %375 : vector<2x32xf32>
    %519 = arith.mulf %515, %514 : vector<2x32xf32>
    %520 = arith.addf %518, %519 : vector<2x32xf32>
    %521 = math.tanh %520 : vector<2x32xf32>
    %522 = arith.mulf %517, %521 : vector<2x32xf32>
    %523 = tpu.concatenate %377, %402 in 1 : vector<2x32xf32>, vector<2x32xf32> -> vector<2x64xf32>
    %c0_182 = arith.constant 0 : index
    %c0_183 = arith.constant 0 : index
    %c0_184 = arith.constant 0 : index
    %524 = vector.load %arg4[%c0_182, %c0_183, %c0_184] : memref<5x64x128xf32, #tpu.memory_space<vmem>>, vector<1x64x128xf32>
    %525 = vector.shape_cast %524 : vector<1x64x128xf32> to vector<64x128xf32>
    %cst_185 = arith.constant dense<0.000000e+00> : vector<2x128xf32>
    %526 = tpu.matmul %523, %525, %cst_185 {dimension_numbers = #tpu.dot_dimension_numbers<[1], [0], [0], [1], [0, 0, 1, 1], [], []>} : vector<2x64xf32>, vector<64x128xf32>, vector<2x128xf32> -> vector<2x128xf32>
    %c0_186 = arith.constant 0 : index
    %c0_187 = arith.constant 0 : index
    %c0_188 = arith.constant 0 : index
    %527 = vector.load %arg5[%c0_186, %c0_187, %c0_188] : memref<5x1x128xf32, #tpu.memory_space<vmem>>, vector<1x1x128xf32>
    %528 = vector.shape_cast %527 : vector<1x1x128xf32> to vector<1x128xf32>
    %529 = vector.broadcast %528 : vector<1x128xf32> to vector<2x128xf32>
    %530 = arith.addf %526, %529 : vector<2x128xf32>
    %cst_189 = arith.constant 5.000000e-01 : f32
    %531 = vector.broadcast %cst_189 : f32 to vector<2x128xf32>
    %532 = arith.mulf %531, %530 : vector<2x128xf32>
    %533 = math.tanh %532 : vector<2x128xf32>
    %cst_190 = arith.constant 1.000000e+00 : f32
    %534 = vector.broadcast %cst_190 : f32 to vector<2x128xf32>
    %535 = arith.addf %533, %534 : vector<2x128xf32>
    %cst_191 = arith.constant 5.000000e-01 : f32
    %536 = vector.broadcast %cst_191 : f32 to vector<2x128xf32>
    %537 = arith.mulf %536, %535 : vector<2x128xf32>
    %538 = vector.extract_strided_slice %530 {offsets = [0, 64], sizes = [2, 32], strides = [1, 1]} : vector<2x128xf32> to vector<2x32xf32>
    %539 = math.tanh %538 : vector<2x32xf32>
    %540 = vector.extract_strided_slice %537 {offsets = [0, 0], sizes = [2, 32], strides = [1, 1]} : vector<2x128xf32> to vector<2x32xf32>
    %541 = vector.extract_strided_slice %537 {offsets = [0, 32], sizes = [2, 32], strides = [1, 1]} : vector<2x128xf32> to vector<2x32xf32>
    %542 = vector.extract_strided_slice %537 {offsets = [0, 96], sizes = [2, 32], strides = [1, 1]} : vector<2x128xf32> to vector<2x32xf32>
    %543 = arith.mulf %541, %400 : vector<2x32xf32>
    %544 = arith.mulf %540, %539 : vector<2x32xf32>
    %545 = arith.addf %543, %544 : vector<2x32xf32>
    %546 = math.tanh %545 : vector<2x32xf32>
    %547 = arith.mulf %542, %546 : vector<2x32xf32>
    %548 = tpu.concatenate %402, %427 in 1 : vector<2x32xf32>, vector<2x32xf32> -> vector<2x64xf32>
    %c1_192 = arith.constant 1 : index
    %c0_193 = arith.constant 0 : index
    %c0_194 = arith.constant 0 : index
    %549 = vector.load %arg4[%c1_192, %c0_193, %c0_194] : memref<5x64x128xf32, #tpu.memory_space<vmem>>, vector<1x64x128xf32>
    %550 = vector.shape_cast %549 : vector<1x64x128xf32> to vector<64x128xf32>
    %cst_195 = arith.constant dense<0.000000e+00> : vector<2x128xf32>
    %551 = tpu.matmul %548, %550, %cst_195 {dimension_numbers = #tpu.dot_dimension_numbers<[1], [0], [0], [1], [0, 0, 1, 1], [], []>} : vector<2x64xf32>, vector<64x128xf32>, vector<2x128xf32> -> vector<2x128xf32>
    %c1_196 = arith.constant 1 : index
    %c0_197 = arith.constant 0 : index
    %c0_198 = arith.constant 0 : index
    %552 = vector.load %arg5[%c1_196, %c0_197, %c0_198] : memref<5x1x128xf32, #tpu.memory_space<vmem>>, vector<1x1x128xf32>
    %553 = vector.shape_cast %552 : vector<1x1x128xf32> to vector<1x128xf32>
    %554 = vector.broadcast %553 : vector<1x128xf32> to vector<2x128xf32>
    %555 = arith.addf %551, %554 : vector<2x128xf32>
    %cst_199 = arith.constant 5.000000e-01 : f32
    %556 = vector.broadcast %cst_199 : f32 to vector<2x128xf32>
    %557 = arith.mulf %556, %555 : vector<2x128xf32>
    %558 = math.tanh %557 : vector<2x128xf32>
    %cst_200 = arith.constant 1.000000e+00 : f32
    %559 = vector.broadcast %cst_200 : f32 to vector<2x128xf32>
    %560 = arith.addf %558, %559 : vector<2x128xf32>
    %cst_201 = arith.constant 5.000000e-01 : f32
    %561 = vector.broadcast %cst_201 : f32 to vector<2x128xf32>
    %562 = arith.mulf %561, %560 : vector<2x128xf32>
    %563 = vector.extract_strided_slice %555 {offsets = [0, 64], sizes = [2, 32], strides = [1, 1]} : vector<2x128xf32> to vector<2x32xf32>
    %564 = math.tanh %563 : vector<2x32xf32>
    %565 = vector.extract_strided_slice %562 {offsets = [0, 0], sizes = [2, 32], strides = [1, 1]} : vector<2x128xf32> to vector<2x32xf32>
    %566 = vector.extract_strided_slice %562 {offsets = [0, 32], sizes = [2, 32], strides = [1, 1]} : vector<2x128xf32> to vector<2x32xf32>
    %567 = vector.extract_strided_slice %562 {offsets = [0, 96], sizes = [2, 32], strides = [1, 1]} : vector<2x128xf32> to vector<2x32xf32>
    %568 = arith.mulf %566, %425 : vector<2x32xf32>
    %569 = arith.mulf %565, %564 : vector<2x32xf32>
    %570 = arith.addf %568, %569 : vector<2x32xf32>
    %571 = math.tanh %570 : vector<2x32xf32>
    %572 = arith.mulf %567, %571 : vector<2x32xf32>
    %573 = tpu.concatenate %427, %452 in 1 : vector<2x32xf32>, vector<2x32xf32> -> vector<2x64xf32>
    %c2_202 = arith.constant 2 : index
    %c0_203 = arith.constant 0 : index
    %c0_204 = arith.constant 0 : index
    %574 = vector.load %arg4[%c2_202, %c0_203, %c0_204] : memref<5x64x128xf32, #tpu.memory_space<vmem>>, vector<1x64x128xf32>
    %575 = vector.shape_cast %574 : vector<1x64x128xf32> to vector<64x128xf32>
    %cst_205 = arith.constant dense<0.000000e+00> : vector<2x128xf32>
    %576 = tpu.matmul %573, %575, %cst_205 {dimension_numbers = #tpu.dot_dimension_numbers<[1], [0], [0], [1], [0, 0, 1, 1], [], []>} : vector<2x64xf32>, vector<64x128xf32>, vector<2x128xf32> -> vector<2x128xf32>
    %c2_206 = arith.constant 2 : index
    %c0_207 = arith.constant 0 : index
    %c0_208 = arith.constant 0 : index
    %577 = vector.load %arg5[%c2_206, %c0_207, %c0_208] : memref<5x1x128xf32, #tpu.memory_space<vmem>>, vector<1x1x128xf32>
    %578 = vector.shape_cast %577 : vector<1x1x128xf32> to vector<1x128xf32>
    %579 = vector.broadcast %578 : vector<1x128xf32> to vector<2x128xf32>
    %580 = arith.addf %576, %579 : vector<2x128xf32>
    %cst_209 = arith.constant 5.000000e-01 : f32
    %581 = vector.broadcast %cst_209 : f32 to vector<2x128xf32>
    %582 = arith.mulf %581, %580 : vector<2x128xf32>
    %583 = math.tanh %582 : vector<2x128xf32>
    %cst_210 = arith.constant 1.000000e+00 : f32
    %584 = vector.broadcast %cst_210 : f32 to vector<2x128xf32>
    %585 = arith.addf %583, %584 : vector<2x128xf32>
    %cst_211 = arith.constant 5.000000e-01 : f32
    %586 = vector.broadcast %cst_211 : f32 to vector<2x128xf32>
    %587 = arith.mulf %586, %585 : vector<2x128xf32>
    %588 = vector.extract_strided_slice %580 {offsets = [0, 64], sizes = [2, 32], strides = [1, 1]} : vector<2x128xf32> to vector<2x32xf32>
    %589 = math.tanh %588 : vector<2x32xf32>
    %590 = vector.extract_strided_slice %587 {offsets = [0, 0], sizes = [2, 32], strides = [1, 1]} : vector<2x128xf32> to vector<2x32xf32>
    %591 = vector.extract_strided_slice %587 {offsets = [0, 32], sizes = [2, 32], strides = [1, 1]} : vector<2x128xf32> to vector<2x32xf32>
    %592 = vector.extract_strided_slice %587 {offsets = [0, 96], sizes = [2, 32], strides = [1, 1]} : vector<2x128xf32> to vector<2x32xf32>
    %593 = arith.mulf %591, %450 : vector<2x32xf32>
    %594 = arith.mulf %590, %589 : vector<2x32xf32>
    %595 = arith.addf %593, %594 : vector<2x32xf32>
    %596 = math.tanh %595 : vector<2x32xf32>
    %597 = arith.mulf %592, %596 : vector<2x32xf32>
    %598 = tpu.concatenate %452, %477 in 1 : vector<2x32xf32>, vector<2x32xf32> -> vector<2x64xf32>
    %c3_212 = arith.constant 3 : index
    %c0_213 = arith.constant 0 : index
    %c0_214 = arith.constant 0 : index
    %599 = vector.load %arg4[%c3_212, %c0_213, %c0_214] : memref<5x64x128xf32, #tpu.memory_space<vmem>>, vector<1x64x128xf32>
    %600 = vector.shape_cast %599 : vector<1x64x128xf32> to vector<64x128xf32>
    %cst_215 = arith.constant dense<0.000000e+00> : vector<2x128xf32>
    %601 = tpu.matmul %598, %600, %cst_215 {dimension_numbers = #tpu.dot_dimension_numbers<[1], [0], [0], [1], [0, 0, 1, 1], [], []>} : vector<2x64xf32>, vector<64x128xf32>, vector<2x128xf32> -> vector<2x128xf32>
    %c3_216 = arith.constant 3 : index
    %c0_217 = arith.constant 0 : index
    %c0_218 = arith.constant 0 : index
    %602 = vector.load %arg5[%c3_216, %c0_217, %c0_218] : memref<5x1x128xf32, #tpu.memory_space<vmem>>, vector<1x1x128xf32>
    %603 = vector.shape_cast %602 : vector<1x1x128xf32> to vector<1x128xf32>
    %604 = vector.broadcast %603 : vector<1x128xf32> to vector<2x128xf32>
    %605 = arith.addf %601, %604 : vector<2x128xf32>
    %cst_219 = arith.constant 5.000000e-01 : f32
    %606 = vector.broadcast %cst_219 : f32 to vector<2x128xf32>
    %607 = arith.mulf %606, %605 : vector<2x128xf32>
    %608 = math.tanh %607 : vector<2x128xf32>
    %cst_220 = arith.constant 1.000000e+00 : f32
    %609 = vector.broadcast %cst_220 : f32 to vector<2x128xf32>
    %610 = arith.addf %608, %609 : vector<2x128xf32>
    %cst_221 = arith.constant 5.000000e-01 : f32
    %611 = vector.broadcast %cst_221 : f32 to vector<2x128xf32>
    %612 = arith.mulf %611, %610 : vector<2x128xf32>
    %613 = vector.extract_strided_slice %605 {offsets = [0, 64], sizes = [2, 32], strides = [1, 1]} : vector<2x128xf32> to vector<2x32xf32>
    %614 = math.tanh %613 : vector<2x32xf32>
    %615 = vector.extract_strided_slice %612 {offsets = [0, 0], sizes = [2, 32], strides = [1, 1]} : vector<2x128xf32> to vector<2x32xf32>
    %616 = vector.extract_strided_slice %612 {offsets = [0, 32], sizes = [2, 32], strides = [1, 1]} : vector<2x128xf32> to vector<2x32xf32>
    %617 = vector.extract_strided_slice %612 {offsets = [0, 96], sizes = [2, 32], strides = [1, 1]} : vector<2x128xf32> to vector<2x32xf32>
    %618 = arith.mulf %616, %475 : vector<2x32xf32>
    %619 = arith.mulf %615, %614 : vector<2x32xf32>
    %620 = arith.addf %618, %619 : vector<2x32xf32>
    %621 = math.tanh %620 : vector<2x32xf32>
    %622 = arith.mulf %617, %621 : vector<2x32xf32>
    %623 = tpu.concatenate %477, %502 in 1 : vector<2x32xf32>, vector<2x32xf32> -> vector<2x64xf32>
    %c4_222 = arith.constant 4 : index
    %c0_223 = arith.constant 0 : index
    %c0_224 = arith.constant 0 : index
    %624 = vector.load %arg4[%c4_222, %c0_223, %c0_224] : memref<5x64x128xf32, #tpu.memory_space<vmem>>, vector<1x64x128xf32>
    %625 = vector.shape_cast %624 : vector<1x64x128xf32> to vector<64x128xf32>
    %cst_225 = arith.constant dense<0.000000e+00> : vector<2x128xf32>
    %626 = tpu.matmul %623, %625, %cst_225 {dimension_numbers = #tpu.dot_dimension_numbers<[1], [0], [0], [1], [0, 0, 1, 1], [], []>} : vector<2x64xf32>, vector<64x128xf32>, vector<2x128xf32> -> vector<2x128xf32>
    %c4_226 = arith.constant 4 : index
    %c0_227 = arith.constant 0 : index
    %c0_228 = arith.constant 0 : index
    %627 = vector.load %arg5[%c4_226, %c0_227, %c0_228] : memref<5x1x128xf32, #tpu.memory_space<vmem>>, vector<1x1x128xf32>
    %628 = vector.shape_cast %627 : vector<1x1x128xf32> to vector<1x128xf32>
    %629 = vector.broadcast %628 : vector<1x128xf32> to vector<2x128xf32>
    %630 = arith.addf %626, %629 : vector<2x128xf32>
    %cst_229 = arith.constant 5.000000e-01 : f32
    %631 = vector.broadcast %cst_229 : f32 to vector<2x128xf32>
    %632 = arith.mulf %631, %630 : vector<2x128xf32>
    %633 = math.tanh %632 : vector<2x128xf32>
    %cst_230 = arith.constant 1.000000e+00 : f32
    %634 = vector.broadcast %cst_230 : f32 to vector<2x128xf32>
    %635 = arith.addf %633, %634 : vector<2x128xf32>
    %cst_231 = arith.constant 5.000000e-01 : f32
    %636 = vector.broadcast %cst_231 : f32 to vector<2x128xf32>
    %637 = arith.mulf %636, %635 : vector<2x128xf32>
    %638 = vector.extract_strided_slice %630 {offsets = [0, 64], sizes = [2, 32], strides = [1, 1]} : vector<2x128xf32> to vector<2x32xf32>
    %639 = math.tanh %638 : vector<2x32xf32>
    %640 = vector.extract_strided_slice %637 {offsets = [0, 0], sizes = [2, 32], strides = [1, 1]} : vector<2x128xf32> to vector<2x32xf32>
    %641 = vector.extract_strided_slice %637 {offsets = [0, 32], sizes = [2, 32], strides = [1, 1]} : vector<2x128xf32> to vector<2x32xf32>
    %642 = vector.extract_strided_slice %637 {offsets = [0, 96], sizes = [2, 32], strides = [1, 1]} : vector<2x128xf32> to vector<2x32xf32>
    %643 = arith.mulf %641, %500 : vector<2x32xf32>
    %644 = arith.mulf %640, %639 : vector<2x32xf32>
    %645 = arith.addf %643, %644 : vector<2x32xf32>
    %646 = math.tanh %645 : vector<2x32xf32>
    %647 = arith.mulf %642, %646 : vector<2x32xf32>
    %648 = vector.extract_strided_slice %5 {offsets = [14, 0], sizes = [2, 128], strides = [1, 1]} : vector<16x128xf32> to vector<2x128xf32>
    %cst_232 = arith.constant dense<0.000000e+00> : vector<2x128xf32>
    %649 = tpu.matmul %522, %6, %cst_232 {dimension_numbers = #tpu.dot_dimension_numbers<[1], [0], [0], [1], [0, 0, 1, 1], [], []>} : vector<2x32xf32>, vector<32x128xf32>, vector<2x128xf32> -> vector<2x128xf32>
    %650 = arith.addf %648, %649 : vector<2x128xf32>
    %cst_233 = arith.constant 5.000000e-01 : f32
    %651 = vector.broadcast %cst_233 : f32 to vector<2x128xf32>
    %652 = arith.mulf %651, %650 : vector<2x128xf32>
    %653 = math.tanh %652 : vector<2x128xf32>
    %cst_234 = arith.constant 1.000000e+00 : f32
    %654 = vector.broadcast %cst_234 : f32 to vector<2x128xf32>
    %655 = arith.addf %653, %654 : vector<2x128xf32>
    %cst_235 = arith.constant 5.000000e-01 : f32
    %656 = vector.broadcast %cst_235 : f32 to vector<2x128xf32>
    %657 = arith.mulf %656, %655 : vector<2x128xf32>
    %658 = vector.extract_strided_slice %650 {offsets = [0, 64], sizes = [2, 32], strides = [1, 1]} : vector<2x128xf32> to vector<2x32xf32>
    %659 = math.tanh %658 : vector<2x32xf32>
    %660 = vector.extract_strided_slice %657 {offsets = [0, 0], sizes = [2, 32], strides = [1, 1]} : vector<2x128xf32> to vector<2x32xf32>
    %661 = vector.extract_strided_slice %657 {offsets = [0, 32], sizes = [2, 32], strides = [1, 1]} : vector<2x128xf32> to vector<2x32xf32>
    %662 = vector.extract_strided_slice %657 {offsets = [0, 96], sizes = [2, 32], strides = [1, 1]} : vector<2x128xf32> to vector<2x32xf32>
    %663 = arith.mulf %661, %520 : vector<2x32xf32>
    %664 = arith.mulf %660, %659 : vector<2x32xf32>
    %665 = arith.addf %663, %664 : vector<2x32xf32>
    %666 = math.tanh %665 : vector<2x32xf32>
    %667 = arith.mulf %662, %666 : vector<2x32xf32>
    %668 = tpu.concatenate %522, %547 in 1 : vector<2x32xf32>, vector<2x32xf32> -> vector<2x64xf32>
    %c0_236 = arith.constant 0 : index
    %c0_237 = arith.constant 0 : index
    %c0_238 = arith.constant 0 : index
    %669 = vector.load %arg4[%c0_236, %c0_237, %c0_238] : memref<5x64x128xf32, #tpu.memory_space<vmem>>, vector<1x64x128xf32>
    %670 = vector.shape_cast %669 : vector<1x64x128xf32> to vector<64x128xf32>
    %cst_239 = arith.constant dense<0.000000e+00> : vector<2x128xf32>
    %671 = tpu.matmul %668, %670, %cst_239 {dimension_numbers = #tpu.dot_dimension_numbers<[1], [0], [0], [1], [0, 0, 1, 1], [], []>} : vector<2x64xf32>, vector<64x128xf32>, vector<2x128xf32> -> vector<2x128xf32>
    %c0_240 = arith.constant 0 : index
    %c0_241 = arith.constant 0 : index
    %c0_242 = arith.constant 0 : index
    %672 = vector.load %arg5[%c0_240, %c0_241, %c0_242] : memref<5x1x128xf32, #tpu.memory_space<vmem>>, vector<1x1x128xf32>
    %673 = vector.shape_cast %672 : vector<1x1x128xf32> to vector<1x128xf32>
    %674 = vector.broadcast %673 : vector<1x128xf32> to vector<2x128xf32>
    %675 = arith.addf %671, %674 : vector<2x128xf32>
    %cst_243 = arith.constant 5.000000e-01 : f32
    %676 = vector.broadcast %cst_243 : f32 to vector<2x128xf32>
    %677 = arith.mulf %676, %675 : vector<2x128xf32>
    %678 = math.tanh %677 : vector<2x128xf32>
    %cst_244 = arith.constant 1.000000e+00 : f32
    %679 = vector.broadcast %cst_244 : f32 to vector<2x128xf32>
    %680 = arith.addf %678, %679 : vector<2x128xf32>
    %cst_245 = arith.constant 5.000000e-01 : f32
    %681 = vector.broadcast %cst_245 : f32 to vector<2x128xf32>
    %682 = arith.mulf %681, %680 : vector<2x128xf32>
    %683 = vector.extract_strided_slice %675 {offsets = [0, 64], sizes = [2, 32], strides = [1, 1]} : vector<2x128xf32> to vector<2x32xf32>
    %684 = math.tanh %683 : vector<2x32xf32>
    %685 = vector.extract_strided_slice %682 {offsets = [0, 0], sizes = [2, 32], strides = [1, 1]} : vector<2x128xf32> to vector<2x32xf32>
    %686 = vector.extract_strided_slice %682 {offsets = [0, 32], sizes = [2, 32], strides = [1, 1]} : vector<2x128xf32> to vector<2x32xf32>
    %687 = vector.extract_strided_slice %682 {offsets = [0, 96], sizes = [2, 32], strides = [1, 1]} : vector<2x128xf32> to vector<2x32xf32>
    %688 = arith.mulf %686, %545 : vector<2x32xf32>
    %689 = arith.mulf %685, %684 : vector<2x32xf32>
    %690 = arith.addf %688, %689 : vector<2x32xf32>
    %691 = math.tanh %690 : vector<2x32xf32>
    %692 = arith.mulf %687, %691 : vector<2x32xf32>
    %693 = tpu.concatenate %547, %572 in 1 : vector<2x32xf32>, vector<2x32xf32> -> vector<2x64xf32>
    %c1_246 = arith.constant 1 : index
    %c0_247 = arith.constant 0 : index
    %c0_248 = arith.constant 0 : index
    %694 = vector.load %arg4[%c1_246, %c0_247, %c0_248] : memref<5x64x128xf32, #tpu.memory_space<vmem>>, vector<1x64x128xf32>
    %695 = vector.shape_cast %694 : vector<1x64x128xf32> to vector<64x128xf32>
    %cst_249 = arith.constant dense<0.000000e+00> : vector<2x128xf32>
    %696 = tpu.matmul %693, %695, %cst_249 {dimension_numbers = #tpu.dot_dimension_numbers<[1], [0], [0], [1], [0, 0, 1, 1], [], []>} : vector<2x64xf32>, vector<64x128xf32>, vector<2x128xf32> -> vector<2x128xf32>
    %c1_250 = arith.constant 1 : index
    %c0_251 = arith.constant 0 : index
    %c0_252 = arith.constant 0 : index
    %697 = vector.load %arg5[%c1_250, %c0_251, %c0_252] : memref<5x1x128xf32, #tpu.memory_space<vmem>>, vector<1x1x128xf32>
    %698 = vector.shape_cast %697 : vector<1x1x128xf32> to vector<1x128xf32>
    %699 = vector.broadcast %698 : vector<1x128xf32> to vector<2x128xf32>
    %700 = arith.addf %696, %699 : vector<2x128xf32>
    %cst_253 = arith.constant 5.000000e-01 : f32
    %701 = vector.broadcast %cst_253 : f32 to vector<2x128xf32>
    %702 = arith.mulf %701, %700 : vector<2x128xf32>
    %703 = math.tanh %702 : vector<2x128xf32>
    %cst_254 = arith.constant 1.000000e+00 : f32
    %704 = vector.broadcast %cst_254 : f32 to vector<2x128xf32>
    %705 = arith.addf %703, %704 : vector<2x128xf32>
    %cst_255 = arith.constant 5.000000e-01 : f32
    %706 = vector.broadcast %cst_255 : f32 to vector<2x128xf32>
    %707 = arith.mulf %706, %705 : vector<2x128xf32>
    %708 = vector.extract_strided_slice %700 {offsets = [0, 64], sizes = [2, 32], strides = [1, 1]} : vector<2x128xf32> to vector<2x32xf32>
    %709 = math.tanh %708 : vector<2x32xf32>
    %710 = vector.extract_strided_slice %707 {offsets = [0, 0], sizes = [2, 32], strides = [1, 1]} : vector<2x128xf32> to vector<2x32xf32>
    %711 = vector.extract_strided_slice %707 {offsets = [0, 32], sizes = [2, 32], strides = [1, 1]} : vector<2x128xf32> to vector<2x32xf32>
    %712 = vector.extract_strided_slice %707 {offsets = [0, 96], sizes = [2, 32], strides = [1, 1]} : vector<2x128xf32> to vector<2x32xf32>
    %713 = arith.mulf %711, %570 : vector<2x32xf32>
    %714 = arith.mulf %710, %709 : vector<2x32xf32>
    %715 = arith.addf %713, %714 : vector<2x32xf32>
    %716 = math.tanh %715 : vector<2x32xf32>
    %717 = arith.mulf %712, %716 : vector<2x32xf32>
    %718 = tpu.concatenate %572, %597 in 1 : vector<2x32xf32>, vector<2x32xf32> -> vector<2x64xf32>
    %c2_256 = arith.constant 2 : index
    %c0_257 = arith.constant 0 : index
    %c0_258 = arith.constant 0 : index
    %719 = vector.load %arg4[%c2_256, %c0_257, %c0_258] : memref<5x64x128xf32, #tpu.memory_space<vmem>>, vector<1x64x128xf32>
    %720 = vector.shape_cast %719 : vector<1x64x128xf32> to vector<64x128xf32>
    %cst_259 = arith.constant dense<0.000000e+00> : vector<2x128xf32>
    %721 = tpu.matmul %718, %720, %cst_259 {dimension_numbers = #tpu.dot_dimension_numbers<[1], [0], [0], [1], [0, 0, 1, 1], [], []>} : vector<2x64xf32>, vector<64x128xf32>, vector<2x128xf32> -> vector<2x128xf32>
    %c2_260 = arith.constant 2 : index
    %c0_261 = arith.constant 0 : index
    %c0_262 = arith.constant 0 : index
    %722 = vector.load %arg5[%c2_260, %c0_261, %c0_262] : memref<5x1x128xf32, #tpu.memory_space<vmem>>, vector<1x1x128xf32>
    %723 = vector.shape_cast %722 : vector<1x1x128xf32> to vector<1x128xf32>
    %724 = vector.broadcast %723 : vector<1x128xf32> to vector<2x128xf32>
    %725 = arith.addf %721, %724 : vector<2x128xf32>
    %cst_263 = arith.constant 5.000000e-01 : f32
    %726 = vector.broadcast %cst_263 : f32 to vector<2x128xf32>
    %727 = arith.mulf %726, %725 : vector<2x128xf32>
    %728 = math.tanh %727 : vector<2x128xf32>
    %cst_264 = arith.constant 1.000000e+00 : f32
    %729 = vector.broadcast %cst_264 : f32 to vector<2x128xf32>
    %730 = arith.addf %728, %729 : vector<2x128xf32>
    %cst_265 = arith.constant 5.000000e-01 : f32
    %731 = vector.broadcast %cst_265 : f32 to vector<2x128xf32>
    %732 = arith.mulf %731, %730 : vector<2x128xf32>
    %733 = vector.extract_strided_slice %725 {offsets = [0, 64], sizes = [2, 32], strides = [1, 1]} : vector<2x128xf32> to vector<2x32xf32>
    %734 = math.tanh %733 : vector<2x32xf32>
    %735 = vector.extract_strided_slice %732 {offsets = [0, 0], sizes = [2, 32], strides = [1, 1]} : vector<2x128xf32> to vector<2x32xf32>
    %736 = vector.extract_strided_slice %732 {offsets = [0, 32], sizes = [2, 32], strides = [1, 1]} : vector<2x128xf32> to vector<2x32xf32>
    %737 = vector.extract_strided_slice %732 {offsets = [0, 96], sizes = [2, 32], strides = [1, 1]} : vector<2x128xf32> to vector<2x32xf32>
    %738 = arith.mulf %736, %595 : vector<2x32xf32>
    %739 = arith.mulf %735, %734 : vector<2x32xf32>
    %740 = arith.addf %738, %739 : vector<2x32xf32>
    %741 = math.tanh %740 : vector<2x32xf32>
    %742 = arith.mulf %737, %741 : vector<2x32xf32>
    %743 = tpu.concatenate %597, %622 in 1 : vector<2x32xf32>, vector<2x32xf32> -> vector<2x64xf32>
    %c3_266 = arith.constant 3 : index
    %c0_267 = arith.constant 0 : index
    %c0_268 = arith.constant 0 : index
    %744 = vector.load %arg4[%c3_266, %c0_267, %c0_268] : memref<5x64x128xf32, #tpu.memory_space<vmem>>, vector<1x64x128xf32>
    %745 = vector.shape_cast %744 : vector<1x64x128xf32> to vector<64x128xf32>
    %cst_269 = arith.constant dense<0.000000e+00> : vector<2x128xf32>
    %746 = tpu.matmul %743, %745, %cst_269 {dimension_numbers = #tpu.dot_dimension_numbers<[1], [0], [0], [1], [0, 0, 1, 1], [], []>} : vector<2x64xf32>, vector<64x128xf32>, vector<2x128xf32> -> vector<2x128xf32>
    %c3_270 = arith.constant 3 : index
    %c0_271 = arith.constant 0 : index
    %c0_272 = arith.constant 0 : index
    %747 = vector.load %arg5[%c3_270, %c0_271, %c0_272] : memref<5x1x128xf32, #tpu.memory_space<vmem>>, vector<1x1x128xf32>
    %748 = vector.shape_cast %747 : vector<1x1x128xf32> to vector<1x128xf32>
    %749 = vector.broadcast %748 : vector<1x128xf32> to vector<2x128xf32>
    %750 = arith.addf %746, %749 : vector<2x128xf32>
    %cst_273 = arith.constant 5.000000e-01 : f32
    %751 = vector.broadcast %cst_273 : f32 to vector<2x128xf32>
    %752 = arith.mulf %751, %750 : vector<2x128xf32>
    %753 = math.tanh %752 : vector<2x128xf32>
    %cst_274 = arith.constant 1.000000e+00 : f32
    %754 = vector.broadcast %cst_274 : f32 to vector<2x128xf32>
    %755 = arith.addf %753, %754 : vector<2x128xf32>
    %cst_275 = arith.constant 5.000000e-01 : f32
    %756 = vector.broadcast %cst_275 : f32 to vector<2x128xf32>
    %757 = arith.mulf %756, %755 : vector<2x128xf32>
    %758 = vector.extract_strided_slice %750 {offsets = [0, 64], sizes = [2, 32], strides = [1, 1]} : vector<2x128xf32> to vector<2x32xf32>
    %759 = math.tanh %758 : vector<2x32xf32>
    %760 = vector.extract_strided_slice %757 {offsets = [0, 0], sizes = [2, 32], strides = [1, 1]} : vector<2x128xf32> to vector<2x32xf32>
    %761 = vector.extract_strided_slice %757 {offsets = [0, 32], sizes = [2, 32], strides = [1, 1]} : vector<2x128xf32> to vector<2x32xf32>
    %762 = vector.extract_strided_slice %757 {offsets = [0, 96], sizes = [2, 32], strides = [1, 1]} : vector<2x128xf32> to vector<2x32xf32>
    %763 = arith.mulf %761, %620 : vector<2x32xf32>
    %764 = arith.mulf %760, %759 : vector<2x32xf32>
    %765 = arith.addf %763, %764 : vector<2x32xf32>
    %766 = math.tanh %765 : vector<2x32xf32>
    %767 = arith.mulf %762, %766 : vector<2x32xf32>
    %768 = tpu.concatenate %622, %647 in 1 : vector<2x32xf32>, vector<2x32xf32> -> vector<2x64xf32>
    %c4_276 = arith.constant 4 : index
    %c0_277 = arith.constant 0 : index
    %c0_278 = arith.constant 0 : index
    %769 = vector.load %arg4[%c4_276, %c0_277, %c0_278] : memref<5x64x128xf32, #tpu.memory_space<vmem>>, vector<1x64x128xf32>
    %770 = vector.shape_cast %769 : vector<1x64x128xf32> to vector<64x128xf32>
    %cst_279 = arith.constant dense<0.000000e+00> : vector<2x128xf32>
    %771 = tpu.matmul %768, %770, %cst_279 {dimension_numbers = #tpu.dot_dimension_numbers<[1], [0], [0], [1], [0, 0, 1, 1], [], []>} : vector<2x64xf32>, vector<64x128xf32>, vector<2x128xf32> -> vector<2x128xf32>
    %c4_280 = arith.constant 4 : index
    %c0_281 = arith.constant 0 : index
    %c0_282 = arith.constant 0 : index
    %772 = vector.load %arg5[%c4_280, %c0_281, %c0_282] : memref<5x1x128xf32, #tpu.memory_space<vmem>>, vector<1x1x128xf32>
    %773 = vector.shape_cast %772 : vector<1x1x128xf32> to vector<1x128xf32>
    %774 = vector.broadcast %773 : vector<1x128xf32> to vector<2x128xf32>
    %775 = arith.addf %771, %774 : vector<2x128xf32>
    %cst_283 = arith.constant 5.000000e-01 : f32
    %776 = vector.broadcast %cst_283 : f32 to vector<2x128xf32>
    %777 = arith.mulf %776, %775 : vector<2x128xf32>
    %778 = math.tanh %777 : vector<2x128xf32>
    %cst_284 = arith.constant 1.000000e+00 : f32
    %779 = vector.broadcast %cst_284 : f32 to vector<2x128xf32>
    %780 = arith.addf %778, %779 : vector<2x128xf32>
    %cst_285 = arith.constant 5.000000e-01 : f32
    %781 = vector.broadcast %cst_285 : f32 to vector<2x128xf32>
    %782 = arith.mulf %781, %780 : vector<2x128xf32>
    %783 = vector.extract_strided_slice %775 {offsets = [0, 64], sizes = [2, 32], strides = [1, 1]} : vector<2x128xf32> to vector<2x32xf32>
    %784 = math.tanh %783 : vector<2x32xf32>
    %785 = vector.extract_strided_slice %782 {offsets = [0, 0], sizes = [2, 32], strides = [1, 1]} : vector<2x128xf32> to vector<2x32xf32>
    %786 = vector.extract_strided_slice %782 {offsets = [0, 32], sizes = [2, 32], strides = [1, 1]} : vector<2x128xf32> to vector<2x32xf32>
    %787 = vector.extract_strided_slice %782 {offsets = [0, 96], sizes = [2, 32], strides = [1, 1]} : vector<2x128xf32> to vector<2x32xf32>
    %788 = arith.mulf %786, %645 : vector<2x32xf32>
    %789 = arith.mulf %785, %784 : vector<2x32xf32>
    %790 = arith.addf %788, %789 : vector<2x32xf32>
    %791 = math.tanh %790 : vector<2x32xf32>
    %792 = arith.mulf %787, %791 : vector<2x32xf32>
    %793 = tpu.concatenate %667, %692 in 1 : vector<2x32xf32>, vector<2x32xf32> -> vector<2x64xf32>
    %c0_286 = arith.constant 0 : index
    %c0_287 = arith.constant 0 : index
    %c0_288 = arith.constant 0 : index
    %794 = vector.load %arg4[%c0_286, %c0_287, %c0_288] : memref<5x64x128xf32, #tpu.memory_space<vmem>>, vector<1x64x128xf32>
    %795 = vector.shape_cast %794 : vector<1x64x128xf32> to vector<64x128xf32>
    %cst_289 = arith.constant dense<0.000000e+00> : vector<2x128xf32>
    %796 = tpu.matmul %793, %795, %cst_289 {dimension_numbers = #tpu.dot_dimension_numbers<[1], [0], [0], [1], [0, 0, 1, 1], [], []>} : vector<2x64xf32>, vector<64x128xf32>, vector<2x128xf32> -> vector<2x128xf32>
    %c0_290 = arith.constant 0 : index
    %c0_291 = arith.constant 0 : index
    %c0_292 = arith.constant 0 : index
    %797 = vector.load %arg5[%c0_290, %c0_291, %c0_292] : memref<5x1x128xf32, #tpu.memory_space<vmem>>, vector<1x1x128xf32>
    %798 = vector.shape_cast %797 : vector<1x1x128xf32> to vector<1x128xf32>
    %799 = vector.broadcast %798 : vector<1x128xf32> to vector<2x128xf32>
    %800 = arith.addf %796, %799 : vector<2x128xf32>
    %cst_293 = arith.constant 5.000000e-01 : f32
    %801 = vector.broadcast %cst_293 : f32 to vector<2x128xf32>
    %802 = arith.mulf %801, %800 : vector<2x128xf32>
    %803 = math.tanh %802 : vector<2x128xf32>
    %cst_294 = arith.constant 1.000000e+00 : f32
    %804 = vector.broadcast %cst_294 : f32 to vector<2x128xf32>
    %805 = arith.addf %803, %804 : vector<2x128xf32>
    %cst_295 = arith.constant 5.000000e-01 : f32
    %806 = vector.broadcast %cst_295 : f32 to vector<2x128xf32>
    %807 = arith.mulf %806, %805 : vector<2x128xf32>
    %808 = vector.extract_strided_slice %800 {offsets = [0, 64], sizes = [2, 32], strides = [1, 1]} : vector<2x128xf32> to vector<2x32xf32>
    %809 = math.tanh %808 : vector<2x32xf32>
    %810 = vector.extract_strided_slice %807 {offsets = [0, 0], sizes = [2, 32], strides = [1, 1]} : vector<2x128xf32> to vector<2x32xf32>
    %811 = vector.extract_strided_slice %807 {offsets = [0, 32], sizes = [2, 32], strides = [1, 1]} : vector<2x128xf32> to vector<2x32xf32>
    %812 = vector.extract_strided_slice %807 {offsets = [0, 96], sizes = [2, 32], strides = [1, 1]} : vector<2x128xf32> to vector<2x32xf32>
    %813 = arith.mulf %811, %690 : vector<2x32xf32>
    %814 = arith.mulf %810, %809 : vector<2x32xf32>
    %815 = arith.addf %813, %814 : vector<2x32xf32>
    %816 = math.tanh %815 : vector<2x32xf32>
    %817 = arith.mulf %812, %816 : vector<2x32xf32>
    %818 = tpu.concatenate %692, %717 in 1 : vector<2x32xf32>, vector<2x32xf32> -> vector<2x64xf32>
    %c1_296 = arith.constant 1 : index
    %c0_297 = arith.constant 0 : index
    %c0_298 = arith.constant 0 : index
    %819 = vector.load %arg4[%c1_296, %c0_297, %c0_298] : memref<5x64x128xf32, #tpu.memory_space<vmem>>, vector<1x64x128xf32>
    %820 = vector.shape_cast %819 : vector<1x64x128xf32> to vector<64x128xf32>
    %cst_299 = arith.constant dense<0.000000e+00> : vector<2x128xf32>
    %821 = tpu.matmul %818, %820, %cst_299 {dimension_numbers = #tpu.dot_dimension_numbers<[1], [0], [0], [1], [0, 0, 1, 1], [], []>} : vector<2x64xf32>, vector<64x128xf32>, vector<2x128xf32> -> vector<2x128xf32>
    %c1_300 = arith.constant 1 : index
    %c0_301 = arith.constant 0 : index
    %c0_302 = arith.constant 0 : index
    %822 = vector.load %arg5[%c1_300, %c0_301, %c0_302] : memref<5x1x128xf32, #tpu.memory_space<vmem>>, vector<1x1x128xf32>
    %823 = vector.shape_cast %822 : vector<1x1x128xf32> to vector<1x128xf32>
    %824 = vector.broadcast %823 : vector<1x128xf32> to vector<2x128xf32>
    %825 = arith.addf %821, %824 : vector<2x128xf32>
    %cst_303 = arith.constant 5.000000e-01 : f32
    %826 = vector.broadcast %cst_303 : f32 to vector<2x128xf32>
    %827 = arith.mulf %826, %825 : vector<2x128xf32>
    %828 = math.tanh %827 : vector<2x128xf32>
    %cst_304 = arith.constant 1.000000e+00 : f32
    %829 = vector.broadcast %cst_304 : f32 to vector<2x128xf32>
    %830 = arith.addf %828, %829 : vector<2x128xf32>
    %cst_305 = arith.constant 5.000000e-01 : f32
    %831 = vector.broadcast %cst_305 : f32 to vector<2x128xf32>
    %832 = arith.mulf %831, %830 : vector<2x128xf32>
    %833 = vector.extract_strided_slice %825 {offsets = [0, 64], sizes = [2, 32], strides = [1, 1]} : vector<2x128xf32> to vector<2x32xf32>
    %834 = math.tanh %833 : vector<2x32xf32>
    %835 = vector.extract_strided_slice %832 {offsets = [0, 0], sizes = [2, 32], strides = [1, 1]} : vector<2x128xf32> to vector<2x32xf32>
    %836 = vector.extract_strided_slice %832 {offsets = [0, 32], sizes = [2, 32], strides = [1, 1]} : vector<2x128xf32> to vector<2x32xf32>
    %837 = vector.extract_strided_slice %832 {offsets = [0, 96], sizes = [2, 32], strides = [1, 1]} : vector<2x128xf32> to vector<2x32xf32>
    %838 = arith.mulf %836, %715 : vector<2x32xf32>
    %839 = arith.mulf %835, %834 : vector<2x32xf32>
    %840 = arith.addf %838, %839 : vector<2x32xf32>
    %841 = math.tanh %840 : vector<2x32xf32>
    %842 = arith.mulf %837, %841 : vector<2x32xf32>
    %843 = tpu.concatenate %717, %742 in 1 : vector<2x32xf32>, vector<2x32xf32> -> vector<2x64xf32>
    %c2_306 = arith.constant 2 : index
    %c0_307 = arith.constant 0 : index
    %c0_308 = arith.constant 0 : index
    %844 = vector.load %arg4[%c2_306, %c0_307, %c0_308] : memref<5x64x128xf32, #tpu.memory_space<vmem>>, vector<1x64x128xf32>
    %845 = vector.shape_cast %844 : vector<1x64x128xf32> to vector<64x128xf32>
    %cst_309 = arith.constant dense<0.000000e+00> : vector<2x128xf32>
    %846 = tpu.matmul %843, %845, %cst_309 {dimension_numbers = #tpu.dot_dimension_numbers<[1], [0], [0], [1], [0, 0, 1, 1], [], []>} : vector<2x64xf32>, vector<64x128xf32>, vector<2x128xf32> -> vector<2x128xf32>
    %c2_310 = arith.constant 2 : index
    %c0_311 = arith.constant 0 : index
    %c0_312 = arith.constant 0 : index
    %847 = vector.load %arg5[%c2_310, %c0_311, %c0_312] : memref<5x1x128xf32, #tpu.memory_space<vmem>>, vector<1x1x128xf32>
    %848 = vector.shape_cast %847 : vector<1x1x128xf32> to vector<1x128xf32>
    %849 = vector.broadcast %848 : vector<1x128xf32> to vector<2x128xf32>
    %850 = arith.addf %846, %849 : vector<2x128xf32>
    %cst_313 = arith.constant 5.000000e-01 : f32
    %851 = vector.broadcast %cst_313 : f32 to vector<2x128xf32>
    %852 = arith.mulf %851, %850 : vector<2x128xf32>
    %853 = math.tanh %852 : vector<2x128xf32>
    %cst_314 = arith.constant 1.000000e+00 : f32
    %854 = vector.broadcast %cst_314 : f32 to vector<2x128xf32>
    %855 = arith.addf %853, %854 : vector<2x128xf32>
    %cst_315 = arith.constant 5.000000e-01 : f32
    %856 = vector.broadcast %cst_315 : f32 to vector<2x128xf32>
    %857 = arith.mulf %856, %855 : vector<2x128xf32>
    %858 = vector.extract_strided_slice %850 {offsets = [0, 64], sizes = [2, 32], strides = [1, 1]} : vector<2x128xf32> to vector<2x32xf32>
    %859 = math.tanh %858 : vector<2x32xf32>
    %860 = vector.extract_strided_slice %857 {offsets = [0, 0], sizes = [2, 32], strides = [1, 1]} : vector<2x128xf32> to vector<2x32xf32>
    %861 = vector.extract_strided_slice %857 {offsets = [0, 32], sizes = [2, 32], strides = [1, 1]} : vector<2x128xf32> to vector<2x32xf32>
    %862 = vector.extract_strided_slice %857 {offsets = [0, 96], sizes = [2, 32], strides = [1, 1]} : vector<2x128xf32> to vector<2x32xf32>
    %863 = arith.mulf %861, %740 : vector<2x32xf32>
    %864 = arith.mulf %860, %859 : vector<2x32xf32>
    %865 = arith.addf %863, %864 : vector<2x32xf32>
    %866 = math.tanh %865 : vector<2x32xf32>
    %867 = arith.mulf %862, %866 : vector<2x32xf32>
    %868 = tpu.concatenate %742, %767 in 1 : vector<2x32xf32>, vector<2x32xf32> -> vector<2x64xf32>
    %c3_316 = arith.constant 3 : index
    %c0_317 = arith.constant 0 : index
    %c0_318 = arith.constant 0 : index
    %869 = vector.load %arg4[%c3_316, %c0_317, %c0_318] : memref<5x64x128xf32, #tpu.memory_space<vmem>>, vector<1x64x128xf32>
    %870 = vector.shape_cast %869 : vector<1x64x128xf32> to vector<64x128xf32>
    %cst_319 = arith.constant dense<0.000000e+00> : vector<2x128xf32>
    %871 = tpu.matmul %868, %870, %cst_319 {dimension_numbers = #tpu.dot_dimension_numbers<[1], [0], [0], [1], [0, 0, 1, 1], [], []>} : vector<2x64xf32>, vector<64x128xf32>, vector<2x128xf32> -> vector<2x128xf32>
    %c3_320 = arith.constant 3 : index
    %c0_321 = arith.constant 0 : index
    %c0_322 = arith.constant 0 : index
    %872 = vector.load %arg5[%c3_320, %c0_321, %c0_322] : memref<5x1x128xf32, #tpu.memory_space<vmem>>, vector<1x1x128xf32>
    %873 = vector.shape_cast %872 : vector<1x1x128xf32> to vector<1x128xf32>
    %874 = vector.broadcast %873 : vector<1x128xf32> to vector<2x128xf32>
    %875 = arith.addf %871, %874 : vector<2x128xf32>
    %cst_323 = arith.constant 5.000000e-01 : f32
    %876 = vector.broadcast %cst_323 : f32 to vector<2x128xf32>
    %877 = arith.mulf %876, %875 : vector<2x128xf32>
    %878 = math.tanh %877 : vector<2x128xf32>
    %cst_324 = arith.constant 1.000000e+00 : f32
    %879 = vector.broadcast %cst_324 : f32 to vector<2x128xf32>
    %880 = arith.addf %878, %879 : vector<2x128xf32>
    %cst_325 = arith.constant 5.000000e-01 : f32
    %881 = vector.broadcast %cst_325 : f32 to vector<2x128xf32>
    %882 = arith.mulf %881, %880 : vector<2x128xf32>
    %883 = vector.extract_strided_slice %875 {offsets = [0, 64], sizes = [2, 32], strides = [1, 1]} : vector<2x128xf32> to vector<2x32xf32>
    %884 = math.tanh %883 : vector<2x32xf32>
    %885 = vector.extract_strided_slice %882 {offsets = [0, 0], sizes = [2, 32], strides = [1, 1]} : vector<2x128xf32> to vector<2x32xf32>
    %886 = vector.extract_strided_slice %882 {offsets = [0, 32], sizes = [2, 32], strides = [1, 1]} : vector<2x128xf32> to vector<2x32xf32>
    %887 = vector.extract_strided_slice %882 {offsets = [0, 96], sizes = [2, 32], strides = [1, 1]} : vector<2x128xf32> to vector<2x32xf32>
    %888 = arith.mulf %886, %765 : vector<2x32xf32>
    %889 = arith.mulf %885, %884 : vector<2x32xf32>
    %890 = arith.addf %888, %889 : vector<2x32xf32>
    %891 = math.tanh %890 : vector<2x32xf32>
    %892 = arith.mulf %887, %891 : vector<2x32xf32>
    %893 = tpu.concatenate %767, %792 in 1 : vector<2x32xf32>, vector<2x32xf32> -> vector<2x64xf32>
    %c4_326 = arith.constant 4 : index
    %c0_327 = arith.constant 0 : index
    %c0_328 = arith.constant 0 : index
    %894 = vector.load %arg4[%c4_326, %c0_327, %c0_328] : memref<5x64x128xf32, #tpu.memory_space<vmem>>, vector<1x64x128xf32>
    %895 = vector.shape_cast %894 : vector<1x64x128xf32> to vector<64x128xf32>
    %cst_329 = arith.constant dense<0.000000e+00> : vector<2x128xf32>
    %896 = tpu.matmul %893, %895, %cst_329 {dimension_numbers = #tpu.dot_dimension_numbers<[1], [0], [0], [1], [0, 0, 1, 1], [], []>} : vector<2x64xf32>, vector<64x128xf32>, vector<2x128xf32> -> vector<2x128xf32>
    %c4_330 = arith.constant 4 : index
    %c0_331 = arith.constant 0 : index
    %c0_332 = arith.constant 0 : index
    %897 = vector.load %arg5[%c4_330, %c0_331, %c0_332] : memref<5x1x128xf32, #tpu.memory_space<vmem>>, vector<1x1x128xf32>
    %898 = vector.shape_cast %897 : vector<1x1x128xf32> to vector<1x128xf32>
    %899 = vector.broadcast %898 : vector<1x128xf32> to vector<2x128xf32>
    %900 = arith.addf %896, %899 : vector<2x128xf32>
    %cst_333 = arith.constant 5.000000e-01 : f32
    %901 = vector.broadcast %cst_333 : f32 to vector<2x128xf32>
    %902 = arith.mulf %901, %900 : vector<2x128xf32>
    %903 = math.tanh %902 : vector<2x128xf32>
    %cst_334 = arith.constant 1.000000e+00 : f32
    %904 = vector.broadcast %cst_334 : f32 to vector<2x128xf32>
    %905 = arith.addf %903, %904 : vector<2x128xf32>
    %cst_335 = arith.constant 5.000000e-01 : f32
    %906 = vector.broadcast %cst_335 : f32 to vector<2x128xf32>
    %907 = arith.mulf %906, %905 : vector<2x128xf32>
    %908 = vector.extract_strided_slice %900 {offsets = [0, 64], sizes = [2, 32], strides = [1, 1]} : vector<2x128xf32> to vector<2x32xf32>
    %909 = math.tanh %908 : vector<2x32xf32>
    %910 = vector.extract_strided_slice %907 {offsets = [0, 0], sizes = [2, 32], strides = [1, 1]} : vector<2x128xf32> to vector<2x32xf32>
    %911 = vector.extract_strided_slice %907 {offsets = [0, 32], sizes = [2, 32], strides = [1, 1]} : vector<2x128xf32> to vector<2x32xf32>
    %912 = vector.extract_strided_slice %907 {offsets = [0, 96], sizes = [2, 32], strides = [1, 1]} : vector<2x128xf32> to vector<2x32xf32>
    %913 = arith.mulf %911, %790 : vector<2x32xf32>
    %914 = arith.mulf %910, %909 : vector<2x32xf32>
    %915 = arith.addf %913, %914 : vector<2x32xf32>
    %916 = math.tanh %915 : vector<2x32xf32>
    %917 = arith.mulf %912, %916 : vector<2x32xf32>
    %918 = tpu.concatenate %817, %842 in 1 : vector<2x32xf32>, vector<2x32xf32> -> vector<2x64xf32>
    %c1_336 = arith.constant 1 : index
    %c0_337 = arith.constant 0 : index
    %c0_338 = arith.constant 0 : index
    %919 = vector.load %arg4[%c1_336, %c0_337, %c0_338] : memref<5x64x128xf32, #tpu.memory_space<vmem>>, vector<1x64x128xf32>
    %920 = vector.shape_cast %919 : vector<1x64x128xf32> to vector<64x128xf32>
    %cst_339 = arith.constant dense<0.000000e+00> : vector<2x128xf32>
    %921 = tpu.matmul %918, %920, %cst_339 {dimension_numbers = #tpu.dot_dimension_numbers<[1], [0], [0], [1], [0, 0, 1, 1], [], []>} : vector<2x64xf32>, vector<64x128xf32>, vector<2x128xf32> -> vector<2x128xf32>
    %c1_340 = arith.constant 1 : index
    %c0_341 = arith.constant 0 : index
    %c0_342 = arith.constant 0 : index
    %922 = vector.load %arg5[%c1_340, %c0_341, %c0_342] : memref<5x1x128xf32, #tpu.memory_space<vmem>>, vector<1x1x128xf32>
    %923 = vector.shape_cast %922 : vector<1x1x128xf32> to vector<1x128xf32>
    %924 = vector.broadcast %923 : vector<1x128xf32> to vector<2x128xf32>
    %925 = arith.addf %921, %924 : vector<2x128xf32>
    %cst_343 = arith.constant 5.000000e-01 : f32
    %926 = vector.broadcast %cst_343 : f32 to vector<2x128xf32>
    %927 = arith.mulf %926, %925 : vector<2x128xf32>
    %928 = math.tanh %927 : vector<2x128xf32>
    %cst_344 = arith.constant 1.000000e+00 : f32
    %929 = vector.broadcast %cst_344 : f32 to vector<2x128xf32>
    %930 = arith.addf %928, %929 : vector<2x128xf32>
    %cst_345 = arith.constant 5.000000e-01 : f32
    %931 = vector.broadcast %cst_345 : f32 to vector<2x128xf32>
    %932 = arith.mulf %931, %930 : vector<2x128xf32>
    %933 = vector.extract_strided_slice %925 {offsets = [0, 64], sizes = [2, 32], strides = [1, 1]} : vector<2x128xf32> to vector<2x32xf32>
    %934 = math.tanh %933 : vector<2x32xf32>
    %935 = vector.extract_strided_slice %932 {offsets = [0, 0], sizes = [2, 32], strides = [1, 1]} : vector<2x128xf32> to vector<2x32xf32>
    %936 = vector.extract_strided_slice %932 {offsets = [0, 32], sizes = [2, 32], strides = [1, 1]} : vector<2x128xf32> to vector<2x32xf32>
    %937 = vector.extract_strided_slice %932 {offsets = [0, 96], sizes = [2, 32], strides = [1, 1]} : vector<2x128xf32> to vector<2x32xf32>
    %938 = arith.mulf %936, %840 : vector<2x32xf32>
    %939 = arith.mulf %935, %934 : vector<2x32xf32>
    %940 = arith.addf %938, %939 : vector<2x32xf32>
    %941 = math.tanh %940 : vector<2x32xf32>
    %942 = arith.mulf %937, %941 : vector<2x32xf32>
    %943 = tpu.concatenate %842, %867 in 1 : vector<2x32xf32>, vector<2x32xf32> -> vector<2x64xf32>
    %c2_346 = arith.constant 2 : index
    %c0_347 = arith.constant 0 : index
    %c0_348 = arith.constant 0 : index
    %944 = vector.load %arg4[%c2_346, %c0_347, %c0_348] : memref<5x64x128xf32, #tpu.memory_space<vmem>>, vector<1x64x128xf32>
    %945 = vector.shape_cast %944 : vector<1x64x128xf32> to vector<64x128xf32>
    %cst_349 = arith.constant dense<0.000000e+00> : vector<2x128xf32>
    %946 = tpu.matmul %943, %945, %cst_349 {dimension_numbers = #tpu.dot_dimension_numbers<[1], [0], [0], [1], [0, 0, 1, 1], [], []>} : vector<2x64xf32>, vector<64x128xf32>, vector<2x128xf32> -> vector<2x128xf32>
    %c2_350 = arith.constant 2 : index
    %c0_351 = arith.constant 0 : index
    %c0_352 = arith.constant 0 : index
    %947 = vector.load %arg5[%c2_350, %c0_351, %c0_352] : memref<5x1x128xf32, #tpu.memory_space<vmem>>, vector<1x1x128xf32>
    %948 = vector.shape_cast %947 : vector<1x1x128xf32> to vector<1x128xf32>
    %949 = vector.broadcast %948 : vector<1x128xf32> to vector<2x128xf32>
    %950 = arith.addf %946, %949 : vector<2x128xf32>
    %cst_353 = arith.constant 5.000000e-01 : f32
    %951 = vector.broadcast %cst_353 : f32 to vector<2x128xf32>
    %952 = arith.mulf %951, %950 : vector<2x128xf32>
    %953 = math.tanh %952 : vector<2x128xf32>
    %cst_354 = arith.constant 1.000000e+00 : f32
    %954 = vector.broadcast %cst_354 : f32 to vector<2x128xf32>
    %955 = arith.addf %953, %954 : vector<2x128xf32>
    %cst_355 = arith.constant 5.000000e-01 : f32
    %956 = vector.broadcast %cst_355 : f32 to vector<2x128xf32>
    %957 = arith.mulf %956, %955 : vector<2x128xf32>
    %958 = vector.extract_strided_slice %950 {offsets = [0, 64], sizes = [2, 32], strides = [1, 1]} : vector<2x128xf32> to vector<2x32xf32>
    %959 = math.tanh %958 : vector<2x32xf32>
    %960 = vector.extract_strided_slice %957 {offsets = [0, 0], sizes = [2, 32], strides = [1, 1]} : vector<2x128xf32> to vector<2x32xf32>
    %961 = vector.extract_strided_slice %957 {offsets = [0, 32], sizes = [2, 32], strides = [1, 1]} : vector<2x128xf32> to vector<2x32xf32>
    %962 = vector.extract_strided_slice %957 {offsets = [0, 96], sizes = [2, 32], strides = [1, 1]} : vector<2x128xf32> to vector<2x32xf32>
    %963 = arith.mulf %961, %865 : vector<2x32xf32>
    %964 = arith.mulf %960, %959 : vector<2x32xf32>
    %965 = arith.addf %963, %964 : vector<2x32xf32>
    %966 = math.tanh %965 : vector<2x32xf32>
    %967 = arith.mulf %962, %966 : vector<2x32xf32>
    %968 = tpu.concatenate %867, %892 in 1 : vector<2x32xf32>, vector<2x32xf32> -> vector<2x64xf32>
    %c3_356 = arith.constant 3 : index
    %c0_357 = arith.constant 0 : index
    %c0_358 = arith.constant 0 : index
    %969 = vector.load %arg4[%c3_356, %c0_357, %c0_358] : memref<5x64x128xf32, #tpu.memory_space<vmem>>, vector<1x64x128xf32>
    %970 = vector.shape_cast %969 : vector<1x64x128xf32> to vector<64x128xf32>
    %cst_359 = arith.constant dense<0.000000e+00> : vector<2x128xf32>
    %971 = tpu.matmul %968, %970, %cst_359 {dimension_numbers = #tpu.dot_dimension_numbers<[1], [0], [0], [1], [0, 0, 1, 1], [], []>} : vector<2x64xf32>, vector<64x128xf32>, vector<2x128xf32> -> vector<2x128xf32>
    %c3_360 = arith.constant 3 : index
    %c0_361 = arith.constant 0 : index
    %c0_362 = arith.constant 0 : index
    %972 = vector.load %arg5[%c3_360, %c0_361, %c0_362] : memref<5x1x128xf32, #tpu.memory_space<vmem>>, vector<1x1x128xf32>
    %973 = vector.shape_cast %972 : vector<1x1x128xf32> to vector<1x128xf32>
    %974 = vector.broadcast %973 : vector<1x128xf32> to vector<2x128xf32>
    %975 = arith.addf %971, %974 : vector<2x128xf32>
    %cst_363 = arith.constant 5.000000e-01 : f32
    %976 = vector.broadcast %cst_363 : f32 to vector<2x128xf32>
    %977 = arith.mulf %976, %975 : vector<2x128xf32>
    %978 = math.tanh %977 : vector<2x128xf32>
    %cst_364 = arith.constant 1.000000e+00 : f32
    %979 = vector.broadcast %cst_364 : f32 to vector<2x128xf32>
    %980 = arith.addf %978, %979 : vector<2x128xf32>
    %cst_365 = arith.constant 5.000000e-01 : f32
    %981 = vector.broadcast %cst_365 : f32 to vector<2x128xf32>
    %982 = arith.mulf %981, %980 : vector<2x128xf32>
    %983 = vector.extract_strided_slice %975 {offsets = [0, 64], sizes = [2, 32], strides = [1, 1]} : vector<2x128xf32> to vector<2x32xf32>
    %984 = math.tanh %983 : vector<2x32xf32>
    %985 = vector.extract_strided_slice %982 {offsets = [0, 0], sizes = [2, 32], strides = [1, 1]} : vector<2x128xf32> to vector<2x32xf32>
    %986 = vector.extract_strided_slice %982 {offsets = [0, 32], sizes = [2, 32], strides = [1, 1]} : vector<2x128xf32> to vector<2x32xf32>
    %987 = vector.extract_strided_slice %982 {offsets = [0, 96], sizes = [2, 32], strides = [1, 1]} : vector<2x128xf32> to vector<2x32xf32>
    %988 = arith.mulf %986, %890 : vector<2x32xf32>
    %989 = arith.mulf %985, %984 : vector<2x32xf32>
    %990 = arith.addf %988, %989 : vector<2x32xf32>
    %991 = math.tanh %990 : vector<2x32xf32>
    %992 = arith.mulf %987, %991 : vector<2x32xf32>
    %993 = tpu.concatenate %892, %917 in 1 : vector<2x32xf32>, vector<2x32xf32> -> vector<2x64xf32>
    %c4_366 = arith.constant 4 : index
    %c0_367 = arith.constant 0 : index
    %c0_368 = arith.constant 0 : index
    %994 = vector.load %arg4[%c4_366, %c0_367, %c0_368] : memref<5x64x128xf32, #tpu.memory_space<vmem>>, vector<1x64x128xf32>
    %995 = vector.shape_cast %994 : vector<1x64x128xf32> to vector<64x128xf32>
    %cst_369 = arith.constant dense<0.000000e+00> : vector<2x128xf32>
    %996 = tpu.matmul %993, %995, %cst_369 {dimension_numbers = #tpu.dot_dimension_numbers<[1], [0], [0], [1], [0, 0, 1, 1], [], []>} : vector<2x64xf32>, vector<64x128xf32>, vector<2x128xf32> -> vector<2x128xf32>
    %c4_370 = arith.constant 4 : index
    %c0_371 = arith.constant 0 : index
    %c0_372 = arith.constant 0 : index
    %997 = vector.load %arg5[%c4_370, %c0_371, %c0_372] : memref<5x1x128xf32, #tpu.memory_space<vmem>>, vector<1x1x128xf32>
    %998 = vector.shape_cast %997 : vector<1x1x128xf32> to vector<1x128xf32>
    %999 = vector.broadcast %998 : vector<1x128xf32> to vector<2x128xf32>
    %1000 = arith.addf %996, %999 : vector<2x128xf32>
    %cst_373 = arith.constant 5.000000e-01 : f32
    %1001 = vector.broadcast %cst_373 : f32 to vector<2x128xf32>
    %1002 = arith.mulf %1001, %1000 : vector<2x128xf32>
    %1003 = math.tanh %1002 : vector<2x128xf32>
    %cst_374 = arith.constant 1.000000e+00 : f32
    %1004 = vector.broadcast %cst_374 : f32 to vector<2x128xf32>
    %1005 = arith.addf %1003, %1004 : vector<2x128xf32>
    %cst_375 = arith.constant 5.000000e-01 : f32
    %1006 = vector.broadcast %cst_375 : f32 to vector<2x128xf32>
    %1007 = arith.mulf %1006, %1005 : vector<2x128xf32>
    %1008 = vector.extract_strided_slice %1000 {offsets = [0, 64], sizes = [2, 32], strides = [1, 1]} : vector<2x128xf32> to vector<2x32xf32>
    %1009 = math.tanh %1008 : vector<2x32xf32>
    %1010 = vector.extract_strided_slice %1007 {offsets = [0, 0], sizes = [2, 32], strides = [1, 1]} : vector<2x128xf32> to vector<2x32xf32>
    %1011 = vector.extract_strided_slice %1007 {offsets = [0, 32], sizes = [2, 32], strides = [1, 1]} : vector<2x128xf32> to vector<2x32xf32>
    %1012 = vector.extract_strided_slice %1007 {offsets = [0, 96], sizes = [2, 32], strides = [1, 1]} : vector<2x128xf32> to vector<2x32xf32>
    %1013 = arith.mulf %1011, %915 : vector<2x32xf32>
    %1014 = arith.mulf %1010, %1009 : vector<2x32xf32>
    %1015 = arith.addf %1013, %1014 : vector<2x32xf32>
    %1016 = math.tanh %1015 : vector<2x32xf32>
    %1017 = arith.mulf %1012, %1016 : vector<2x32xf32>
    %1018 = tpu.concatenate %942, %967 in 1 : vector<2x32xf32>, vector<2x32xf32> -> vector<2x64xf32>
    %c2_376 = arith.constant 2 : index
    %c0_377 = arith.constant 0 : index
    %c0_378 = arith.constant 0 : index
    %1019 = vector.load %arg4[%c2_376, %c0_377, %c0_378] : memref<5x64x128xf32, #tpu.memory_space<vmem>>, vector<1x64x128xf32>
    %1020 = vector.shape_cast %1019 : vector<1x64x128xf32> to vector<64x128xf32>
    %cst_379 = arith.constant dense<0.000000e+00> : vector<2x128xf32>
    %1021 = tpu.matmul %1018, %1020, %cst_379 {dimension_numbers = #tpu.dot_dimension_numbers<[1], [0], [0], [1], [0, 0, 1, 1], [], []>} : vector<2x64xf32>, vector<64x128xf32>, vector<2x128xf32> -> vector<2x128xf32>
    %c2_380 = arith.constant 2 : index
    %c0_381 = arith.constant 0 : index
    %c0_382 = arith.constant 0 : index
    %1022 = vector.load %arg5[%c2_380, %c0_381, %c0_382] : memref<5x1x128xf32, #tpu.memory_space<vmem>>, vector<1x1x128xf32>
    %1023 = vector.shape_cast %1022 : vector<1x1x128xf32> to vector<1x128xf32>
    %1024 = vector.broadcast %1023 : vector<1x128xf32> to vector<2x128xf32>
    %1025 = arith.addf %1021, %1024 : vector<2x128xf32>
    %cst_383 = arith.constant 5.000000e-01 : f32
    %1026 = vector.broadcast %cst_383 : f32 to vector<2x128xf32>
    %1027 = arith.mulf %1026, %1025 : vector<2x128xf32>
    %1028 = math.tanh %1027 : vector<2x128xf32>
    %cst_384 = arith.constant 1.000000e+00 : f32
    %1029 = vector.broadcast %cst_384 : f32 to vector<2x128xf32>
    %1030 = arith.addf %1028, %1029 : vector<2x128xf32>
    %cst_385 = arith.constant 5.000000e-01 : f32
    %1031 = vector.broadcast %cst_385 : f32 to vector<2x128xf32>
    %1032 = arith.mulf %1031, %1030 : vector<2x128xf32>
    %1033 = vector.extract_strided_slice %1025 {offsets = [0, 64], sizes = [2, 32], strides = [1, 1]} : vector<2x128xf32> to vector<2x32xf32>
    %1034 = math.tanh %1033 : vector<2x32xf32>
    %1035 = vector.extract_strided_slice %1032 {offsets = [0, 0], sizes = [2, 32], strides = [1, 1]} : vector<2x128xf32> to vector<2x32xf32>
    %1036 = vector.extract_strided_slice %1032 {offsets = [0, 32], sizes = [2, 32], strides = [1, 1]} : vector<2x128xf32> to vector<2x32xf32>
    %1037 = vector.extract_strided_slice %1032 {offsets = [0, 96], sizes = [2, 32], strides = [1, 1]} : vector<2x128xf32> to vector<2x32xf32>
    %1038 = arith.mulf %1036, %965 : vector<2x32xf32>
    %1039 = arith.mulf %1035, %1034 : vector<2x32xf32>
    %1040 = arith.addf %1038, %1039 : vector<2x32xf32>
    %1041 = math.tanh %1040 : vector<2x32xf32>
    %1042 = arith.mulf %1037, %1041 : vector<2x32xf32>
    %1043 = tpu.concatenate %967, %992 in 1 : vector<2x32xf32>, vector<2x32xf32> -> vector<2x64xf32>
    %c3_386 = arith.constant 3 : index
    %c0_387 = arith.constant 0 : index
    %c0_388 = arith.constant 0 : index
    %1044 = vector.load %arg4[%c3_386, %c0_387, %c0_388] : memref<5x64x128xf32, #tpu.memory_space<vmem>>, vector<1x64x128xf32>
    %1045 = vector.shape_cast %1044 : vector<1x64x128xf32> to vector<64x128xf32>
    %cst_389 = arith.constant dense<0.000000e+00> : vector<2x128xf32>
    %1046 = tpu.matmul %1043, %1045, %cst_389 {dimension_numbers = #tpu.dot_dimension_numbers<[1], [0], [0], [1], [0, 0, 1, 1], [], []>} : vector<2x64xf32>, vector<64x128xf32>, vector<2x128xf32> -> vector<2x128xf32>
    %c3_390 = arith.constant 3 : index
    %c0_391 = arith.constant 0 : index
    %c0_392 = arith.constant 0 : index
    %1047 = vector.load %arg5[%c3_390, %c0_391, %c0_392] : memref<5x1x128xf32, #tpu.memory_space<vmem>>, vector<1x1x128xf32>
    %1048 = vector.shape_cast %1047 : vector<1x1x128xf32> to vector<1x128xf32>
    %1049 = vector.broadcast %1048 : vector<1x128xf32> to vector<2x128xf32>
    %1050 = arith.addf %1046, %1049 : vector<2x128xf32>
    %cst_393 = arith.constant 5.000000e-01 : f32
    %1051 = vector.broadcast %cst_393 : f32 to vector<2x128xf32>
    %1052 = arith.mulf %1051, %1050 : vector<2x128xf32>
    %1053 = math.tanh %1052 : vector<2x128xf32>
    %cst_394 = arith.constant 1.000000e+00 : f32
    %1054 = vector.broadcast %cst_394 : f32 to vector<2x128xf32>
    %1055 = arith.addf %1053, %1054 : vector<2x128xf32>
    %cst_395 = arith.constant 5.000000e-01 : f32
    %1056 = vector.broadcast %cst_395 : f32 to vector<2x128xf32>
    %1057 = arith.mulf %1056, %1055 : vector<2x128xf32>
    %1058 = vector.extract_strided_slice %1050 {offsets = [0, 64], sizes = [2, 32], strides = [1, 1]} : vector<2x128xf32> to vector<2x32xf32>
    %1059 = math.tanh %1058 : vector<2x32xf32>
    %1060 = vector.extract_strided_slice %1057 {offsets = [0, 0], sizes = [2, 32], strides = [1, 1]} : vector<2x128xf32> to vector<2x32xf32>
    %1061 = vector.extract_strided_slice %1057 {offsets = [0, 32], sizes = [2, 32], strides = [1, 1]} : vector<2x128xf32> to vector<2x32xf32>
    %1062 = vector.extract_strided_slice %1057 {offsets = [0, 96], sizes = [2, 32], strides = [1, 1]} : vector<2x128xf32> to vector<2x32xf32>
    %1063 = arith.mulf %1061, %990 : vector<2x32xf32>
    %1064 = arith.mulf %1060, %1059 : vector<2x32xf32>
    %1065 = arith.addf %1063, %1064 : vector<2x32xf32>
    %1066 = math.tanh %1065 : vector<2x32xf32>
    %1067 = arith.mulf %1062, %1066 : vector<2x32xf32>
    %1068 = tpu.concatenate %992, %1017 in 1 : vector<2x32xf32>, vector<2x32xf32> -> vector<2x64xf32>
    %c4_396 = arith.constant 4 : index
    %c0_397 = arith.constant 0 : index
    %c0_398 = arith.constant 0 : index
    %1069 = vector.load %arg4[%c4_396, %c0_397, %c0_398] : memref<5x64x128xf32, #tpu.memory_space<vmem>>, vector<1x64x128xf32>
    %1070 = vector.shape_cast %1069 : vector<1x64x128xf32> to vector<64x128xf32>
    %cst_399 = arith.constant dense<0.000000e+00> : vector<2x128xf32>
    %1071 = tpu.matmul %1068, %1070, %cst_399 {dimension_numbers = #tpu.dot_dimension_numbers<[1], [0], [0], [1], [0, 0, 1, 1], [], []>} : vector<2x64xf32>, vector<64x128xf32>, vector<2x128xf32> -> vector<2x128xf32>
    %c4_400 = arith.constant 4 : index
    %c0_401 = arith.constant 0 : index
    %c0_402 = arith.constant 0 : index
    %1072 = vector.load %arg5[%c4_400, %c0_401, %c0_402] : memref<5x1x128xf32, #tpu.memory_space<vmem>>, vector<1x1x128xf32>
    %1073 = vector.shape_cast %1072 : vector<1x1x128xf32> to vector<1x128xf32>
    %1074 = vector.broadcast %1073 : vector<1x128xf32> to vector<2x128xf32>
    %1075 = arith.addf %1071, %1074 : vector<2x128xf32>
    %cst_403 = arith.constant 5.000000e-01 : f32
    %1076 = vector.broadcast %cst_403 : f32 to vector<2x128xf32>
    %1077 = arith.mulf %1076, %1075 : vector<2x128xf32>
    %1078 = math.tanh %1077 : vector<2x128xf32>
    %cst_404 = arith.constant 1.000000e+00 : f32
    %1079 = vector.broadcast %cst_404 : f32 to vector<2x128xf32>
    %1080 = arith.addf %1078, %1079 : vector<2x128xf32>
    %cst_405 = arith.constant 5.000000e-01 : f32
    %1081 = vector.broadcast %cst_405 : f32 to vector<2x128xf32>
    %1082 = arith.mulf %1081, %1080 : vector<2x128xf32>
    %1083 = vector.extract_strided_slice %1075 {offsets = [0, 64], sizes = [2, 32], strides = [1, 1]} : vector<2x128xf32> to vector<2x32xf32>
    %1084 = math.tanh %1083 : vector<2x32xf32>
    %1085 = vector.extract_strided_slice %1082 {offsets = [0, 0], sizes = [2, 32], strides = [1, 1]} : vector<2x128xf32> to vector<2x32xf32>
    %1086 = vector.extract_strided_slice %1082 {offsets = [0, 32], sizes = [2, 32], strides = [1, 1]} : vector<2x128xf32> to vector<2x32xf32>
    %1087 = vector.extract_strided_slice %1082 {offsets = [0, 96], sizes = [2, 32], strides = [1, 1]} : vector<2x128xf32> to vector<2x32xf32>
    %1088 = arith.mulf %1086, %1015 : vector<2x32xf32>
    %1089 = arith.mulf %1085, %1084 : vector<2x32xf32>
    %1090 = arith.addf %1088, %1089 : vector<2x32xf32>
    %1091 = math.tanh %1090 : vector<2x32xf32>
    %1092 = arith.mulf %1087, %1091 : vector<2x32xf32>
    %1093 = tpu.concatenate %1042, %1067 in 1 : vector<2x32xf32>, vector<2x32xf32> -> vector<2x64xf32>
    %c3_406 = arith.constant 3 : index
    %c0_407 = arith.constant 0 : index
    %c0_408 = arith.constant 0 : index
    %1094 = vector.load %arg4[%c3_406, %c0_407, %c0_408] : memref<5x64x128xf32, #tpu.memory_space<vmem>>, vector<1x64x128xf32>
    %1095 = vector.shape_cast %1094 : vector<1x64x128xf32> to vector<64x128xf32>
    %cst_409 = arith.constant dense<0.000000e+00> : vector<2x128xf32>
    %1096 = tpu.matmul %1093, %1095, %cst_409 {dimension_numbers = #tpu.dot_dimension_numbers<[1], [0], [0], [1], [0, 0, 1, 1], [], []>} : vector<2x64xf32>, vector<64x128xf32>, vector<2x128xf32> -> vector<2x128xf32>
    %c3_410 = arith.constant 3 : index
    %c0_411 = arith.constant 0 : index
    %c0_412 = arith.constant 0 : index
    %1097 = vector.load %arg5[%c3_410, %c0_411, %c0_412] : memref<5x1x128xf32, #tpu.memory_space<vmem>>, vector<1x1x128xf32>
    %1098 = vector.shape_cast %1097 : vector<1x1x128xf32> to vector<1x128xf32>
    %1099 = vector.broadcast %1098 : vector<1x128xf32> to vector<2x128xf32>
    %1100 = arith.addf %1096, %1099 : vector<2x128xf32>
    %cst_413 = arith.constant 5.000000e-01 : f32
    %1101 = vector.broadcast %cst_413 : f32 to vector<2x128xf32>
    %1102 = arith.mulf %1101, %1100 : vector<2x128xf32>
    %1103 = math.tanh %1102 : vector<2x128xf32>
    %cst_414 = arith.constant 1.000000e+00 : f32
    %1104 = vector.broadcast %cst_414 : f32 to vector<2x128xf32>
    %1105 = arith.addf %1103, %1104 : vector<2x128xf32>
    %cst_415 = arith.constant 5.000000e-01 : f32
    %1106 = vector.broadcast %cst_415 : f32 to vector<2x128xf32>
    %1107 = arith.mulf %1106, %1105 : vector<2x128xf32>
    %1108 = vector.extract_strided_slice %1100 {offsets = [0, 64], sizes = [2, 32], strides = [1, 1]} : vector<2x128xf32> to vector<2x32xf32>
    %1109 = math.tanh %1108 : vector<2x32xf32>
    %1110 = vector.extract_strided_slice %1107 {offsets = [0, 0], sizes = [2, 32], strides = [1, 1]} : vector<2x128xf32> to vector<2x32xf32>
    %1111 = vector.extract_strided_slice %1107 {offsets = [0, 32], sizes = [2, 32], strides = [1, 1]} : vector<2x128xf32> to vector<2x32xf32>
    %1112 = vector.extract_strided_slice %1107 {offsets = [0, 96], sizes = [2, 32], strides = [1, 1]} : vector<2x128xf32> to vector<2x32xf32>
    %1113 = arith.mulf %1111, %1065 : vector<2x32xf32>
    %1114 = arith.mulf %1110, %1109 : vector<2x32xf32>
    %1115 = arith.addf %1113, %1114 : vector<2x32xf32>
    %1116 = math.tanh %1115 : vector<2x32xf32>
    %1117 = arith.mulf %1112, %1116 : vector<2x32xf32>
    %1118 = tpu.concatenate %1067, %1092 in 1 : vector<2x32xf32>, vector<2x32xf32> -> vector<2x64xf32>
    %c4_416 = arith.constant 4 : index
    %c0_417 = arith.constant 0 : index
    %c0_418 = arith.constant 0 : index
    %1119 = vector.load %arg4[%c4_416, %c0_417, %c0_418] : memref<5x64x128xf32, #tpu.memory_space<vmem>>, vector<1x64x128xf32>
    %1120 = vector.shape_cast %1119 : vector<1x64x128xf32> to vector<64x128xf32>
    %cst_419 = arith.constant dense<0.000000e+00> : vector<2x128xf32>
    %1121 = tpu.matmul %1118, %1120, %cst_419 {dimension_numbers = #tpu.dot_dimension_numbers<[1], [0], [0], [1], [0, 0, 1, 1], [], []>} : vector<2x64xf32>, vector<64x128xf32>, vector<2x128xf32> -> vector<2x128xf32>
    %c4_420 = arith.constant 4 : index
    %c0_421 = arith.constant 0 : index
    %c0_422 = arith.constant 0 : index
    %1122 = vector.load %arg5[%c4_420, %c0_421, %c0_422] : memref<5x1x128xf32, #tpu.memory_space<vmem>>, vector<1x1x128xf32>
    %1123 = vector.shape_cast %1122 : vector<1x1x128xf32> to vector<1x128xf32>
    %1124 = vector.broadcast %1123 : vector<1x128xf32> to vector<2x128xf32>
    %1125 = arith.addf %1121, %1124 : vector<2x128xf32>
    %cst_423 = arith.constant 5.000000e-01 : f32
    %1126 = vector.broadcast %cst_423 : f32 to vector<2x128xf32>
    %1127 = arith.mulf %1126, %1125 : vector<2x128xf32>
    %1128 = math.tanh %1127 : vector<2x128xf32>
    %cst_424 = arith.constant 1.000000e+00 : f32
    %1129 = vector.broadcast %cst_424 : f32 to vector<2x128xf32>
    %1130 = arith.addf %1128, %1129 : vector<2x128xf32>
    %cst_425 = arith.constant 5.000000e-01 : f32
    %1131 = vector.broadcast %cst_425 : f32 to vector<2x128xf32>
    %1132 = arith.mulf %1131, %1130 : vector<2x128xf32>
    %1133 = vector.extract_strided_slice %1125 {offsets = [0, 64], sizes = [2, 32], strides = [1, 1]} : vector<2x128xf32> to vector<2x32xf32>
    %1134 = math.tanh %1133 : vector<2x32xf32>
    %1135 = vector.extract_strided_slice %1132 {offsets = [0, 0], sizes = [2, 32], strides = [1, 1]} : vector<2x128xf32> to vector<2x32xf32>
    %1136 = vector.extract_strided_slice %1132 {offsets = [0, 32], sizes = [2, 32], strides = [1, 1]} : vector<2x128xf32> to vector<2x32xf32>
    %1137 = vector.extract_strided_slice %1132 {offsets = [0, 96], sizes = [2, 32], strides = [1, 1]} : vector<2x128xf32> to vector<2x32xf32>
    %1138 = arith.mulf %1136, %1090 : vector<2x32xf32>
    %1139 = arith.mulf %1135, %1134 : vector<2x32xf32>
    %1140 = arith.addf %1138, %1139 : vector<2x32xf32>
    %1141 = math.tanh %1140 : vector<2x32xf32>
    %1142 = arith.mulf %1137, %1141 : vector<2x32xf32>
    %1143 = tpu.concatenate %1117, %1142 in 1 : vector<2x32xf32>, vector<2x32xf32> -> vector<2x64xf32>
    %c4_426 = arith.constant 4 : index
    %c0_427 = arith.constant 0 : index
    %c0_428 = arith.constant 0 : index
    %1144 = vector.load %arg4[%c4_426, %c0_427, %c0_428] : memref<5x64x128xf32, #tpu.memory_space<vmem>>, vector<1x64x128xf32>
    %1145 = vector.shape_cast %1144 : vector<1x64x128xf32> to vector<64x128xf32>
    %cst_429 = arith.constant dense<0.000000e+00> : vector<2x128xf32>
    %1146 = tpu.matmul %1143, %1145, %cst_429 {dimension_numbers = #tpu.dot_dimension_numbers<[1], [0], [0], [1], [0, 0, 1, 1], [], []>} : vector<2x64xf32>, vector<64x128xf32>, vector<2x128xf32> -> vector<2x128xf32>
    %c4_430 = arith.constant 4 : index
    %c0_431 = arith.constant 0 : index
    %c0_432 = arith.constant 0 : index
    %1147 = vector.load %arg5[%c4_430, %c0_431, %c0_432] : memref<5x1x128xf32, #tpu.memory_space<vmem>>, vector<1x1x128xf32>
    %1148 = vector.shape_cast %1147 : vector<1x1x128xf32> to vector<1x128xf32>
    %1149 = vector.broadcast %1148 : vector<1x128xf32> to vector<2x128xf32>
    %1150 = arith.addf %1146, %1149 : vector<2x128xf32>
    %cst_433 = arith.constant 5.000000e-01 : f32
    %1151 = vector.broadcast %cst_433 : f32 to vector<2x128xf32>
    %1152 = arith.mulf %1151, %1150 : vector<2x128xf32>
    %1153 = math.tanh %1152 : vector<2x128xf32>
    %cst_434 = arith.constant 1.000000e+00 : f32
    %1154 = vector.broadcast %cst_434 : f32 to vector<2x128xf32>
    %1155 = arith.addf %1153, %1154 : vector<2x128xf32>
    %cst_435 = arith.constant 5.000000e-01 : f32
    %1156 = vector.broadcast %cst_435 : f32 to vector<2x128xf32>
    %1157 = arith.mulf %1156, %1155 : vector<2x128xf32>
    %1158 = vector.extract_strided_slice %1150 {offsets = [0, 64], sizes = [2, 32], strides = [1, 1]} : vector<2x128xf32> to vector<2x32xf32>
    %1159 = math.tanh %1158 : vector<2x32xf32>
    %1160 = vector.extract_strided_slice %1157 {offsets = [0, 0], sizes = [2, 32], strides = [1, 1]} : vector<2x128xf32> to vector<2x32xf32>
    %1161 = vector.extract_strided_slice %1157 {offsets = [0, 32], sizes = [2, 32], strides = [1, 1]} : vector<2x128xf32> to vector<2x32xf32>
    %1162 = vector.extract_strided_slice %1157 {offsets = [0, 96], sizes = [2, 32], strides = [1, 1]} : vector<2x128xf32> to vector<2x32xf32>
    %1163 = arith.mulf %1161, %1140 : vector<2x32xf32>
    %1164 = arith.mulf %1160, %1159 : vector<2x32xf32>
    %1165 = arith.addf %1163, %1164 : vector<2x32xf32>
    %1166 = math.tanh %1165 : vector<2x32xf32>
    %1167 = arith.mulf %1162, %1166 : vector<2x32xf32>
    %c0_436 = arith.constant 0 : index
    %c0_437 = arith.constant 0 : index
    %1168 = vector.load %arg6[%c0_436, %c0_437] : memref<32x128xf32, #tpu.memory_space<vmem>>, vector<32x128xf32>
    %cst_438 = arith.constant dense<0.000000e+00> : vector<2x128xf32>
    %1169 = tpu.matmul %1167, %1168, %cst_438 {dimension_numbers = #tpu.dot_dimension_numbers<[1], [0], [0], [1], [0, 0, 1, 1], [], []>} : vector<2x32xf32>, vector<32x128xf32>, vector<2x128xf32> -> vector<2x128xf32>
    %c0_439 = arith.constant 0 : index
    %c0_440 = arith.constant 0 : index
    %1170 = vector.load %arg7[%c0_439, %c0_440] : memref<1x128xf32, #tpu.memory_space<vmem>>, vector<1x128xf32>
    %1171 = vector.broadcast %1170 : vector<1x128xf32> to vector<2x128xf32>
    %1172 = arith.addf %1169, %1171 : vector<2x128xf32>
    %c0_441 = arith.constant 0 : index
    %c0_442 = arith.constant 0 : index
    %1173 = vector.load %arg8[%c0_441, %c0_442] : memref<2x128xf32, #tpu.memory_space<vmem>>, vector<2x128xf32>
    tpu.vector_store %arg8[%c0_441, %c0_442], %1172 {strides = array<i32>} : memref<2x128xf32, #tpu.memory_space<vmem>>, vector<2x128xf32>,
    return
  }
}

</mosaic_0001>

<bundles_post_ra>
// kernel: basic_lstm_forward.1
= control target key start
LH: loop header
LB: loop body
LE: loop exit
PB: predicated region body
PF: predicated region fallthrough
CT: control target
= control target key end

     0   :  { %13 = vsyncpa [#allocation3], 0  ;;  %s8997_s0 = inlined_call_operand.vmem [shape: f32[16,16], index: 0, kind: input, shape index: {}]   ;;  %s8998_s1 = inlined_call_operand.vmem [shape: f32[16,128], index: 1, kind: input, shape index: {}]   ;;  %s8999_s2 = inlined_call_operand.vmem [shape: f32[32,128], index: 2, kind: input, shape index: {}]   ;;  %s9000_s3 = inlined_call_operand.hbm [shape: f32[1,128], index: 3, kind: input, shape index: {}]   ;;  %s9001_s4 = inlined_call_operand.hbm [shape: f32[5,64,128], index: 4, kind: input, shape index: {}]   ;;  %s9002_s5 = inlined_call_operand.hbm [shape: f32[5,1,128], index: 5, kind: input, shape index: {}]   ;;  %s9003_s6 = inlined_call_operand.hbm [shape: f32[32,128], index: 6, kind: input, shape index: {}]   ;;  %s9004_s7 = inlined_call_operand.hbm [shape: f32[1,128], index: 7, kind: input, shape index: {}]   ;;  %s9005_s8 = inlined_call_operand.hbm [shape: f32[2,128], index: 8, kind: output, shape index: {}]  }
   0x1   :  { %14 = vsyncpa [#allocation6], 0 }
   0x2   :  { %15 = vsyncpa [#allocation9], 0 }
   0x3   :  { %16 = vsyncpa [#allocation4], 0  ;;  %s7175_s27 = smov [#allocation5]  }
   0x4   :  { %s38_s28 = sshll.u32 %s7175_s27, 4  ;;  %s39_s28 = int_to_ptr.vmem [resolvable:$true] %s38_s28 }
   0x5   :  { %s7055_s29 = scalar_lea.vmem %s39_s28, 5120  ;;  %p7060_p1 = scmp.lt.s32.totalorder %s39_s28, %s39_s28 }
   0x6   :  { %p7056_p0 = scmp.ne.s32.totalorder %s39_s28, %s7055_s29  ;;  %p7061_p2 = scmp.lt.s32.totalorder %s7055_s29, %s7055_s29 }
   0x8   :  { %p7062_p3 = por %p7061_p2, %p7060_p1 }
   0xa   :  { %p7063_p4 = pnand %p7062_p3, %p7056_p0 }
   0xc   :  { %7066 = shalt.err (!%p7063_p4)
}
   0xd   :  { %s7176_s30 = smov 128   ;;  %s7177_s9 = smov 8  }
   0xe   :  { %44 = dma.hbm_to_vmem [thread:$0]  %s9001_s4, 5120, %s39_s28, [#allocation6], %s7176_s30, %s7176_s30, %s7177_s9  }
   0xf   :  { %s7178_s12 = smov [#allocation8]   ;;  %s7179_s14 = smov [#allocation2]  }
  0x10   :  { %s62_s13 = sshll.u32 %s7178_s12, 4  ;;  %s29_s15 = sshll.u32 %s7179_s14, 4  ;;  %s63_s13 = int_to_ptr.vmem [resolvable:$true] %s62_s13  ;;  %s30_s15 = int_to_ptr.vmem [resolvable:$true] %s29_s15 }
  0x11   :  { %s7075_s16 = scalar_lea.vmem %s63_s13, 512  ;;  %p7080_p6 = scmp.lt.s32.totalorder %s63_s13, %s63_s13 }
  0x12   :  { %p7076_p5 = scmp.ne.s32.totalorder %s63_s13, %s7075_s16  ;;  %p7081_p7 = scmp.lt.s32.totalorder %s7075_s16, %s7075_s16 }
  0x14   :  { %p7082_p8 = por %p7081_p7, %p7080_p6 }
  0x16   :  { %p7083_p9 = pnand %p7082_p8, %p7076_p5 }
  0x18   :  { %7086 = shalt.err (!%p7083_p9)
}
  0x19   :  { %68 = dma.hbm_to_vmem [thread:$0]  %s9003_s6, 512, %s63_s13, [#allocation9], %s7176_s30, %s7176_s30, %s7177_s9  }
  0x1a   :  { %s7095_s19 = scalar_lea.vmem %s30_s15, 16  ;;  %s7099_s4 = scalar_lea.vmem %s30_s15, 32 }
  0x1b   :  { %p7096_p10 = scmp.ne.s32.totalorder %s30_s15, %s7095_s19  ;;  %p7100_p11 = scmp.lt.s32.totalorder %s30_s15, %s30_s15 }
  0x1c   :  { %p7101_p12 = scmp.lt.s32.totalorder %s7099_s4, %s7095_s19 }
  0x1e   :  { %p7102_p13 = por %p7101_p12, %p7100_p11 }
  0x20   :  { %p7103_p0 = pnand %p7102_p13, %p7096_p10 }
  0x22   :  { %7106 = shalt.err (!%p7103_p0)
}
  0x23   :  { %32 = dma.hbm_to_vmem [thread:$0]  %s9000_s3, 16, %s30_s15, [#allocation3]  }
  0x24   :  { %s7180_s22 = smov [#allocation7]  }
  0x25   :  { %s50_s23 = sshll.u32 %s7180_s22, 4  ;;  %s51_s23 = int_to_ptr.vmem [resolvable:$true] %s50_s23 }
  0x26   :  { %s7115_s24 = scalar_lea.vmem %s51_s23, 80  ;;  %s7119_s25 = scalar_lea.vmem %s51_s23, 96 }
  0x27   :  { %p7116_p1 = scmp.ne.s32.totalorder %s51_s23, %s7115_s24  ;;  %p7120_p2 = scmp.lt.s32.totalorder %s51_s23, %s51_s23 }
  0x28   :  { %p7121_p3 = scmp.lt.s32.totalorder %s7119_s25, %s7115_s24 }
  0x2a   :  { %p7122_p4 = por %p7121_p3, %p7120_p2 }
  0x2c   :  { %p7123_p5 = pnand %p7122_p4, %p7116_p1 }
  0x2e   :  { %7126 = shalt.err (!%p7123_p5)
}
  0x2f   :  { %s7181_s6 = smov 16   ;;  %s7182_s26 = smov 1  }
  0x30   :  { %56 = dma.hbm_to_vmem [thread:$0]  %s9002_s5, 80, %s51_s23, [#allocation6], %s7181_s6, %s7181_s6, %s7182_s26  }
  0x31   :  { %s7183_s29 = smov [#allocation10]  }
  0x32   :  { %s75_s30 = sshll.u32 %s7183_s29, 4  ;;  %s76_s30 = int_to_ptr.vmem [resolvable:$true] %s75_s30 }
  0x33   :  { %s7135_s3 = scalar_lea.vmem %s76_s30, 16  ;;  %s7139_s9 = scalar_lea.vmem %s76_s30, 32 }
  0x34   :  { %p7136_p6 = scmp.ne.s32.totalorder %s76_s30, %s7135_s3  ;;  %p7140_p7 = scmp.lt.s32.totalorder %s76_s30, %s76_s30 }
  0x35   :  { %p7141_p8 = scmp.lt.s32.totalorder %s7139_s9, %s7135_s3 }
  0x37   :  { %p7142_p9 = por %p7141_p8, %p7140_p7 }
  0x39   :  { %p7143_p10 = pnand %p7142_p9, %p7136_p6 }
  0x3b   :  { %7146 = shalt.err (!%p7143_p10)
}
  0x3c   :  { %78 = dma.hbm_to_vmem [thread:$0]  %s9004_s7, 16, %s76_s30, [#allocation9]  }
  0x3d   :  { %7167 = dma.done.wait [#allocation3], 16  }
  0x3e   :  { %7168 = vsyncadd [#allocation3], 4294967280 }
  0x3f   :  { %7169 = dma.done.wait [#allocation6], 5200  }
  0x40   :  { %7170 = vsyncadd [#allocation6], 4294962096 }
  0x41   :  { %7171 = dma.done.wait [#allocation9], 528  }
  0x42   :  { %7172 = vsyncadd [#allocation9], 4294966768  ;;  %v9006_v0 = vmov 0.0   ;;  %vm7185_vm0 = vmmov 0   ;;  %v97_v1 = vld [vmem:[%s8998_s1 + $0x8] sm:$0xff]  ;;  %v7258_v2 = vld [vmem:[%s8999_s2 + $0x18] sm:$0xff] }
  0x43   :  { %5792 = vmatprep.subr.mxu1 %v9006_v0  ;;  %5800 = vmatprep.mubr.msk.f32.mxu1 %vm7185_vm0, %v9006_v0  ;;  %v96_v3 = vld [vmem:[%s8998_s1] sm:$0xff]  ;;  %v7267_v4 = vld [vmem:[%s8999_s2 + $0x10] sm:$0xff]  ;;  %vm105_vm1 = vcmask 130048   ;;  %v95_v6 = vld [vmem:[%s8997_s0 + $0x8] sm:$0xff]  ;;  %s7187_s24 = smov 32   ;;  %vm191_vm2 = vcmask 261120  }
  0x44   :  { %5785 = vmatprep.subr.mxu0 %v97_v1  ;;  %5793 = vmatpush3.msra.mxu1 %v7258_v2  ;;  %v94_v5 = vld [vmem:[%s8997_s0] sm:$0xff]  ;;  %v7280_v7 = vld [vmem:[%s8999_s2 + $0x8] sm:$0xff]  ;;  %s7186_s0 = smov 64   ;;  %v7318_v28 = vld [vmem:[#allocation5 + $0x30] sm:$0xff]  ;;  %vm409_vm3 = vcmask 523264  }
  0x45   :  { %5786 = vmatpush3.msra.mxu0 %v97_v1  ;;  %5794 = vmatprep.subr.mxu1 %v9006_v0  ;;  %v7286_v8 = vld [vmem:[%s8999_s2] sm:$0xff]  ;;  %v7322_v29 = vld [vmem:[#allocation5 + $0x28] sm:$0xff]  ;;  %v7334_v32 = vld [vmem:[#allocation5 + $0x10] sm:$0xff] }
  0x46   :  { %5787 = vmatprep.subr.mxu0 %v96_v3  ;;  %5795 = vmatpush3.msra.mxu1 %v7267_v4  ;;  %v5319_v9 = vld [vmem:[#allocation2] ss:$0 sm:$0xff]  ;;  %v7326_v30 = vld [vmem:[#allocation5 + $0x20] sm:$0xff]  ;;  %v7338_v34 = vld [vmem:[#allocation5 + $0x8] sm:$0xff] }
  0x47   :  { %5788 = vmatpush3.msra.mxu0 %v96_v3  ;;  %5789 = vmatprep.mubr.msk.f32.mxu0 %vm105_vm1, %v94_v5  ;;  %v7316_v27 = vld [vmem:[#allocation5 + $0x38] sm:$0xff]  ;;  %v7345_v35 = vld [vmem:[#allocation5] sm:$0xff] }
  0x48   :  { %5796 = vmatprep.subr.mxu1 %v9006_v0  ;;  %5790 = vmatmul.mubr.msk.f32.vlgmr.msra.gmra.mxu0 %vm105_vm1, %v95_v6  ;;  %v7330_v31 = vld [vmem:[#allocation5 + $0x18] sm:$0xff]  ;;  %v7365_v40 = vld [vmem:[#allocation7] ss:$0 sm:$0xff] }
  0x49   :  { %5797 = vmatpush3.msra.mxu1 %v7280_v7  ;;  %5803 = vmatprep.subr.mxu0 %v9006_v0 }
  0x4a   :  { %5798 = vmatprep.subr.mxu1 %v9006_v0  ;;  %5804 = vmatpush3.msra.mxu0 %v7258_v2 }
  0x4b   :  { %5799 = vmatpush3.msra.mxu1 %v7286_v8  ;;  %5805 = vmatprep.subr.mxu0 %v9006_v0 }
  0x4c   :  { %5801 = vmatmul.mubr.f32.vlgmr.msra.gmra.mxu1 %v9006_v0  ;;  %5814 = vmatprep.subr.mxu1 %v9006_v0 }
  0x4d   :  { %5806 = vmatpush3.msra.mxu0 %v7267_v4  ;;  %5811 = vmatprep.mubr.msk.f32.mxu0 %vm7185_vm0, %v9006_v0 }
  0x4e   :  { %5807 = vmatprep.subr.mxu0 %v9006_v0  ;;  %5830 = vmatprep.mubr.msk.f32.mxu1 %vm7185_vm0, %v9006_v0 }
  0x4f   :  { %5808 = vmatpush3.msra.mxu0 %v7280_v7  ;;  %5815 = vmatpush3.msra.mxu1 %v7316_v27 }
  0x50   :  { %5809 = vmatprep.subr.mxu0 %v9006_v0  ;;  %5816 = vmatprep.subr.mxu1 %v9006_v0 }
  0x51   :  { %5810 = vmatpush3.msra.mxu0 %v7286_v8  ;;  %5817 = vmatpush3.msra.mxu1 %v7318_v28 }
  0x52   :  { %5833 = vmatprep.subr.mxu0 %v9006_v0  ;;  %5818 = vmatprep.subr.mxu1 %v9006_v0 }
  0x53   :  { %5819 = vmatpush3.msra.mxu1 %v7322_v29 }
  0x54   :  { %5820 = vmatprep.subr.mxu1 %v9006_v0 }
  0x55   :  { %5821 = vmatpush3.msra.mxu1 %v7326_v30 }
  0x56   :  { %5822 = vmatprep.subr.mxu1 %v9006_v0 }
  0x57   :  { %5823 = vmatpush3.msra.mxu1 %v7330_v31 }
  0x58   :  { %5824 = vmatprep.subr.mxu1 %v9006_v0 }
  0x59   :  { %5825 = vmatpush3.msra.mxu1 %v7334_v32 }
  0x5a   :  { %5826 = vmatprep.subr.mxu1 %v9006_v0 }
  0x5b   :  { %5827 = vmatpush3.msra.mxu1 %v7338_v34 }
  0x5c   :  { %5828 = vmatprep.subr.mxu1 %v9006_v0 }
  0x5d   :  { %5829 = vmatpush3.msra.mxu1 %v7345_v35 }
  0x5e   :  { %5863 = vmatprep.subr.mxu1 %v9006_v0 }
 0x108   :  { %v5791_v10 = vpop.f32.mrf.mxu0 }
 0x109   :  { %v7306_v11 = vadd.f32 %v5791_v10, %v5319_v9  ;;  %v7380_v10 = vld [vmem:[#allocation5 + $0x78] sm:$0xff] }
 0x10a   :  { %v178_v12 = vpop.f32.mrf.mxu0 }
 0x10b   :  { %v7308_v13 = vadd.f32 %v5319_v9, %v178_v12  ;;  %v7382_v12 = vld [vmem:[#allocation5 + $0x70] sm:$0xff] }
 0x10c   :  { %v261_v14 = vpop.f32.mrf.mxu1 }
 0x10d   :  { %v265_v15 = vadd.f32 %v261_v14, %v7308_v13  ;;  %v7386_v14 = vld [vmem:[#allocation5 + $0x68] sm:$0xff] }
 0x10e   :  { %v5802_v16 = vpop.f32.mrf.mxu1 }
 0x10f   :  { %6665 = vtanh.f32 %v265_v15  ;;  %v266_v18 = vmul.f32 0.5, %v265_v15 }
 0x111   :  { %6667 = vtanh.f32 %v266_v18  ;;  %v7396_v18 = vld [vmem:[#allocation5 + $0x58] sm:$0xff] }
 0x11c   :  { %v6666_v17 = vpop.eup %6665 }
 0x11d   :  { %273 = vrot.lane.b32.xlu0 %v6666_v17, %s7186_s0  ;;  %v7391_v17 = vld [vmem:[#allocation5 + $0x60] sm:$0xff] }
 0x11e   :  { %v6668_v19 = vpop.eup %6667 }
 0x11f   :  { %v268_v20 = vadd.f32 1.0, %v6668_v19  ;;  %v7402_v19 = vld [vmem:[#allocation5 + $0x50] sm:$0xff] }
 0x121   :  { %v269_v21 = vmul.f32 0.5, %v268_v20  ;;  %v7406_v20 = vld [vmem:[#allocation5 + $0x48] sm:$0xff] }
 0x123   :  { %v271_v24 = vmul.f32 0.0, %v269_v21 }
 0x18f   :  { %v274_v22 = vpop.permute.xlu0 %273 }
 0x190   :  { %v276_v23 = vmul.f32 %v274_v22, %v269_v21 }
 0x192   :  { %278 = vrot.lane.b32.xlu0 %v276_v23, %s7187_s24 }
 0x204   :  { %v279_v25 = vpop.permute.xlu0 %278 }
 0x205   :  { %v7313_v26 = vadd.f32 %v279_v25, %v271_v24 }
 0x207   :  { %6669 = vtanh.f32 %v7313_v26  ;;  %v373_v62 = vrot.slane %v7313_v26, 6 }
 0x214   :  { %v6670_v33 = vpop.eup %6669 }
 0x215   :  { %284 = vrot.lane.b32.xlu1 %v6670_v33, %s7186_s0 }
 0x287   :  { %v285_v36 = vpop.permute.xlu1 %284 }
 0x288   :  { %v287_v37 = vmul.f32 %v285_v36, %v269_v21  ;;  %v7410_v21 = vld [vmem:[#allocation5 + $0x40] sm:$0xff] }
 0x28a   :  { %289 = vrot.lane.b32.xlu1 %v287_v37, %s7187_s24 }
 0x2fc   :  { %v290_v38 = vpop.permute.xlu1 %289 }
 0x2fd   :  { %v393_v39 = vsel %vm191_vm2, %v290_v38, 0.0  ;;  %5812 = vmatmul.mubr.msk.f32.vlgmr.msra.gmra.mxu0 %vm191_vm2, %v290_v38 }
 0x2fe   :  { %5831 = vmatmul.mubr.msk.f32.vlgmr.msra.gmra.mxu1 %vm409_vm3, %v393_v39  ;;  %5834 = vmatpush3.msra.mxu0 %v7258_v2 }
 0x2ff   :  { %5835 = vmatprep.subr.mxu0 %v9006_v0  ;;  %5841 = vmatprep.mubr.msk.f32.mxu0 %vm7185_vm0, %v9006_v0 }
 0x300   :  { %5836 = vmatpush3.msra.mxu0 %v7267_v4  ;;  %5879 = vmatprep.mubr.msk.f32.mxu1 %vm7185_vm0, %v9006_v0 }
 0x301   :  { %5837 = vmatprep.subr.mxu0 %v9006_v0  ;;  %5864 = vmatpush3.msra.mxu1 %v7380_v10 }
 0x302   :  { %5838 = vmatpush3.msra.mxu0 %v7280_v7  ;;  %5865 = vmatprep.subr.mxu1 %v9006_v0 }
 0x303   :  { %5839 = vmatprep.subr.mxu0 %v9006_v0  ;;  %5866 = vmatpush3.msra.mxu1 %v7382_v12 }
 0x304   :  { %5840 = vmatpush3.msra.mxu0 %v7286_v8  ;;  %5867 = vmatprep.subr.mxu1 %v9006_v0 }
 0x305   :  { %5844 = vmatprep.subr.mxu0 %v9006_v0  ;;  %5868 = vmatpush3.msra.mxu1 %v7386_v14 }
 0x306   :  { %5869 = vmatprep.subr.mxu1 %v9006_v0 }
 0x307   :  { %5870 = vmatpush3.msra.mxu1 %v7391_v17 }
 0x308   :  { %5871 = vmatprep.subr.mxu1 %v9006_v0 }
 0x309   :  { %5872 = vmatpush3.msra.mxu1 %v7396_v18 }
 0x30a   :  { %5873 = vmatprep.subr.mxu1 %v9006_v0 }
 0x30b   :  { %5874 = vmatpush3.msra.mxu1 %v7402_v19 }
 0x30c   :  { %5875 = vmatprep.subr.mxu1 %v9006_v0 }
 0x30d   :  { %5876 = vmatpush3.msra.mxu1 %v7406_v20 }
 0x30e   :  { %5877 = vmatprep.subr.mxu1 %v9006_v0 }
 0x30f   :  { %5878 = vmatpush3.msra.mxu1 %v7410_v21 }
 0x310   :  { %5893 = vmatprep.subr.mxu1 %v9006_v0 }
 0x3bd   :  { %v359_v41 = vpop.f32.mrf.mxu0 }
 0x3be   :  { %v364_v42 = vrot.slane %v359_v41, 6  ;;  %v479_v43 = vpop.f32.mrf.mxu1 }
 0x3bf   :  { %v480_v44 = vadd.f32 %v7365_v40, %v479_v43  ;;  %v5813_v45 = vpop.f32.mrf.mxu0 }
 0x3c0   :  { %v366_v46 = vadd.f32 %v364_v42, %v7308_v13  ;;  %v5832_v47 = vpop.f32.mrf.mxu1 }
 0x3c1   :  { %6671 = vtanh.f32 %v480_v44  ;;  %v483_v50 = vmul.f32 0.5, %v480_v44  ;;  %v7469_v47 = vld [vmem:[#allocation7 + $0x1] ss:$0 sm:$0xff] }
 0x3c2   :  { %6673 = vtanh.f32 %v366_v46  ;;  %v367_v51 = vmul.f32 0.5, %v366_v46 }
 0x3c3   :  { %6675 = vtanh.f32 %v483_v50 }
 0x3c4   :  { %6677 = vtanh.f32 %v367_v51 }
 0x3ce   :  { %v6672_v48 = vpop.eup %6671 }
 0x3cf   :  { %v6674_v49 = vpop.eup %6673  ;;  %490 = vrot.lane.b32.xlu1 %v6672_v48, %s7186_s0 }
 0x3d0   :  { %377 = vrot.lane.b32.xlu0 %v6674_v49, %s7186_s0  ;;  %v6676_v52 = vpop.eup %6675 }
 0x3d1   :  { %v6678_v53 = vpop.eup %6677  ;;  %v485_v54 = vadd.f32 1.0, %v6676_v52 }
 0x3d2   :  { %v369_v55 = vadd.f32 1.0, %v6678_v53 }
 0x3d3   :  { %v486_v56 = vmul.f32 0.5, %v485_v54 }
 0x3d4   :  { %v370_v58 = vmul.f32 0.5, %v369_v55 }
 0x3d5   :  { %v488_v63 = vmul.f32 0.0, %v486_v56 }
 0x3d6   :  { %v375_v3 = vmul.f32 %v373_v62, %v370_v58 }
 0x441   :  { %v491_v57 = vpop.permute.xlu1 %490 }
 0x442   :  { %v493_v59 = vmul.f32 %v491_v57, %v486_v56  ;;  %v378_v60 = vpop.permute.xlu0 %377 }
 0x443   :  { %v380_v61 = vmul.f32 %v378_v60, %v370_v58 }
 0x444   :  { %495 = vrot.lane.b32.xlu1 %v493_v59, %s7187_s24 }
 0x445   :  { %382 = vrot.lane.b32.xlu0 %v380_v61, %s7187_s24 }
 0x4b6   :  { %v496_v1 = vpop.permute.xlu1 %495 }
 0x4b7   :  { %v7374_v5 = vadd.f32 %v496_v1, %v488_v63  ;;  %v383_v6 = vpop.permute.xlu0 %382 }
 0x4b8   :  { %v7376_v9 = vadd.f32 %v383_v6, %v375_v3 }
 0x4b9   :  { %6679 = vtanh.f32 %v7374_v5 }
 0x4ba   :  { %6681 = vtanh.f32 %v7376_v9 }
 0x4c6   :  { %v6680_v15 = vpop.eup %6679 }
 0x4c7   :  { %v6682_v16 = vpop.eup %6681  ;;  %501 = vrot.lane.b32.xlu1 %v6680_v15, %s7186_s0 }
 0x4c8   :  { %388 = vrot.lane.b32.xlu0 %v6682_v16, %s7186_s0 }
 0x539   :  { %v502_v22 = vpop.permute.xlu1 %501 }
 0x53a   :  { %v389_v23 = vpop.permute.xlu0 %388  ;;  %v504_v25 = vmul.f32 %v502_v22, %v486_v56 }
 0x53b   :  { %v391_v24 = vmul.f32 %v389_v23, %v370_v58 }
 0x53c   :  { %v614_v33 = vrot.slane %v504_v25, 6 }
 0x53d   :  { %v506_v26 = vrot.slane %v391_v24, 2  ;;  %610 = vrot.lane.b32.xlu1 %v391_v24, %s7187_s24 }
 0x53f   :  { %507 = vrot.lane.b32.xlu0 %v506_v26, %s7187_s24 }
 0x541   :  { %715 = vrot.lane.b32.xlu1 %v504_v25, %s7187_s24 }
 0x543   :  { %615 = vrot.lane.b32.xlu0 %v614_v33, %s7186_s0 }
 0x5af   :  { %v611_v36 = vpop.permute.xlu1 %610 }
 0x5b1   :  { %v508_v37 = vpop.permute.xlu0 %507 }
 0x5b2   :  { %5842 = vmatmul.mubr.msk.f32.vlgmr.msra.gmra.mxu0 %vm191_vm2, %v508_v37  ;;  %v591_v37 = vrot.slane %v7376_v9, 6 }
 0x5b3   :  { %5845 = vmatpush3.msra.mxu0 %v7316_v27  ;;  %v716_v38 = vpop.permute.xlu1 %715  ;;  %5860 = vmatprep.mubr.msk.f32.mxu0 %vm7185_vm0, %v9006_v0 }
 0x5b4   :  { %5846 = vmatprep.subr.mxu0 %v9006_v0  ;;  %v718_v39 = vsel %vm191_vm2, %v716_v38, 0.0 }
 0x5b5   :  { %5847 = vmatpush3.msra.mxu0 %v7318_v28  ;;  %5880 = vmatmul.mubr.msk.f32.vlgmr.msra.gmra.mxu1 %vm409_vm3, %v718_v39  ;;  %v616_v41 = vpop.permute.xlu0 %615 }
 0x5b6   :  { %5848 = vmatprep.subr.mxu0 %v9006_v0  ;;  %5894 = vmatpush3.msra.mxu1 %v7316_v27  ;;  %v618_v42 = vsel %vm191_vm2, %v611_v36, %v616_v41 }
 0x5b7   :  { %5849 = vmatpush3.msra.mxu0 %v7322_v29  ;;  %5895 = vmatprep.subr.mxu1 %v9006_v0  ;;  %v620_v43 = vrot.slane %v618_v42, 2 }
 0x5b8   :  { %5850 = vmatprep.subr.mxu0 %v9006_v0  ;;  %5896 = vmatpush3.msra.mxu1 %v7318_v28 }
 0x5b9   :  { %5851 = vmatpush3.msra.mxu0 %v7326_v30  ;;  %5897 = vmatprep.subr.mxu1 %v9006_v0 }
 0x5ba   :  { %5852 = vmatprep.subr.mxu0 %v9006_v0  ;;  %5898 = vmatpush3.msra.mxu1 %v7322_v29 }
 0x5bb   :  { %5853 = vmatpush3.msra.mxu0 %v7330_v31  ;;  %5899 = vmatprep.subr.mxu1 %v9006_v0 }
 0x5bc   :  { %5854 = vmatprep.subr.mxu0 %v9006_v0  ;;  %5900 = vmatpush3.msra.mxu1 %v7326_v30 }
 0x5bd   :  { %5855 = vmatpush3.msra.mxu0 %v7334_v32  ;;  %5901 = vmatprep.subr.mxu1 %v9006_v0 }
 0x5be   :  { %5856 = vmatprep.subr.mxu0 %v9006_v0  ;;  %5902 = vmatpush3.msra.mxu1 %v7330_v31 }
 0x5bf   :  { %5857 = vmatpush3.msra.mxu0 %v7338_v34  ;;  %5903 = vmatprep.subr.mxu1 %v9006_v0 }
 0x5c0   :  { %5858 = vmatprep.subr.mxu0 %v9006_v0  ;;  %5904 = vmatpush3.msra.mxu1 %v7334_v32 }
 0x5c1   :  { %5859 = vmatpush3.msra.mxu0 %v7345_v35  ;;  %5905 = vmatprep.subr.mxu1 %v9006_v0 }
 0x5c2   :  { %5861 = vmatmul.mubr.msk.f32.vlgmr.msra.gmra.mxu0 %vm409_vm3, %v620_v43  ;;  %5882 = vmatprep.subr.mxu0 %v9006_v0 }
 0x5c3   :  { %5883 = vmatpush3.msra.mxu0 %v7258_v2  ;;  %5890 = vmatprep.mubr.msk.f32.mxu0 %vm7185_vm0, %v9006_v0 }
 0x5c4   :  { %5884 = vmatprep.subr.mxu0 %v9006_v0  ;;  %5906 = vmatpush3.msra.mxu1 %v7338_v34 }
 0x5c5   :  { %5885 = vmatpush3.msra.mxu0 %v7267_v4  ;;  %5907 = vmatprep.subr.mxu1 %v9006_v0 }
 0x5c6   :  { %5886 = vmatprep.subr.mxu0 %v9006_v0  ;;  %5908 = vmatpush3.msra.mxu1 %v7345_v35 }
 0x5c7   :  { %5887 = vmatpush3.msra.mxu0 %v7280_v7  ;;  %5909 = vmatprep.mubr.msk.f32.mxu1 %vm7185_vm0, %v9006_v0 }
 0x5c8   :  { %5888 = vmatprep.subr.mxu0 %v9006_v0  ;;  %5931 = vmatprep.subr.mxu1 %v9006_v0 }
 0x5c9   :  { %5889 = vmatpush3.msra.mxu0 %v7286_v8 }
 0x5ca   :  { %5912 = vmatprep.subr.mxu0 %v9006_v0 }
 0x672   :  { %v577_v44 = vpop.f32.mrf.mxu0 }
 0x673   :  { %v582_v45 = vrot.slane %v577_v44, 4 }
 0x674   :  { %v5843_v46 = vpop.f32.mrf.mxu0 }
 0x675   :  { %v584_v48 = vadd.f32 %v582_v45, %v7308_v13  ;;  %v805_v49 = vpop.f32.mrf.mxu1 }
 0x676   :  { %v806_v50 = vadd.f32 %v7469_v47, %v805_v49 }
 0x677   :  { %6683 = vtanh.f32 %v584_v48  ;;  %v5881_v51 = vpop.f32.mrf.mxu1  ;;  %v585_v58 = vmul.f32 0.5, %v584_v48 }
 0x678   :  { %6685 = vtanh.f32 %v806_v50  ;;  %v809_v59 = vmul.f32 0.5, %v806_v50 }
 0x682   :  { %v689_v52 = vpop.f32.mrf.mxu0 }
 0x683   :  { %v690_v53 = vadd.f32 %v7365_v40, %v689_v52 }
 0x684   :  { %v6684_v54 = vpop.eup %6683  ;;  %v5862_v55 = vpop.f32.mrf.mxu0 }
 0x685   :  { %6687 = vtanh.f32 %v690_v53  ;;  %595 = vrot.lane.b32.xlu0 %v6684_v54, %s7186_s0  ;;  %v6686_v56 = vpop.eup %6685  ;;  %v693_v60 = vmul.f32 0.5, %v690_v53 }
 0x686   :  { %6689 = vtanh.f32 %v585_v58 }
 0x687   :  { %6691 = vtanh.f32 %v809_v59 }
 0x688   :  { %6693 = vtanh.f32 %v693_v60 }
 0x689   :  { %816 = vrot.lane.b32.xlu0 %v6686_v56, %s7186_s0 }
 0x692   :  { %v6688_v57 = vpop.eup %6687 }
 0x693   :  { %700 = vrot.lane.b32.xlu1 %v6688_v57, %s7186_s0  ;;  %v6690_v61 = vpop.eup %6689 }
 0x694   :  { %v587_v62 = vadd.f32 1.0, %v6690_v61  ;;  %v6692_v63 = vpop.eup %6691 }
 0x695   :  { %v811_v1 = vadd.f32 1.0, %v6692_v63  ;;  %v6694_v24 = vpop.eup %6693  ;;  %v7518_v63 = vld [vmem:[#allocation5 + $0xb8] sm:$0xff] }
 0x696   :  { %v588_v3 = vmul.f32 0.5, %v587_v62  ;;  %v695_v25 = vadd.f32 1.0, %v6694_v24  ;;  %v7561_v24 = vld [vmem:[#allocation5 + $0x80] sm:$0xff] }
 0x697   :  { %v812_v16 = vmul.f32 0.5, %v811_v1 }
 0x698   :  { %v696_v26 = vmul.f32 0.5, %v695_v25  ;;  %v593_v38 = vmul.f32 %v591_v37, %v588_v3 }
 0x699   :  { %v814_v42 = vmul.f32 0.0, %v812_v16 }
 0x69a   :  { %v698_v45 = vmul.f32 %v696_v26, %v7374_v5 }
 0x6f7   :  { %v596_v6 = vpop.permute.xlu0 %595 }
 0x6f8   :  { %v598_v15 = vmul.f32 %v596_v6, %v588_v3  ;;  %v7523_v6 = vld [vmem:[#allocation5 + $0xb0] sm:$0xff] }
 0x6fa   :  { %600 = vrot.lane.b32.xlu1 %v598_v15, %s7187_s24 }
 0x6fb   :  { %v817_v22 = vpop.permute.xlu0 %816 }
 0x6fc   :  { %v819_v23 = vmul.f32 %v817_v22, %v812_v16  ;;  %v7536_v22 = vld [vmem:[#allocation5 + $0xa0] sm:$0xff] }
 0x6fe   :  { %821 = vrot.lane.b32.xlu1 %v819_v23, %s7187_s24  ;;  %v7542_v23 = vld [vmem:[#allocation5 + $0x98] sm:$0xff] }
 0x705   :  { %v701_v33 = vpop.permute.xlu1 %700 }
 0x706   :  { %v703_v36 = vmul.f32 %v701_v33, %v696_v26 }
 0x708   :  { %705 = vrot.lane.b32.xlu0 %v703_v36, %s7187_s24  ;;  %v7591_v36 = vld [vmem:[#allocation7 + $0x2] ss:$0 sm:$0xff] }
 0x76c   :  { %v601_v39 = vpop.permute.xlu1 %600 }
 0x76d   :  { %v7481_v41 = vadd.f32 %v601_v39, %v593_v38 }
 0x76f   :  { %6695 = vtanh.f32 %v7481_v41 }
 0x770   :  { %v822_v43 = vpop.permute.xlu1 %821 }
 0x771   :  { %v7484_v44 = vadd.f32 %v822_v43, %v814_v42 }
 0x773   :  { %6697 = vtanh.f32 %v7484_v44 }
 0x77a   :  { %v706_v46 = vpop.permute.xlu0 %705 }
 0x77b   :  { %v7488_v48 = vadd.f32 %v706_v46, %v698_v45 }
 0x77c   :  { %v6696_v49 = vpop.eup %6695 }
 0x77d   :  { %6699 = vtanh.f32 %v7488_v48  ;;  %606 = vrot.lane.b32.xlu0 %v6696_v49, %s7186_s0 }
 0x780   :  { %v6698_v9 = vpop.eup %6697 }
 0x781   :  { %827 = vrot.lane.b32.xlu0 %v6698_v9, %s7186_s0 }
 0x78a   :  { %v6700_v50 = vpop.eup %6699 }
 0x78b   :  { %711 = vrot.lane.b32.xlu1 %v6700_v50, %s7186_s0 }
 0x7ef   :  { %v607_v51 = vpop.permute.xlu0 %606 }
 0x7f0   :  { %v609_v52 = vmul.f32 %v607_v51, %v588_v3 }
 0x7f2   :  { %v832_v53 = vrot.slane %v609_v52, 4  ;;  %936 = vrot.lane.b32.xlu0 %v609_v52, %s7187_s24 }
 0x7f3   :  { %v828_v55 = vpop.permute.xlu0 %827 }
 0x7f4   :  { %833 = vrot.lane.b32.xlu1 %v832_v53, %s7187_s24  ;;  %v830_v57 = vmul.f32 %v828_v55, %v812_v16  ;;  %v7531_v16 = vld [vmem:[#allocation5 + $0xa8] sm:$0xff] }
 0x7fd   :  { %v712_v5 = vpop.permute.xlu1 %711 }
 0x7fe   :  { %v714_v54 = vmul.f32 %v712_v5, %v696_v26 }
 0x800   :  { %v940_v56 = vrot.slane %v714_v54, 4  ;;  %1041 = vrot.lane.b32.xlu0 %v714_v54, %s7187_s24 }
 0x802   :  { %941 = vrot.lane.b32.xlu1 %v940_v56, %s7186_s0 }
 0x804   :  { %1144 = vrot.lane.b32.xlu0 %v830_v57, %s7187_s24 }
 0x806   :  { %1045 = vrot.lane.b32.xlu1 %v830_v57, %s7186_s0 }
 0x864   :  { %v937_v59 = vpop.permute.xlu0 %936 }
 0x866   :  { %v834_v58 = vpop.permute.xlu1 %833 }
 0x867   :  { %5891 = vmatmul.mubr.msk.f32.vlgmr.msra.gmra.mxu0 %vm191_vm2, %v834_v58 }
 0x868   :  { %5913 = vmatpush3.msra.mxu0 %v7380_v10  ;;  %5928 = vmatprep.mubr.msk.f32.mxu0 %vm7185_vm0, %v9006_v0 }
 0x869   :  { %5914 = vmatprep.subr.mxu0 %v9006_v0 }
 0x86a   :  { %5915 = vmatpush3.msra.mxu0 %v7382_v12 }
 0x86b   :  { %5916 = vmatprep.subr.mxu0 %v9006_v0 }
 0x86c   :  { %5917 = vmatpush3.msra.mxu0 %v7386_v14 }
 0x86d   :  { %5918 = vmatprep.subr.mxu0 %v9006_v0 }
 0x86e   :  { %5919 = vmatpush3.msra.mxu0 %v7391_v17 }
 0x86f   :  { %5920 = vmatprep.subr.mxu0 %v9006_v0 }
 0x870   :  { %5921 = vmatpush3.msra.mxu0 %v7396_v18 }
 0x871   :  { %5922 = vmatprep.subr.mxu0 %v9006_v0 }
 0x872   :  { %5923 = vmatpush3.msra.mxu0 %v7402_v19  ;;  %v1042_v1 = vpop.permute.xlu0 %1041 }
 0x873   :  { %5924 = vmatprep.subr.mxu0 %v9006_v0 }
 0x874   :  { %v942_v60 = vpop.permute.xlu1 %941  ;;  %5925 = vmatpush3.msra.mxu0 %v7406_v20 }
 0x875   :  { %v944_v61 = vsel %vm191_vm2, %v937_v59, %v942_v60  ;;  %5926 = vmatprep.subr.mxu0 %v9006_v0 }
 0x876   :  { %v946_v62 = vrot.slane %v944_v61, 4  ;;  %5927 = vmatpush3.msra.mxu0 %v7410_v21 }
 0x877   :  { %5950 = vmatprep.subr.mxu0 %v9006_v0 }
 0x878   :  { %v1046_v3 = vpop.permute.xlu1 %1045  ;;  %5910 = vmatmul.mubr.msk.f32.vlgmr.msra.gmra.mxu1 %vm409_vm3, %v946_v62 }
 0x879   :  { %v1048_v15 = vsel %vm191_vm2, %v1042_v1, %v1046_v3  ;;  %5932 = vmatpush3.msra.mxu1 %v7518_v63  ;;  %5947 = vmatprep.mubr.msk.f32.mxu1 %vm7185_vm0, %v9006_v0 }
 0x87a   :  { %5933 = vmatprep.subr.mxu1 %v9006_v0  ;;  %5929 = vmatmul.mubr.msk.f32.vlgmr.msra.gmra.mxu0 %vm409_vm3, %v1048_v15 }
 0x87b   :  { %5934 = vmatpush3.msra.mxu1 %v7523_v6  ;;  %5951 = vmatpush3.msra.mxu0 %v7258_v2  ;;  %v7548_v2 = vld [vmem:[#allocation5 + $0x90] sm:$0xff] }
 0x87c   :  { %5935 = vmatprep.subr.mxu1 %v9006_v0  ;;  %5952 = vmatprep.subr.mxu0 %v9006_v0 }
 0x87d   :  { %5936 = vmatpush3.msra.mxu1 %v7531_v16  ;;  %5953 = vmatpush3.msra.mxu0 %v7267_v4  ;;  %v7554_v4 = vld [vmem:[#allocation5 + $0x88] sm:$0xff] }
 0x87e   :  { %5937 = vmatprep.subr.mxu1 %v9006_v0  ;;  %5954 = vmatprep.subr.mxu0 %v9006_v0 }
 0x87f   :  { %5938 = vmatpush3.msra.mxu1 %v7536_v22  ;;  %5955 = vmatpush3.msra.mxu0 %v7280_v7  ;;  %v1145_v7 = vpop.permute.xlu0 %1144 }
 0x880   :  { %5939 = vmatprep.subr.mxu1 %v9006_v0  ;;  %5956 = vmatprep.subr.mxu0 %v9006_v0 }
 0x881   :  { %5940 = vmatpush3.msra.mxu1 %v7542_v23  ;;  %5957 = vmatpush3.msra.mxu0 %v7286_v8  ;;  %v1147_v8 = vsel %vm191_vm2, %v1145_v7, 0.0 }
 0x882   :  { %5941 = vmatprep.subr.mxu1 %v9006_v0  ;;  %5958 = vmatprep.mubr.msk.f32.mxu0 %vm7185_vm0, %v9006_v0 }
 0x883   :  { %5942 = vmatpush3.msra.mxu1 %v7548_v2  ;;  %5961 = vmatprep.subr.mxu0 %v9006_v0 }
 0x884   :  { %5943 = vmatprep.subr.mxu1 %v9006_v0 }
 0x885   :  { %5944 = vmatpush3.msra.mxu1 %v7554_v4 }
 0x886   :  { %5945 = vmatprep.subr.mxu1 %v9006_v0 }
 0x887   :  { %5946 = vmatpush3.msra.mxu1 %v7561_v24 }
 0x888   :  { %5948 = vmatmul.mubr.msk.f32.vlgmr.msra.gmra.mxu1 %vm409_vm3, %v1147_v8  ;;  %5980 = vmatprep.subr.mxu1 %v9006_v0 }
 0x889   :  { %5981 = vmatpush3.msra.mxu1 %v7380_v10  ;;  %5996 = vmatprep.mubr.msk.f32.mxu1 %vm7185_vm0, %v9006_v0 }
 0x88a   :  { %5982 = vmatprep.subr.mxu1 %v9006_v0 }
 0x88b   :  { %5983 = vmatpush3.msra.mxu1 %v7382_v12 }
 0x88c   :  { %5984 = vmatprep.subr.mxu1 %v9006_v0 }
 0x88d   :  { %5985 = vmatpush3.msra.mxu1 %v7386_v14 }
 0x88e   :  { %5986 = vmatprep.subr.mxu1 %v9006_v0 }
 0x88f   :  { %5987 = vmatpush3.msra.mxu1 %v7391_v17 }
 0x890   :  { %5988 = vmatprep.subr.mxu1 %v9006_v0 }
 0x891   :  { %5989 = vmatpush3.msra.mxu1 %v7396_v18 }
 0x892   :  { %5990 = vmatprep.subr.mxu1 %v9006_v0 }
 0x893   :  { %5991 = vmatpush3.msra.mxu1 %v7402_v19 }
 0x894   :  { %5992 = vmatprep.subr.mxu1 %v9006_v0 }
 0x895   :  { %5993 = vmatpush3.msra.mxu1 %v7406_v20 }
 0x896   :  { %5994 = vmatprep.subr.mxu1 %v9006_v0 }
 0x897   :  { %5995 = vmatpush3.msra.mxu1 %v7410_v21 }
 0x898   :  { %6018 = vmatprep.subr.mxu1 %v9006_v0 }
 0x927   :  { %v903_v10 = vpop.f32.mrf.mxu0 }
 0x928   :  { %v908_v12 = vrot.slane %v903_v10, 2 }
 0x929   :  { %v5892_v14 = vpop.f32.mrf.mxu0 }
 0x92a   :  { %v910_v17 = vadd.f32 %v908_v12, %v7308_v13  ;;  %v917_v12 = vrot.slane %v7481_v41, 6 }
 0x92c   :  { %6701 = vtanh.f32 %v910_v17  ;;  %v911_v45 = vmul.f32 0.5, %v910_v17 }
 0x938   :  { %v1015_v18 = vpop.f32.mrf.mxu1 }
 0x939   :  { %v6702_v25 = vpop.eup %6701  ;;  %v1016_v19 = vadd.f32 %v7365_v40, %v1015_v18 }
 0x93a   :  { %v5911_v26 = vpop.f32.mrf.mxu1  ;;  %v1118_v33 = vpop.f32.mrf.mxu0  ;;  %921 = vrot.lane.b32.xlu1 %v6702_v25, %s7186_s0 }
 0x93b   :  { %6703 = vtanh.f32 %v1016_v19  ;;  %v1119_v20 = vadd.f32 %v7469_v47, %v1118_v33  ;;  %v1019_v46 = vmul.f32 0.5, %v1016_v19 }
 0x93c   :  { %v5930_v21 = vpop.f32.mrf.mxu0 }
 0x93d   :  { %6705 = vtanh.f32 %v1119_v20  ;;  %v1122_v9 = vmul.f32 0.5, %v1119_v20 }
 0x948   :  { %v6704_v37 = vpop.eup %6703  ;;  %v1234_v38 = vpop.f32.mrf.mxu1 }
 0x949   :  { %v1235_v13 = vadd.f32 %v7591_v36, %v1234_v38  ;;  %1026 = vrot.lane.b32.xlu0 %v6704_v37, %s7186_s0 }
 0x94a   :  { %v5949_v39 = vpop.f32.mrf.mxu1  ;;  %v6706_v42 = vpop.eup %6705 }
 0x94b   :  { %6707 = vtanh.f32 %v1235_v13  ;;  %1129 = vrot.lane.b32.xlu1 %v6706_v42, %s7186_s0  ;;  %v1238_v5 = vmul.f32 0.5, %v1235_v13 }
 0x94c   :  { %6709 = vtanh.f32 %v911_v45 }
 0x94d   :  { %6711 = vtanh.f32 %v1019_v46 }
 0x94e   :  { %6713 = vtanh.f32 %v1122_v9 }
 0x94f   :  { %6715 = vtanh.f32 %v1238_v5 }
 0x958   :  { %v6708_v43 = vpop.eup %6707 }
 0x959   :  { %1245 = vrot.lane.b32.xlu0 %v6708_v43, %s7186_s0  ;;  %v6710_v49 = vpop.eup %6709 }
 0x95a   :  { %v913_v50 = vadd.f32 1.0, %v6710_v49  ;;  %v6712_v54 = vpop.eup %6711 }
 0x95b   :  { %v6714_v55 = vpop.eup %6713  ;;  %v1021_v56 = vadd.f32 1.0, %v6712_v54 }
 0x95c   :  { %v914_v51 = vmul.f32 0.5, %v913_v50  ;;  %v1124_v57 = vadd.f32 1.0, %v6714_v55  ;;  %v6716_v3 = vpop.eup %6715 }
 0x95d   :  { %v1022_v58 = vmul.f32 0.5, %v1021_v56  ;;  %v1240_v15 = vadd.f32 1.0, %v6716_v3  ;;  %v7669_v56 = vld [vmem:[#allocation5 + $0xe0] sm:$0xff] }
 0x95e   :  { %v1125_v61 = vmul.f32 0.5, %v1124_v57  ;;  %v919_v14 = vmul.f32 %v917_v12, %v914_v51  ;;  %v7675_v57 = vld [vmem:[#allocation5 + $0xd8] sm:$0xff]  ;;  %v7730_v12 = vld [vmem:[%s8999_s2 + $0x8] sm:$0xff] }
 0x95f   :  { %v1241_v7 = vmul.f32 0.5, %v1240_v15  ;;  %v1024_v25 = vmul.f32 %v1022_v58, %v7488_v48 }
 0x960   :  { %v1127_v20 = vmul.f32 %v1125_v61, %v7484_v44 }
 0x961   :  { %v1243_v37 = vmul.f32 0.0, %v1241_v7 }
 0x9ac   :  { %v922_v52 = vpop.permute.xlu1 %921 }
 0x9ad   :  { %v924_v53 = vmul.f32 %v922_v52, %v914_v51 }
 0x9af   :  { %926 = vrot.lane.b32.xlu1 %v924_v53, %s7187_s24 }
 0x9bb   :  { %v1027_v59 = vpop.permute.xlu0 %1026 }
 0x9bc   :  { %v1029_v60 = vmul.f32 %v1027_v59, %v1022_v58  ;;  %v7681_v59 = vld [vmem:[#allocation5 + $0xd0] sm:$0xff] }
 0x9bd   :  { %v1130_v62 = vpop.permute.xlu1 %1129 }
 0x9be   :  { %1031 = vrot.lane.b32.xlu0 %v1029_v60, %s7187_s24  ;;  %v1132_v1 = vmul.f32 %v1130_v62, %v1125_v61 }
 0x9c0   :  { %1134 = vrot.lane.b32.xlu1 %v1132_v1, %s7187_s24  ;;  %v7693_v1 = vld [vmem:[#allocation5 + $0xc0] sm:$0xff] }
 0x9cb   :  { %v1246_v8 = vpop.permute.xlu0 %1245 }
 0x9cc   :  { %v1248_v10 = vmul.f32 %v1246_v8, %v1241_v7  ;;  %v7719_v8 = vld [vmem:[%s8999_s2 + $0x10] sm:$0xff] }
 0x9ce   :  { %1250 = vrot.lane.b32.xlu0 %v1248_v10, %s7187_s24  ;;  %v7722_v10 = vld [vmem:[#allocation5 + $0x38] sm:$0xff] }
 0xa21   :  { %v927_v17 = vpop.permute.xlu1 %926 }
 0xa22   :  { %v7602_v18 = vadd.f32 %v927_v17, %v919_v14  ;;  %v7733_v14 = vld [vmem:[#allocation5 + $0x30] sm:$0xff]  ;;  %v7741_v17 = vld [vmem:[%s8999_s2] sm:$0xff] }
 0xa24   :  { %6717 = vtanh.f32 %v7602_v18 }
 0xa30   :  { %v1032_v19 = vpop.permute.xlu0 %1031 }
 0xa31   :  { %v6718_v26 = vpop.eup %6717  ;;  %v7606_v33 = vadd.f32 %v1032_v19, %v1024_v25  ;;  %v7744_v25 = vld [vmem:[#allocation5 + $0x28] sm:$0xff]  ;;  %v7749_v19 = vld [vmem:[#allocation5 + $0x20] sm:$0xff] }
 0xa32   :  { %932 = vrot.lane.b32.xlu1 %v6718_v26, %s7186_s0  ;;  %v1135_v21 = vpop.permute.xlu1 %1134  ;;  %v7755_v26 = vld [vmem:[#allocation5 + $0x18] sm:$0xff] }
 0xa33   :  { %6719 = vtanh.f32 %v7606_v33  ;;  %v7611_v41 = vadd.f32 %v1135_v21, %v1127_v20  ;;  %v7759_v20 = vld [vmem:[#allocation5 + $0x10] sm:$0xff]  ;;  %v7763_v21 = vld [vmem:[#allocation5 + $0x8] sm:$0xff] }
 0xa35   :  { %6721 = vtanh.f32 %v7611_v41 }
 0xa40   :  { %v6720_v38 = vpop.eup %6719  ;;  %v1251_v13 = vpop.permute.xlu0 %1250 }
 0xa41   :  { %v7614_v39 = vadd.f32 %v1251_v13, %v1243_v37  ;;  %1037 = vrot.lane.b32.xlu0 %v6720_v38, %s7186_s0  ;;  %v7767_v37 = vld [vmem:[#allocation5] sm:$0xff] }
 0xa42   :  { %v6722_v48 = vpop.eup %6721 }
 0xa43   :  { %6723 = vtanh.f32 %v7614_v39  ;;  %1140 = vrot.lane.b32.xlu1 %v6722_v48, %s7186_s0 }
 0xa50   :  { %v6724_v44 = vpop.eup %6723 }
 0xa51   :  { %1256 = vrot.lane.b32.xlu0 %v6724_v44, %s7186_s0 }
 0xaa4   :  { %v933_v42 = vpop.permute.xlu1 %932 }
 0xaa5   :  { %v935_v43 = vmul.f32 %v933_v42, %v914_v51 }
 0xaa7   :  { %v1261_v45 = vrot.slane %v935_v43, 6  ;;  %1362 = vrot.lane.b32.xlu0 %v935_v43, %s7187_s24 }
 0xaa9   :  { %1262 = vrot.lane.b32.xlu1 %v1261_v45, %s7187_s24 }
 0xab3   :  { %v1038_v46 = vpop.permute.xlu0 %1037 }
 0xab4   :  { %v1040_v49 = vmul.f32 %v1038_v46, %v1022_v58 }
 0xab5   :  { %v1141_v50 = vpop.permute.xlu1 %1140 }
 0xab6   :  { %v1366_v9 = vrot.slane %v1040_v49, 2  ;;  %1467 = vrot.lane.b32.xlu0 %v1040_v49, %s7187_s24  ;;  %v1143_v52 = vmul.f32 %v1141_v50, %v1125_v61  ;;  %v7687_v61 = vld [vmem:[#allocation5 + $0xc8] sm:$0xff] }
 0xab8   :  { %1367 = vrot.lane.b32.xlu1 %v1366_v9, %s7186_s0 }
 0xaba   :  { %1570 = vrot.lane.b32.xlu0 %v1143_v52, %s7187_s24 }
 0xabc   :  { %1471 = vrot.lane.b32.xlu1 %v1143_v52, %s7186_s0 }
 0xac3   :  { %v1257_v53 = vpop.permute.xlu0 %1256 }
 0xac4   :  { %v1259_v51 = vmul.f32 %v1257_v53, %v1241_v7  ;;  %v7709_v7 = vld [vmem:[%s8999_s2 + $0x18] sm:$0xff]  ;;  %v7775_v53 = vld [vmem:[#allocation7 + $0x3] ss:$0 sm:$0xff]  ;;  %s7188_s2 = smov [#allocation11]  }
 0xac5   :  { %s5308_s9 = sshll.u32 %s7188_s2, 4  ;;  %s5309_s9 = int_to_ptr.vmem [resolvable:$true] %s5308_s9 }
 0xac6   :  { %1673 = vrot.lane.b32.xlu0 %v1259_v51, %s7187_s24  ;;  %1574 = vrot.lane.b32.xlu1 %v1259_v51, %s7186_s0  ;;  %s7147_s10 = scalar_lea.vmem %s5309_s9, 32  ;;  %p7152_p12 = scmp.lt.s32.totalorder %s5309_s9, %s5309_s9 }
 0xac7   :  { %p7148_p11 = scmp.ne.s32.totalorder %s5309_s9, %s7147_s10  ;;  %p7153_p13 = scmp.lt.s32.totalorder %s7147_s10, %s7147_s10 }
 0xac9   :  { %p7154_p0 = por %p7153_p13, %p7152_p12 }
 0xacb   :  { %p7155_p1 = pnand %p7154_p0, %p7148_p11 }
 0xb1b   :  { %v1263_v5 = vpop.permute.xlu1 %1262 }
 0xb1c   :  { %5959 = vmatmul.mubr.msk.f32.vlgmr.msra.gmra.mxu0 %vm191_vm2, %v1263_v5 }
 0xb1d   :  { %5962 = vmatpush3.msra.mxu0 %v7316_v27  ;;  %5977 = vmatprep.mubr.msk.f32.mxu0 %vm7185_vm0, %v9006_v0  ;;  %v1363_v27 = vpop.permute.xlu0 %1362 }
 0xb1e   :  { %5963 = vmatprep.subr.mxu0 %v9006_v0 }
 0xb1f   :  { %5964 = vmatpush3.msra.mxu0 %v7318_v28 }
 0xb20   :  { %5965 = vmatprep.subr.mxu0 %v9006_v0 }
 0xb21   :  { %5966 = vmatpush3.msra.mxu0 %v7322_v29 }
 0xb22   :  { %5967 = vmatprep.subr.mxu0 %v9006_v0 }
 0xb23   :  { %5968 = vmatpush3.msra.mxu0 %v7326_v30 }
 0xb24   :  { %5969 = vmatprep.subr.mxu0 %v9006_v0 }
 0xb25   :  { %5970 = vmatpush3.msra.mxu0 %v7330_v31 }
 0xb26   :  { %5971 = vmatprep.subr.mxu0 %v9006_v0 }
 0xb27   :  { %5972 = vmatpush3.msra.mxu0 %v7334_v32  ;;  %v7649_v32 = vld [vmem:[#allocation5 + $0xf8] sm:$0xff] }
 0xb28   :  { %5973 = vmatprep.subr.mxu0 %v9006_v0  ;;  %v1468_v31 = vpop.permute.xlu0 %1467 }
 0xb29   :  { %5974 = vmatpush3.msra.mxu0 %v7338_v34  ;;  %v7657_v34 = vld [vmem:[#allocation5 + $0xf0] sm:$0xff] }
 0xb2a   :  { %v1368_v28 = vpop.permute.xlu1 %1367  ;;  %5975 = vmatprep.subr.mxu0 %v9006_v0 }
 0xb2b   :  { %v1370_v29 = vsel %vm191_vm2, %v1363_v27, %v1368_v28  ;;  %5976 = vmatpush3.msra.mxu0 %v7345_v35  ;;  %v7663_v35 = vld [vmem:[#allocation5 + $0xe8] sm:$0xff] }
 0xb2c   :  { %v1372_v30 = vrot.slane %v1370_v29, 6  ;;  %5999 = vmatprep.subr.mxu0 %v9006_v0  ;;  %v1571_v58 = vpop.permute.xlu0 %1570 }
 0xb2e   :  { %v1472_v54 = vpop.permute.xlu1 %1471  ;;  %5978 = vmatmul.mubr.msk.f32.vlgmr.msra.gmra.mxu0 %vm409_vm3, %v1372_v30 }
 0xb2f   :  { %v1474_v55 = vsel %vm191_vm2, %v1468_v31, %v1472_v54  ;;  %6000 = vmatpush3.msra.mxu0 %v7518_v63  ;;  %6015 = vmatprep.mubr.msk.f32.mxu0 %vm7185_vm0, %v9006_v0 }
 0xb30   :  { %6001 = vmatprep.subr.mxu0 %v9006_v0  ;;  %5997 = vmatmul.mubr.msk.f32.vlgmr.msra.gmra.mxu1 %vm409_vm3, %v1474_v55 }
 0xb31   :  { %6002 = vmatpush3.msra.mxu0 %v7523_v6  ;;  %6019 = vmatpush3.msra.mxu1 %v7649_v32 }
 0xb32   :  { %6003 = vmatprep.subr.mxu0 %v9006_v0  ;;  %6020 = vmatprep.subr.mxu1 %v9006_v0 }
 0xb33   :  { %6004 = vmatpush3.msra.mxu0 %v7531_v16  ;;  %6021 = vmatpush3.msra.mxu1 %v7657_v34 }
 0xb34   :  { %6005 = vmatprep.subr.mxu0 %v9006_v0  ;;  %6022 = vmatprep.subr.mxu1 %v9006_v0 }
 0xb35   :  { %6006 = vmatpush3.msra.mxu0 %v7536_v22  ;;  %6023 = vmatpush3.msra.mxu1 %v7663_v35 }
 0xb36   :  { %6007 = vmatprep.subr.mxu0 %v9006_v0  ;;  %6024 = vmatprep.subr.mxu1 %v9006_v0 }
 0xb37   :  { %6008 = vmatpush3.msra.mxu0 %v7542_v23  ;;  %6025 = vmatpush3.msra.mxu1 %v7669_v56 }
 0xb38   :  { %6009 = vmatprep.subr.mxu0 %v9006_v0  ;;  %6026 = vmatprep.subr.mxu1 %v9006_v0  ;;  %v1575_v60 = vpop.permute.xlu1 %1574  ;;  %v1674_v62 = vpop.permute.xlu0 %1673 }
 0xb39   :  { %6010 = vmatpush3.msra.mxu0 %v7548_v2  ;;  %6027 = vmatpush3.msra.mxu1 %v7675_v57  ;;  %v1577_v3 = vsel %vm191_vm2, %v1571_v58, %v1575_v60  ;;  %v1676_v15 = vsel %vm191_vm2, %v1674_v62, 0.0 }
 0xb3a   :  { %6011 = vmatprep.subr.mxu0 %v9006_v0  ;;  %6028 = vmatprep.subr.mxu1 %v9006_v0 }
 0xb3b   :  { %6012 = vmatpush3.msra.mxu0 %v7554_v4  ;;  %6029 = vmatpush3.msra.mxu1 %v7681_v59 }
 0xb3c   :  { %6013 = vmatprep.subr.mxu0 %v9006_v0  ;;  %6030 = vmatprep.subr.mxu1 %v9006_v0 }
 0xb3d   :  { %6014 = vmatpush3.msra.mxu0 %v7561_v24  ;;  %6031 = vmatpush3.msra.mxu1 %v7687_v61 }
 0xb3e   :  { %6016 = vmatmul.mubr.msk.f32.vlgmr.msra.gmra.mxu0 %vm409_vm3, %v1577_v3  ;;  %6032 = vmatprep.subr.mxu1 %v9006_v0 }
 0xb3f   :  { %6033 = vmatpush3.msra.mxu1 %v7693_v1  ;;  %6034 = vmatprep.mubr.msk.f32.mxu1 %vm7185_vm0, %v9006_v0 }
 0xb40   :  { %6035 = vmatmul.mubr.msk.f32.vlgmr.msra.gmra.mxu1 %vm409_vm3, %v1676_v15  ;;  %6037 = vmatprep.subr.mxu0 %v9006_v0 }
 0xb41   :  { %6038 = vmatpush3.msra.mxu0 %v7709_v7  ;;  %6045 = vmatprep.mubr.msk.f32.mxu0 %vm7185_vm0, %v9006_v0 }
 0xb42   :  { %6039 = vmatprep.subr.mxu0 %v9006_v0  ;;  %6048 = vmatprep.subr.mxu1 %v9006_v0 }
 0xb43   :  { %6040 = vmatpush3.msra.mxu0 %v7719_v8  ;;  %6049 = vmatpush3.msra.mxu1 %v7722_v10 }
 0xb44   :  { %6041 = vmatprep.subr.mxu0 %v9006_v0  ;;  %6050 = vmatprep.subr.mxu1 %v9006_v0 }
 0xb45   :  { %6042 = vmatpush3.msra.mxu0 %v7730_v12  ;;  %6051 = vmatpush3.msra.mxu1 %v7733_v14 }
 0xb46   :  { %6043 = vmatprep.subr.mxu0 %v9006_v0  ;;  %6052 = vmatprep.subr.mxu1 %v9006_v0 }
 0xb47   :  { %6044 = vmatpush3.msra.mxu0 %v7741_v17  ;;  %6053 = vmatpush3.msra.mxu1 %v7744_v25 }
 0xb48   :  { %6067 = vmatprep.subr.mxu0 %v9006_v0  ;;  %6054 = vmatprep.subr.mxu1 %v9006_v0 }
 0xb49   :  { %6055 = vmatpush3.msra.mxu1 %v7749_v19  ;;  %6064 = vmatprep.mubr.msk.f32.mxu1 %vm7185_vm0, %v9006_v0 }
 0xb4a   :  { %6056 = vmatprep.subr.mxu1 %v9006_v0 }
 0xb4b   :  { %6057 = vmatpush3.msra.mxu1 %v7755_v26 }
 0xb4c   :  { %6058 = vmatprep.subr.mxu1 %v9006_v0 }
 0xb4d   :  { %6059 = vmatpush3.msra.mxu1 %v7759_v20 }
 0xb4e   :  { %6060 = vmatprep.subr.mxu1 %v9006_v0 }
 0xb4f   :  { %6061 = vmatpush3.msra.mxu1 %v7763_v21 }
 0xb50   :  { %6062 = vmatprep.subr.mxu1 %v9006_v0 }
 0xb51   :  { %6063 = vmatpush3.msra.mxu1 %v7767_v37 }
 0xb52   :  { %6086 = vmatprep.subr.mxu1 %v9006_v0 }
 0xbdc   :  { %v1332_v38 = vpop.f32.mrf.mxu0 }
 0xbdd   :  { %v1336_v13 = vadd.f32 %v1332_v38, %v7306_v11 }
 0xbde   :  { %v5960_v48 = vpop.f32.mrf.mxu0 }
 0xbdf   :  { %6725 = vtanh.f32 %v1336_v13  ;;  %v1337_v31 = vmul.f32 0.5, %v1336_v13 }
 0xbec   :  { %v6726_v44 = vpop.eup %6725 }
 0xbed   :  { %1347 = vrot.lane.b32.xlu1 %v6726_v44, %s7186_s0 }
 0xbee   :  { %v1441_v42 = vpop.f32.mrf.mxu0 }
 0xbef   :  { %v1442_v43 = vadd.f32 %v7365_v40, %v1441_v42 }
 0xbf0   :  { %v5979_v45 = vpop.f32.mrf.mxu0  ;;  %v1544_v46 = vpop.f32.mrf.mxu1 }
 0xbf1   :  { %6727 = vtanh.f32 %v1442_v43  ;;  %v1545_v49 = vadd.f32 %v7469_v47, %v1544_v46  ;;  %v1445_v55 = vmul.f32 0.5, %v1442_v43 }
 0xbf2   :  { %v5998_v9 = vpop.f32.mrf.mxu1 }
 0xbf3   :  { %6729 = vtanh.f32 %v1545_v49  ;;  %v1548_v60 = vmul.f32 0.5, %v1545_v49 }
 0xbfe   :  { %v6728_v50 = vpop.eup %6727  ;;  %v1647_v52 = vpop.f32.mrf.mxu0 }
 0xbff   :  { %v1648_v51 = vadd.f32 %v7591_v36, %v1647_v52  ;;  %1452 = vrot.lane.b32.xlu0 %v6728_v50, %s7186_s0 }
 0xc00   :  { %v6017_v5 = vpop.f32.mrf.mxu0  ;;  %v1763_v27 = vpop.f32.mrf.mxu1 }
 0xc01   :  { %v6730_v28 = vpop.eup %6729  ;;  %6731 = vtanh.f32 %v1648_v51  ;;  %v1764_v40 = vadd.f32 %v7775_v53, %v1763_v27  ;;  %v1651_v38 = vmul.f32 0.5, %v1648_v51 }
 0xc02   :  { %1555 = vrot.lane.b32.xlu1 %v6730_v28, %s7186_s0  ;;  %v6036_v29 = vpop.f32.mrf.mxu1 }
 0xc03   :  { %6733 = vtanh.f32 %v1764_v40  ;;  %v1767_v44 = vmul.f32 0.5, %v1764_v40 }
 0xc04   :  { %6735 = vtanh.f32 %v1337_v31 }
 0xc05   :  { %6737 = vtanh.f32 %v1445_v55  ;;  %v1343_v55 = vrot.slane %v7602_v18, 6 }
 0xc06   :  { %6739 = vtanh.f32 %v1548_v60 }
 0xc07   :  { %6741 = vtanh.f32 %v1651_v38 }
 0xc08   :  { %6743 = vtanh.f32 %v1767_v44 }
 0xc0e   :  { %v6732_v47 = vpop.eup %6731 }
 0xc0f   :  { %1658 = vrot.lane.b32.xlu0 %v6732_v47, %s7186_s0 }
 0xc10   :  { %v6734_v30 = vpop.eup %6733 }
 0xc11   :  { %1774 = vrot.lane.b32.xlu1 %v6734_v30, %s7186_s0  ;;  %v6736_v54 = vpop.eup %6735 }
 0xc12   :  { %v1339_v58 = vadd.f32 1.0, %v6736_v54  ;;  %v6738_v48 = vpop.eup %6737 }
 0xc13   :  { %v6740_v42 = vpop.eup %6739  ;;  %v1447_v45 = vadd.f32 1.0, %v6738_v48 }
 0xc14   :  { %v7783_v62 = vmul.f32 0.5, %v1339_v58  ;;  %v1550_v13 = vadd.f32 1.0, %v6740_v42  ;;  %v6742_v5 = vpop.eup %6741 }
 0xc15   :  { %v1448_v43 = vmul.f32 0.5, %v1447_v45  ;;  %v6744_v27 = vpop.eup %6743  ;;  %v1653_v51 = vadd.f32 1.0, %v6742_v5 }
 0xc16   :  { %v1551_v9 = vmul.f32 0.5, %v1550_v13  ;;  %v1769_v28 = vadd.f32 1.0, %v6744_v27  ;;  %v1345_v58 = vmul.f32 %v1343_v55, %v7783_v62 }
 0xc17   :  { %v1654_v40 = vmul.f32 0.5, %v1653_v51  ;;  %v1450_v38 = vmul.f32 %v1448_v43, %v7606_v33 }
 0xc18   :  { %v1770_v30 = vmul.f32 0.5, %v1769_v28  ;;  %v1553_v42 = vmul.f32 %v1551_v9, %v7611_v41 }
 0xc19   :  { %v1656_v13 = vmul.f32 %v1654_v40, %v7614_v39 }
 0xc1a   :  { %v1772_v33 = vmul.f32 0.0, %v1770_v30 }
 0xc5f   :  { %v1348_v3 = vpop.permute.xlu1 %1347 }
 0xc60   :  { %v1350_v15 = vmul.f32 %v1348_v3, %v7783_v62 }
 0xc62   :  { %1352 = vrot.lane.b32.xlu0 %v1350_v15, %s7187_s24 }
 0xc71   :  { %v1453_v46 = vpop.permute.xlu0 %1452 }
 0xc72   :  { %v1455_v49 = vmul.f32 %v1453_v46, %v1448_v43 }
 0xc74   :  { %v1556_v50 = vpop.permute.xlu1 %1555  ;;  %1457 = vrot.lane.b32.xlu1 %v1455_v49, %s7187_s24 }
 0xc75   :  { %v1558_v52 = vmul.f32 %v1556_v50, %v1551_v9 }
 0xc77   :  { %1560 = vrot.lane.b32.xlu0 %v1558_v52, %s7187_s24 }
 0xc81   :  { %v1659_v29 = vpop.permute.xlu0 %1658 }
 0xc82   :  { %v1661_v47 = vmul.f32 %v1659_v29, %v1654_v40 }
 0xc83   :  { %v1775_v31 = vpop.permute.xlu1 %1774 }
 0xc84   :  { %1663 = vrot.lane.b32.xlu1 %v1661_v47, %s7187_s24  ;;  %v1777_v54 = vmul.f32 %v1775_v31, %v1770_v30 }
 0xc86   :  { %1779 = vrot.lane.b32.xlu0 %v1777_v54, %s7187_s24 }
 0xcd4   :  { %v1353_v60 = vpop.permute.xlu0 %1352 }
 0xcd5   :  { %v7793_v3 = vadd.f32 %v1353_v60, %v1345_v58 }
 0xcd7   :  { %6745 = vtanh.f32 %v7793_v3 }
 0xce4   :  { %v6746_v15 = vpop.eup %6745 }
 0xce5   :  { %1358 = vrot.lane.b32.xlu1 %v6746_v15, %s7186_s0  ;;  %v7841_v15 = vld [vmem:[#allocation5 + $0x60] sm:$0xff] }
 0xce6   :  { %v1458_v48 = vpop.permute.xlu1 %1457 }
 0xce7   :  { %v7798_v44 = vadd.f32 %v1458_v48, %v1450_v38  ;;  %v7845_v38 = vld [vmem:[#allocation5 + $0x58] sm:$0xff]  ;;  %v7849_v48 = vld [vmem:[#allocation5 + $0x50] sm:$0xff] }
 0xce9   :  { %6747 = vtanh.f32 %v7798_v44  ;;  %v1561_v18 = vpop.permute.xlu0 %1560 }
 0xcea   :  { %v7802_v45 = vadd.f32 %v1561_v18, %v1553_v42  ;;  %v7853_v42 = vld [vmem:[#allocation5 + $0x48] sm:$0xff]  ;;  %v7857_v18 = vld [vmem:[#allocation5 + $0x40] sm:$0xff] }
 0xcec   :  { %6749 = vtanh.f32 %v7802_v45 }
 0xcf6   :  { %v6748_v46 = vpop.eup %6747  ;;  %v1664_v49 = vpop.permute.xlu1 %1663 }
 0xcf7   :  { %v7806_v50 = vadd.f32 %v1664_v49, %v1656_v13  ;;  %1463 = vrot.lane.b32.xlu0 %v6748_v46, %s7186_s0 }
 0xcf8   :  { %v1780_v41 = vpop.permute.xlu0 %1779 }
 0xcf9   :  { %v6750_v52 = vpop.eup %6749  ;;  %6751 = vtanh.f32 %v7806_v50  ;;  %v7810_v5 = vadd.f32 %v1780_v41, %v1772_v33  ;;  %v7907_v41 = vld [vmem:[#allocation5 + $0x128] sm:$0xff] }
 0xcfa   :  { %1566 = vrot.lane.b32.xlu1 %v6750_v52, %s7186_s0 }
 0xcfb   :  { %6753 = vtanh.f32 %v7810_v5 }
 0xd06   :  { %v6752_v27 = vpop.eup %6751 }
 0xd07   :  { %1669 = vrot.lane.b32.xlu0 %v6752_v27, %s7186_s0  ;;  %v7914_v27 = vld [vmem:[#allocation5 + $0x120] sm:$0xff] }
 0xd08   :  { %v6754_v39 = vpop.eup %6753 }
 0xd09   :  { %1785 = vrot.lane.b32.xlu1 %v6754_v39, %s7186_s0  ;;  %v7920_v39 = vld [vmem:[#allocation5 + $0x118] sm:$0xff] }
 0xd57   :  { %v1359_v51 = vpop.permute.xlu1 %1358 }
 0xd58   :  { %v1361_v28 = vmul.f32 %v1359_v51, %v7783_v62  ;;  %v7926_v51 = vld [vmem:[#allocation5 + $0x110] sm:$0xff] }
 0xd5a   :  { %1790 = vrot.lane.b32.xlu0 %v1361_v28, %s7187_s24  ;;  %v7932_v28 = vld [vmem:[#allocation5 + $0x108] sm:$0xff] }
 0xd69   :  { %v1464_v29 = vpop.permute.xlu0 %1463 }
 0xd6a   :  { %v1466_v47 = vmul.f32 %v1464_v29, %v1448_v43 }
 0xd6c   :  { %v1567_v31 = vpop.permute.xlu1 %1566  ;;  %1994 = vrot.lane.b32.xlu0 %v1466_v47, %s7187_s24  ;;  %1895 = vrot.lane.b32.xlu1 %v1466_v47, %s7186_s0  ;;  %v7938_v47 = vld [vmem:[#allocation5 + $0x100] sm:$0xff] }
 0xd6d   :  { %v1569_v54 = vmul.f32 %v1567_v31, %v1551_v9  ;;  %v7827_v9 = vld [vmem:[#allocation5 + $0x78] sm:$0xff] }
 0xd70   :  { %2097 = vrot.lane.b32.xlu0 %v1569_v54, %s7187_s24  ;;  %1998 = vrot.lane.b32.xlu1 %v1569_v54, %s7186_s0 }
 0xd79   :  { %v1670_v55 = vpop.permute.xlu0 %1669 }
 0xd7a   :  { %v1672_v58 = vmul.f32 %v1670_v55, %v1654_v40  ;;  %v7833_v40 = vld [vmem:[#allocation5 + $0x70] sm:$0xff] }
 0xd7b   :  { %v1786_v60 = vpop.permute.xlu1 %1785 }
 0xd7c   :  { %2200 = vrot.lane.b32.xlu0 %v1672_v58, %s7187_s24  ;;  %2101 = vrot.lane.b32.xlu1 %v1672_v58, %s7186_s0  ;;  %v1788_v62 = vmul.f32 %v1786_v60, %v1770_v30  ;;  %v7837_v30 = vld [vmem:[#allocation5 + $0x68] sm:$0xff] }
 0xd80   :  { %2303 = vrot.lane.b32.xlu0 %v1788_v62, %s7187_s24  ;;  %2204 = vrot.lane.b32.xlu1 %v1788_v62, %s7186_s0 }
 0xdcc   :  { %v1791_v43 = vpop.permute.xlu0 %1790 }
 0xdcd   :  { %6046 = vmatmul.mubr.msk.f32.vlgmr.msra.gmra.mxu0 %vm191_vm2, %v1791_v43 }
 0xdce   :  { %6068 = vmatpush3.msra.mxu0 %v7827_v9  ;;  %6083 = vmatprep.mubr.msk.f32.mxu0 %vm7185_vm0, %v9006_v0 }
 0xdcf   :  { %6069 = vmatprep.subr.mxu0 %v9006_v0 }
 0xdd0   :  { %6070 = vmatpush3.msra.mxu0 %v7833_v40 }
 0xdd1   :  { %6071 = vmatprep.subr.mxu0 %v9006_v0 }
 0xdd2   :  { %6072 = vmatpush3.msra.mxu0 %v7837_v30 }
 0xdd3   :  { %6073 = vmatprep.subr.mxu0 %v9006_v0 }
 0xdd4   :  { %6074 = vmatpush3.msra.mxu0 %v7841_v15 }
 0xdd5   :  { %6075 = vmatprep.subr.mxu0 %v9006_v0 }
 0xdd6   :  { %6076 = vmatpush3.msra.mxu0 %v7845_v38 }
 0xdd7   :  { %6077 = vmatprep.subr.mxu0 %v9006_v0 }
 0xdd8   :  { %6078 = vmatpush3.msra.mxu0 %v7849_v48 }
 0xdd9   :  { %6079 = vmatprep.subr.mxu0 %v9006_v0 }
 0xdda   :  { %6080 = vmatpush3.msra.mxu0 %v7853_v42 }
 0xddb   :  { %6081 = vmatprep.subr.mxu0 %v9006_v0 }
 0xddc   :  { %6082 = vmatpush3.msra.mxu0 %v7857_v18 }
 0xddd   :  { %6105 = vmatprep.subr.mxu0 %v9006_v0 }
 0xdde   :  { %v1896_v13 = vpop.permute.xlu1 %1895  ;;  %v1995_v49 = vpop.permute.xlu0 %1994 }
 0xddf   :  { %v1898_v46 = vsel %vm191_vm2, %v1791_v43, %v1896_v13  ;;  %v7971_v13 = vld [vmem:[#allocation7] ss:$0 sm:$0xff] }
 0xde0   :  { %6065 = vmatmul.mubr.msk.f32.vlgmr.msra.gmra.mxu1 %vm409_vm3, %v1898_v46 }
 0xde1   :  { %6087 = vmatpush3.msra.mxu1 %v7518_v63  ;;  %6102 = vmatprep.mubr.msk.f32.mxu1 %vm7185_vm0, %v9006_v0 }
 0xde2   :  { %6088 = vmatprep.subr.mxu1 %v9006_v0  ;;  %v1999_v33 = vpop.permute.xlu1 %1998  ;;  %v2098_v63 = vpop.permute.xlu0 %2097 }
 0xde3   :  { %6089 = vmatpush3.msra.mxu1 %v7523_v6  ;;  %v2001_v52 = vsel %vm191_vm2, %v1995_v49, %v1999_v33 }
 0xde4   :  { %6090 = vmatprep.subr.mxu1 %v9006_v0  ;;  %6084 = vmatmul.mubr.msk.f32.vlgmr.msra.gmra.mxu0 %vm409_vm3, %v2001_v52  ;;  %v7974_v52 = vld [vmem:[#allocation7 + $0x1] ss:$0 sm:$0xff] }
 0xde5   :  { %6091 = vmatpush3.msra.mxu1 %v7531_v16  ;;  %6106 = vmatpush3.msra.mxu0 %v7649_v32 }
 0xde6   :  { %6092 = vmatprep.subr.mxu1 %v9006_v0  ;;  %6107 = vmatprep.subr.mxu0 %v9006_v0 }
 0xde7   :  { %6093 = vmatpush3.msra.mxu1 %v7536_v22  ;;  %6108 = vmatpush3.msra.mxu0 %v7657_v34  ;;  %v7894_v22 = vld [vmem:[#allocation5 + $0x138] sm:$0xff] }
 0xde8   :  { %6094 = vmatprep.subr.mxu1 %v9006_v0  ;;  %6109 = vmatprep.subr.mxu0 %v9006_v0 }
 0xde9   :  { %6095 = vmatpush3.msra.mxu1 %v7542_v23  ;;  %6110 = vmatpush3.msra.mxu0 %v7663_v35  ;;  %v7900_v23 = vld [vmem:[#allocation5 + $0x130] sm:$0xff] }
 0xdea   :  { %6096 = vmatprep.subr.mxu1 %v9006_v0  ;;  %6111 = vmatprep.subr.mxu0 %v9006_v0 }
 0xdeb   :  { %6097 = vmatpush3.msra.mxu1 %v7548_v2  ;;  %6112 = vmatpush3.msra.mxu0 %v7669_v56 }
 0xdec   :  { %6098 = vmatprep.subr.mxu1 %v9006_v0  ;;  %6113 = vmatprep.subr.mxu0 %v9006_v0 }
 0xded   :  { %6099 = vmatpush3.msra.mxu1 %v7554_v4  ;;  %6114 = vmatpush3.msra.mxu0 %v7675_v57 }
 0xdee   :  { %6100 = vmatprep.subr.mxu1 %v9006_v0  ;;  %6115 = vmatprep.subr.mxu0 %v9006_v0  ;;  %v2102_v6 = vpop.permute.xlu1 %2101  ;;  %v2201_v2 = vpop.permute.xlu0 %2200 }
 0xdef   :  { %v2104_v16 = vsel %vm191_vm2, %v2098_v63, %v2102_v6  ;;  %6101 = vmatpush3.msra.mxu1 %v7561_v24  ;;  %6116 = vmatpush3.msra.mxu0 %v7681_v59 }
 0xdf0   :  { %6103 = vmatmul.mubr.msk.f32.vlgmr.msra.gmra.mxu1 %vm409_vm3, %v2104_v16  ;;  %6117 = vmatprep.subr.mxu0 %v9006_v0 }
 0xdf1   :  { %6124 = vmatprep.subr.mxu1 %v9006_v0  ;;  %6118 = vmatpush3.msra.mxu0 %v7687_v61 }
 0xdf2   :  { %6125 = vmatpush3.msra.mxu1 %v7894_v22  ;;  %6119 = vmatprep.subr.mxu0 %v9006_v0  ;;  %v2205_v4 = vpop.permute.xlu1 %2204  ;;  %v2304_v29 = vpop.permute.xlu0 %2303 }
 0xdf3   :  { %6126 = vmatprep.subr.mxu1 %v9006_v0  ;;  %v2207_v24 = vsel %vm191_vm2, %v2201_v2, %v2205_v4  ;;  %6120 = vmatpush3.msra.mxu0 %v7693_v1  ;;  %v2306_v31 = vsel %vm191_vm2, %v2304_v29, 0.0 }
 0xdf4   :  { %6121 = vmatprep.mubr.msk.f32.mxu0 %vm7185_vm0, %v9006_v0  ;;  %6127 = vmatpush3.msra.mxu1 %v7900_v23 }
 0xdf5   :  { %6122 = vmatmul.mubr.msk.f32.vlgmr.msra.gmra.mxu0 %vm409_vm3, %v2207_v24  ;;  %6128 = vmatprep.subr.mxu1 %v9006_v0 }
 0xdf6   :  { %6129 = vmatpush3.msra.mxu1 %v7907_v41  ;;  %6140 = vmatprep.mubr.msk.f32.mxu1 %vm7185_vm0, %v9006_v0 }
 0xdf7   :  { %6130 = vmatprep.subr.mxu1 %v9006_v0  ;;  %6143 = vmatprep.subr.mxu0 %v9006_v0 }
 0xdf8   :  { %6131 = vmatpush3.msra.mxu1 %v7914_v27  ;;  %6144 = vmatpush3.msra.mxu0 %v7709_v7 }
 0xdf9   :  { %6132 = vmatprep.subr.mxu1 %v9006_v0  ;;  %6145 = vmatprep.subr.mxu0 %v9006_v0 }
 0xdfa   :  { %6133 = vmatpush3.msra.mxu1 %v7920_v39  ;;  %6146 = vmatpush3.msra.mxu0 %v7719_v8 }
 0xdfb   :  { %6134 = vmatprep.subr.mxu1 %v9006_v0  ;;  %6147 = vmatprep.subr.mxu0 %v9006_v0 }
 0xdfc   :  { %6135 = vmatpush3.msra.mxu1 %v7926_v51  ;;  %6148 = vmatpush3.msra.mxu0 %v7730_v12 }
 0xdfd   :  { %6136 = vmatprep.subr.mxu1 %v9006_v0  ;;  %6149 = vmatprep.subr.mxu0 %v9006_v0 }
 0xdfe   :  { %6137 = vmatpush3.msra.mxu1 %v7932_v28  ;;  %6150 = vmatpush3.msra.mxu0 %v7741_v17 }
 0xdff   :  { %6138 = vmatprep.subr.mxu1 %v9006_v0  ;;  %6151 = vmatprep.mubr.msk.f32.mxu0 %vm7185_vm0, %v9006_v0 }
 0xe00   :  { %6139 = vmatpush3.msra.mxu1 %v7938_v47  ;;  %6154 = vmatprep.subr.mxu0 %v9006_v0 }
 0xe01   :  { %6141 = vmatmul.mubr.msk.f32.vlgmr.msra.gmra.mxu1 %vm409_vm3, %v2306_v31  ;;  %6173 = vmatprep.subr.mxu1 %v9006_v0 }
 0xe02   :  { %6174 = vmatpush3.msra.mxu1 %v7827_v9  ;;  %6189 = vmatprep.mubr.msk.f32.mxu1 %vm7185_vm0, %v9006_v0 }
 0xe03   :  { %6175 = vmatprep.subr.mxu1 %v9006_v0 }
 0xe04   :  { %6176 = vmatpush3.msra.mxu1 %v7833_v40 }
 0xe05   :  { %6177 = vmatprep.subr.mxu1 %v9006_v0 }
 0xe06   :  { %6178 = vmatpush3.msra.mxu1 %v7837_v30 }
 0xe07   :  { %6179 = vmatprep.subr.mxu1 %v9006_v0 }
 0xe08   :  { %6180 = vmatpush3.msra.mxu1 %v7841_v15 }
 0xe09   :  { %6181 = vmatprep.subr.mxu1 %v9006_v0 }
 0xe0a   :  { %6182 = vmatpush3.msra.mxu1 %v7845_v38 }
 0xe0b   :  { %6183 = vmatprep.subr.mxu1 %v9006_v0 }
 0xe0c   :  { %6184 = vmatpush3.msra.mxu1 %v7849_v48 }
 0xe0d   :  { %6185 = vmatprep.subr.mxu1 %v9006_v0 }
 0xe0e   :  { %6186 = vmatpush3.msra.mxu1 %v7853_v42 }
 0xe0f   :  { %6187 = vmatprep.subr.mxu1 %v9006_v0 }
 0xe10   :  { %6188 = vmatpush3.msra.mxu1 %v7857_v18 }
 0xe11   :  { %6211 = vmatprep.subr.mxu1 %v9006_v0 }
 0xe8d   :  { %v1860_v54 = vpop.f32.mrf.mxu0 }
 0xe8e   :  { %v1865_v55 = vrot.slane %v1860_v54, 6 }
 0xe8f   :  { %v6047_v58 = vpop.f32.mrf.mxu0 }
 0xe90   :  { %v1867_v60 = vadd.f32 %v1865_v55, %v7306_v11  ;;  %v7981_v58 = vld [vmem:[#allocation7 + $0x4] ss:$0 sm:$0xff] }
 0xe92   :  { %6755 = vtanh.f32 %v1867_v60 }
 0xe9f   :  { %v6756_v62 = vpop.eup %6755 }
 0xea0   :  { %v1968_v43 = vpop.f32.mrf.mxu1  ;;  %1878 = vrot.lane.b32.xlu1 %v6756_v62, %s7186_s0 }
 0xea1   :  { %v1969_v46 = vadd.f32 %v7971_v13, %v1968_v43 }
 0xea2   :  { %v6066_v49 = vpop.f32.mrf.mxu1 }
 0xea3   :  { %6757 = vtanh.f32 %v1969_v46 }
 0xea4   :  { %v2071_v33 = vpop.f32.mrf.mxu0 }
 0xea5   :  { %v2072_v63 = vadd.f32 %v7974_v52, %v2071_v33 }
 0xea6   :  { %v6085_v6 = vpop.f32.mrf.mxu0 }
 0xea7   :  { %6759 = vtanh.f32 %v2072_v63 }
 0xeb0   :  { %v6758_v16 = vpop.eup %6757  ;;  %v2174_v2 = vpop.f32.mrf.mxu1 }
 0xeb1   :  { %v2175_v4 = vadd.f32 %v7591_v36, %v2174_v2  ;;  %1979 = vrot.lane.b32.xlu0 %v6758_v16, %s7186_s0  ;;  %v1868_v16 = vmul.f32 0.5, %v1867_v60  ;;  %v1972_v2 = vmul.f32 0.5, %v1969_v46 }
 0xeb2   :  { %v6104_v24 = vpop.f32.mrf.mxu1 }
 0xeb3   :  { %6761 = vtanh.f32 %v2175_v4 }
 0xeb4   :  { %v6760_v29 = vpop.eup %6759 }
 0xeb5   :  { %v2277_v31 = vpop.f32.mrf.mxu0  ;;  %2082 = vrot.lane.b32.xlu1 %v6760_v29, %s7186_s0  ;;  %v2075_v29 = vmul.f32 0.5, %v2072_v63 }
 0xeb6   :  { %v2278_v54 = vadd.f32 %v7775_v53, %v2277_v31 }
 0xeb7   :  { %v6123_v55 = vpop.f32.mrf.mxu0 }
 0xeb8   :  { %6763 = vtanh.f32 %v2278_v54  ;;  %v2281_v60 = vmul.f32 0.5, %v2278_v54 }
 0xec0   :  { %v6762_v62 = vpop.eup %6761 }
 0xec1   :  { %v2393_v43 = vpop.f32.mrf.mxu1  ;;  %2185 = vrot.lane.b32.xlu0 %v6762_v62, %s7186_s0 }
 0xec2   :  { %v2394_v36 = vadd.f32 %v7981_v58, %v2393_v43  ;;  %v2178_v43 = vmul.f32 0.5, %v2175_v4 }
 0xec3   :  { %v6142_v49 = vpop.f32.mrf.mxu1 }
 0xec4   :  { %6765 = vtanh.f32 %v2394_v36 }
 0xec5   :  { %v6764_v33 = vpop.eup %6763  ;;  %6767 = vtanh.f32 %v1868_v16 }
 0xec6   :  { %2288 = vrot.lane.b32.xlu1 %v6764_v33, %s7186_s0  ;;  %6769 = vtanh.f32 %v1972_v2 }
 0xec7   :  { %6771 = vtanh.f32 %v2075_v29  ;;  %v2397_v29 = vmul.f32 0.5, %v2394_v36 }
 0xec8   :  { %6773 = vtanh.f32 %v2178_v43 }
 0xec9   :  { %6775 = vtanh.f32 %v2281_v60 }
 0xeca   :  { %6777 = vtanh.f32 %v2397_v29 }
 0xed1   :  { %v6766_v6 = vpop.eup %6765 }
 0xed2   :  { %2404 = vrot.lane.b32.xlu0 %v6766_v6, %s7186_s0  ;;  %v6768_v53 = vpop.eup %6767 }
 0xed3   :  { %v1870_v24 = vadd.f32 1.0, %v6768_v53  ;;  %v6770_v49 = vpop.eup %6769 }
 0xed4   :  { %v1974_v33 = vadd.f32 1.0, %v6770_v49  ;;  %v6772_v6 = vpop.eup %6771 }
 0xed5   :  { %v7987_v31 = vmul.f32 0.5, %v1870_v24  ;;  %v2077_v16 = vadd.f32 1.0, %v6772_v6  ;;  %v6774_v4 = vpop.eup %6773 }
 0xed6   :  { %v7991_v0 = vmul.f32 0.5, %v1974_v33  ;;  %v6776_v54 = vpop.eup %6775 }
 0xed7   :  { %v7995_v53 = vmul.f32 0.5, %v2077_v16  ;;  %v2283_v43 = vadd.f32 1.0, %v6776_v54 }
 0xed9   :  { %v8003_v6 = vmul.f32 0.5, %v2283_v43 }
 0xf12   :  { %v1879_v55 = vpop.permute.xlu1 %1878 }
 0xf13   :  { %v1881_v62 = vmul.f32 %v1879_v55, %v7987_v31  ;;  %v2180_v55 = vadd.f32 1.0, %v6774_v4  ;;  %v1874_v4 = vrot.slane %v7793_v3, 6  ;;  %v2080_v3 = vmul.f32 %v7995_v53, %v7802_v45 }
 0xf14   :  { %v2286_v45 = vmul.f32 %v8003_v6, %v7810_v5 }
 0xf15   :  { %1883 = vrot.lane.b32.xlu1 %v1881_v62, %s7187_s24  ;;  %v7999_v62 = vmul.f32 0.5, %v2180_v55  ;;  %v1876_v29 = vmul.f32 %v1874_v4, %v7987_v31 }
 0xf23   :  { %v1980_v46 = vpop.permute.xlu0 %1979 }
 0xf24   :  { %v1982_v63 = vmul.f32 %v1980_v46, %v7991_v0  ;;  %v6778_v46 = vpop.eup %6777 }
 0xf25   :  { %v2399_v36 = vadd.f32 1.0, %v6778_v46 }
 0xf26   :  { %1984 = vrot.lane.b32.xlu0 %v1982_v63, %s7187_s24 }
 0xf27   :  { %v2083_v2 = vpop.permute.xlu1 %2082  ;;  %v8007_v63 = vmul.f32 0.5, %v2399_v36  ;;  %v2183_v36 = vmul.f32 %v7999_v62, %v7806_v50 }
 0xf28   :  { %v2085_v24 = vmul.f32 %v2083_v2, %v7995_v53 }
 0xf2a   :  { %2087 = vrot.lane.b32.xlu1 %v2085_v24, %s7187_s24 }
 0xf33   :  { %v2186_v49 = vpop.permute.xlu0 %2185 }
 0xf34   :  { %v2188_v33 = vmul.f32 %v2186_v49, %v7999_v62  ;;  %v1977_v49 = vmul.f32 %v7991_v0, %v7798_v44 }
 0xf36   :  { %2190 = vrot.lane.b32.xlu0 %v2188_v33, %s7187_s24 }
 0xf38   :  { %v2289_v60 = vpop.permute.xlu1 %2288 }
 0xf39   :  { %v2291_v16 = vmul.f32 %v2289_v60, %v8003_v6 }
 0xf3b   :  { %2293 = vrot.lane.b32.xlu1 %v2291_v16, %s7187_s24 }
 0xf44   :  { %v2405_v2 = vpop.permute.xlu0 %2404 }
 0xf45   :  { %v2407_v24 = vmul.f32 %v2405_v2, %v8007_v63 }
 0xf47   :  { %2409 = vrot.lane.b32.xlu0 %v2407_v24, %s7187_s24 }
 0xf87   :  { %v1884_v55 = vpop.permute.xlu1 %1883 }
 0xf88   :  { %v8013_v54 = vadd.f32 %v1884_v55, %v1876_v29 }
 0xf8a   :  { %6779 = vtanh.f32 %v8013_v54 }
 0xf97   :  { %v6780_v43 = vpop.eup %6779 }
 0xf98   :  { %v1985_v33 = vpop.permute.xlu0 %1984  ;;  %1889 = vrot.lane.b32.xlu1 %v6780_v43, %s7186_s0  ;;  %v2402_v43 = vmul.f32 0.0, %v8007_v63 }
 0xf99   :  { %v8019_v60 = vadd.f32 %v1985_v33, %v1977_v49 }
 0xf9b   :  { %6781 = vtanh.f32 %v8019_v60 }
 0xf9c   :  { %v2088_v16 = vpop.permute.xlu1 %2087 }
 0xf9d   :  { %v8024_v46 = vadd.f32 %v2088_v16, %v2080_v3 }
 0xf9f   :  { %6783 = vtanh.f32 %v8024_v46 }
 0xfa8   :  { %v6782_v2 = vpop.eup %6781  ;;  %v2191_v44 = vpop.permute.xlu0 %2190 }
 0xfa9   :  { %v8029_v24 = vadd.f32 %v2191_v44, %v2183_v36  ;;  %1990 = vrot.lane.b32.xlu0 %v6782_v2, %s7186_s0 }
 0xfab   :  { %6785 = vtanh.f32 %v8029_v24 }
 0xfac   :  { %v6784_v4 = vpop.eup %6783 }
 0xfad   :  { %v2294_v29 = vpop.permute.xlu1 %2293  ;;  %2093 = vrot.lane.b32.xlu1 %v6784_v4, %s7186_s0 }
 0xfae   :  { %v8036_v55 = vadd.f32 %v2294_v29, %v2286_v45 }
 0xfb0   :  { %6787 = vtanh.f32 %v8036_v55 }
 0xfb8   :  { %v6786_v50 = vpop.eup %6785 }
 0xfb9   :  { %v2410_v49 = vpop.permute.xlu0 %2409  ;;  %2196 = vrot.lane.b32.xlu0 %v6786_v50, %s7186_s0 }
 0xfba   :  { %v8041_v33 = vadd.f32 %v2410_v49, %v2402_v43 }
 0xfbc   :  { %6789 = vtanh.f32 %v8041_v33 }
 0xfbd   :  { %v6788_v3 = vpop.eup %6787 }
 0xfbe   :  { %2299 = vrot.lane.b32.xlu1 %v6788_v3, %s7186_s0 }
 0xfc9   :  { %v6790_v5 = vpop.eup %6789 }
 0xfca   :  { %2415 = vrot.lane.b32.xlu0 %v6790_v5, %s7186_s0 }
0x100a   :  { %v1890_v16 = vpop.permute.xlu1 %1889 }
0x100b   :  { %v1892_v36 = vmul.f32 %v1890_v16, %v7987_v31  ;;  %v8104_v16 = vld [vmem:[#allocation5 + $0xa0] sm:$0xff] }
0x100d   :  { %v2420_v2 = vrot.slane %v1892_v36, 2  ;;  %2524 = vrot.lane.b32.xlu0 %v1892_v36, %s7187_s24  ;;  %v8116_v36 = vld [vmem:[#allocation5 + $0x90] sm:$0xff] }
0x100f   :  { %2421 = vrot.lane.b32.xlu1 %v2420_v2, %s7187_s24  ;;  %v8122_v2 = vld [vmem:[#allocation5 + $0x88] sm:$0xff] }
0x101b   :  { %v1991_v44 = vpop.permute.xlu0 %1990 }
0x101c   :  { %v1993_v4 = vmul.f32 %v1991_v44, %v7991_v0 }
0x101e   :  { %v2528_v45 = vrot.slane %v1993_v4, 6  ;;  %2629 = vrot.lane.b32.xlu0 %v1993_v4, %s7187_s24  ;;  %v8129_v4 = vld [vmem:[#allocation5 + $0x80] sm:$0xff] }
0x101f   :  { %v2094_v29 = vpop.permute.xlu1 %2093 }
0x1020   :  { %v2096_v50 = vmul.f32 %v2094_v29, %v7995_v53  ;;  %2529 = vrot.lane.b32.xlu1 %v2528_v45, %s7186_s0 }
0x1022   :  { %2732 = vrot.lane.b32.xlu0 %v2096_v50, %s7187_s24 }
0x1024   :  { %2633 = vrot.lane.b32.xlu1 %v2096_v50, %s7186_s0 }
0x102b   :  { %v2197_v31 = vpop.permute.xlu0 %2196 }
0x102c   :  { %v2199_v43 = vmul.f32 %v2197_v31, %v7999_v62  ;;  %v9008_v62 = vmov 0.0  }
0x102e   :  { %2736 = vrot.lane.b32.xlu1 %v2199_v43, %s7186_s0  ;;  %2835 = vrot.lane.b32.xlu0 %v2199_v43, %s7187_s24 }
0x1030   :  { %v2300_v0 = vpop.permute.xlu1 %2299 }
0x1031   :  { %v2302_v49 = vmul.f32 %v2300_v0, %v8003_v6 }
0x1033   :  { %2839 = vrot.lane.b32.xlu1 %v2302_v49, %s7186_s0  ;;  %2938 = vrot.lane.b32.xlu0 %v2302_v49, %s7187_s24 }
0x103c   :  { %v2416_v53 = vpop.permute.xlu0 %2415 }
0x103d   :  { %v2418_v3 = vmul.f32 %v2416_v53, %v8007_v63  ;;  %v8085_v63 = vld [vmem:[#allocation5 + $0xb8] sm:$0xff] }
0x103f   :  { %2942 = vrot.lane.b32.xlu1 %v2418_v3, %s7186_s0 }
0x1081   :  { %v2422_v5 = vpop.permute.xlu1 %2421 }
0x1082   :  { %6152 = vmatmul.mubr.msk.f32.vlgmr.msra.gmra.mxu0 %vm191_vm2, %v2422_v5 }
0x1083   :  { %6155 = vmatpush3.msra.mxu0 %v7722_v10  ;;  %6170 = vmatprep.mubr.msk.f32.mxu0 %vm7185_vm0, %v9008_v62  ;;  %v2525_v10 = vpop.permute.xlu0 %2524 }
0x1084   :  { %6156 = vmatprep.subr.mxu0 %v9008_v62 }
0x1085   :  { %6157 = vmatpush3.msra.mxu0 %v7733_v14 }
0x1086   :  { %6158 = vmatprep.subr.mxu0 %v9008_v62 }
0x1087   :  { %6159 = vmatpush3.msra.mxu0 %v7744_v25 }
0x1088   :  { %6160 = vmatprep.subr.mxu0 %v9008_v62 }
0x1089   :  { %6161 = vmatpush3.msra.mxu0 %v7749_v19 }
0x108a   :  { %6162 = vmatprep.subr.mxu0 %v9008_v62 }
0x108b   :  { %6163 = vmatpush3.msra.mxu0 %v7755_v26 }
0x108c   :  { %6164 = vmatprep.subr.mxu0 %v9008_v62 }
0x108d   :  { %6165 = vmatpush3.msra.mxu0 %v7759_v20 }
0x108e   :  { %6166 = vmatprep.subr.mxu0 %v9008_v62 }
0x108f   :  { %6167 = vmatpush3.msra.mxu0 %v7763_v21  ;;  %v8092_v21 = vld [vmem:[#allocation5 + $0xb0] sm:$0xff] }
0x1090   :  { %6168 = vmatprep.subr.mxu0 %v9008_v62  ;;  %v2630_v26 = vpop.permute.xlu0 %2629 }
0x1091   :  { %6169 = vmatpush3.msra.mxu0 %v7767_v37  ;;  %v8098_v37 = vld [vmem:[#allocation5 + $0xa8] sm:$0xff] }
0x1092   :  { %v2530_v14 = vpop.permute.xlu1 %2529  ;;  %6192 = vmatprep.subr.mxu0 %v9008_v62 }
0x1093   :  { %v2532_v25 = vsel %vm191_vm2, %v2525_v10, %v2530_v14 }
0x1094   :  { %v2534_v19 = vrot.slane %v2532_v25, 2 }
0x1096   :  { %v2634_v6 = vpop.permute.xlu1 %2633  ;;  %6171 = vmatmul.mubr.msk.f32.vlgmr.msra.gmra.mxu0 %vm409_vm3, %v2534_v19 }
0x1097   :  { %v2636_v20 = vsel %vm191_vm2, %v2630_v26, %v2634_v6  ;;  %6193 = vmatpush3.msra.mxu0 %v8085_v63  ;;  %6208 = vmatprep.mubr.msk.f32.mxu0 %vm7185_vm0, %v9008_v62 }
0x1098   :  { %6194 = vmatprep.subr.mxu0 %v9008_v62  ;;  %6190 = vmatmul.mubr.msk.f32.vlgmr.msra.gmra.mxu1 %vm409_vm3, %v2636_v20 }
0x1099   :  { %6195 = vmatpush3.msra.mxu0 %v8092_v21  ;;  %6212 = vmatpush3.msra.mxu1 %v7649_v32  ;;  %v8110_v32 = vld [vmem:[#allocation5 + $0x98] sm:$0xff] }
0x109a   :  { %6196 = vmatprep.subr.mxu0 %v9008_v62  ;;  %6213 = vmatprep.subr.mxu1 %v9008_v62 }
0x109b   :  { %6197 = vmatpush3.msra.mxu0 %v8098_v37  ;;  %6214 = vmatpush3.msra.mxu1 %v7657_v34 }
0x109c   :  { %6198 = vmatprep.subr.mxu0 %v9008_v62  ;;  %6215 = vmatprep.subr.mxu1 %v9008_v62 }
0x109d   :  { %6199 = vmatpush3.msra.mxu0 %v8104_v16  ;;  %6216 = vmatpush3.msra.mxu1 %v7663_v35  ;;  %v2733_v35 = vpop.permute.xlu0 %2732 }
0x109e   :  { %6200 = vmatprep.subr.mxu0 %v9008_v62  ;;  %6217 = vmatprep.subr.mxu1 %v9008_v62 }
0x109f   :  { %6201 = vmatpush3.msra.mxu0 %v8110_v32  ;;  %6218 = vmatpush3.msra.mxu1 %v7669_v56 }
0x10a0   :  { %v2737_v34 = vpop.permute.xlu1 %2736  ;;  %6202 = vmatprep.subr.mxu0 %v9008_v62  ;;  %6219 = vmatprep.subr.mxu1 %v9008_v62 }
0x10a1   :  { %6203 = vmatpush3.msra.mxu0 %v8116_v36  ;;  %6220 = vmatpush3.msra.mxu1 %v7675_v57  ;;  %v2739_v56 = vsel %vm191_vm2, %v2733_v35, %v2737_v34  ;;  %v2836_v57 = vpop.permute.xlu0 %2835 }
0x10a2   :  { %6204 = vmatprep.subr.mxu0 %v9008_v62  ;;  %6221 = vmatprep.subr.mxu1 %v9008_v62 }
0x10a3   :  { %6205 = vmatpush3.msra.mxu0 %v8122_v2  ;;  %6222 = vmatpush3.msra.mxu1 %v7681_v59 }
0x10a4   :  { %6206 = vmatprep.subr.mxu0 %v9008_v62  ;;  %6223 = vmatprep.subr.mxu1 %v9008_v62 }
0x10a5   :  { %v2840_v44 = vpop.permute.xlu1 %2839  ;;  %6207 = vmatpush3.msra.mxu0 %v8129_v4  ;;  %6224 = vmatpush3.msra.mxu1 %v7687_v61 }
0x10a6   :  { %6209 = vmatmul.mubr.msk.f32.vlgmr.msra.gmra.mxu0 %vm409_vm3, %v2739_v56  ;;  %6225 = vmatprep.subr.mxu1 %v9008_v62  ;;  %v2842_v59 = vsel %vm191_vm2, %v2836_v57, %v2840_v44 }
0x10a7   :  { %6230 = vmatprep.subr.mxu0 %v9008_v62  ;;  %6226 = vmatpush3.msra.mxu1 %v7693_v1  ;;  %v2939_v1 = vpop.permute.xlu0 %2938 }
0x10a8   :  { %6227 = vmatprep.mubr.msk.f32.mxu1 %vm7185_vm0, %v9008_v62  ;;  %6231 = vmatpush3.msra.mxu0 %v7894_v22 }
0x10a9   :  { %6228 = vmatmul.mubr.msk.f32.vlgmr.msra.gmra.mxu1 %vm409_vm3, %v2842_v59  ;;  %6232 = vmatprep.subr.mxu0 %v9008_v62 }
0x10aa   :  { %6233 = vmatpush3.msra.mxu0 %v7900_v23  ;;  %6246 = vmatprep.mubr.msk.f32.mxu0 %vm7185_vm0, %v9008_v62 }
0x10ab   :  { %6234 = vmatprep.subr.mxu0 %v9008_v62  ;;  %6249 = vmatprep.subr.mxu1 %v9008_v62 }
0x10ac   :  { %6235 = vmatpush3.msra.mxu0 %v7907_v41  ;;  %6250 = vmatpush3.msra.mxu1 %v7709_v7  ;;  %v8194_v41 = vld [vmem:[#allocation7 + $0x2] ss:$0 sm:$0xff] }
0x10ad   :  { %6236 = vmatprep.subr.mxu0 %v9008_v62  ;;  %6251 = vmatprep.subr.mxu1 %v9008_v62 }
0x10ae   :  { %6237 = vmatpush3.msra.mxu0 %v7914_v27  ;;  %6252 = vmatpush3.msra.mxu1 %v7719_v8 }
0x10af   :  { %6238 = vmatprep.subr.mxu0 %v9008_v62  ;;  %6253 = vmatprep.subr.mxu1 %v9008_v62 }
0x10b0   :  { %6239 = vmatpush3.msra.mxu0 %v7920_v39  ;;  %6254 = vmatpush3.msra.mxu1 %v7730_v12 }
0x10b1   :  { %6240 = vmatprep.subr.mxu0 %v9008_v62  ;;  %6255 = vmatprep.subr.mxu1 %v9008_v62  ;;  %v2943_v61 = vpop.permute.xlu1 %2942 }
0x10b2   :  { %6241 = vmatpush3.msra.mxu0 %v7926_v51  ;;  %6256 = vmatpush3.msra.mxu1 %v7741_v17  ;;  %v2945_v7 = vsel %vm191_vm2, %v2939_v1, %v2943_v61 }
0x10b3   :  { %6242 = vmatprep.subr.mxu0 %v9008_v62  ;;  %6257 = vmatprep.mubr.msk.f32.mxu1 %vm7185_vm0, %v9008_v62 }
0x10b4   :  { %6243 = vmatpush3.msra.mxu0 %v7932_v28  ;;  %6260 = vmatprep.subr.mxu1 %v9008_v62 }
0x10b5   :  { %6244 = vmatprep.subr.mxu0 %v9008_v62 }
0x10b6   :  { %6245 = vmatpush3.msra.mxu0 %v7938_v47  ;;  %v8198_v47 = vld [vmem:[#allocation7 + $0x3] ss:$0 sm:$0xff] }
0x10b7   :  { %6247 = vmatmul.mubr.msk.f32.vlgmr.msra.gmra.mxu0 %vm409_vm3, %v2945_v7  ;;  %6279 = vmatprep.subr.mxu0 %v9008_v62 }
0x10b8   :  { %6280 = vmatpush3.msra.mxu0 %v7827_v9  ;;  %6295 = vmatprep.mubr.msk.f32.mxu0 %vm7185_vm0, %v9008_v62 }
0x10b9   :  { %6281 = vmatprep.subr.mxu0 %v9008_v62 }
0x10ba   :  { %6282 = vmatpush3.msra.mxu0 %v7833_v40 }
0x10bb   :  { %6283 = vmatprep.subr.mxu0 %v9008_v62 }
0x10bc   :  { %6284 = vmatpush3.msra.mxu0 %v7837_v30 }
0x10bd   :  { %6285 = vmatprep.subr.mxu0 %v9008_v62 }
0x10be   :  { %6286 = vmatpush3.msra.mxu0 %v7841_v15 }
0x10bf   :  { %6287 = vmatprep.subr.mxu0 %v9008_v62 }
0x10c0   :  { %6288 = vmatpush3.msra.mxu0 %v7845_v38 }
0x10c1   :  { %6289 = vmatprep.subr.mxu0 %v9008_v62 }
0x10c2   :  { %6290 = vmatpush3.msra.mxu0 %v7849_v48 }
0x10c3   :  { %6291 = vmatprep.subr.mxu0 %v9008_v62 }
0x10c4   :  { %6292 = vmatpush3.msra.mxu0 %v7853_v42 }
0x10c5   :  { %6293 = vmatprep.subr.mxu0 %v9008_v62 }
0x10c6   :  { %6294 = vmatpush3.msra.mxu0 %v7857_v18 }
0x10c7   :  { %6317 = vmatprep.subr.mxu0 %v9008_v62 }
0x1142   :  { %v2491_v8 = vpop.f32.mrf.mxu0 }
0x1143   :  { %v2496_v12 = vrot.slane %v2491_v8, 4 }
0x1144   :  { %v6153_v17 = vpop.f32.mrf.mxu0 }
0x1145   :  { %v2498_v9 = vadd.f32 %v2496_v12, %v7306_v11 }
0x1147   :  { %6791 = vtanh.f32 %v2498_v9  ;;  %v2499_v49 = vmul.f32 0.5, %v2498_v9 }
0x1154   :  { %v6792_v40 = vpop.eup %6791 }
0x1155   :  { %2509 = vrot.lane.b32.xlu0 %v6792_v40, %s7186_s0 }
0x1156   :  { %v2603_v30 = vpop.f32.mrf.mxu0 }
0x1157   :  { %v2604_v15 = vadd.f32 %v7971_v13, %v2603_v30 }
0x1158   :  { %v6172_v38 = vpop.f32.mrf.mxu0  ;;  %v2706_v48 = vpop.f32.mrf.mxu1 }
0x1159   :  { %6793 = vtanh.f32 %v2604_v15  ;;  %v2707_v42 = vadd.f32 %v7974_v52, %v2706_v48  ;;  %v2607_v3 = vmul.f32 0.5, %v2604_v15 }
0x115a   :  { %v6191_v18 = vpop.f32.mrf.mxu1 }
0x115b   :  { %6795 = vtanh.f32 %v2707_v42  ;;  %v2710_v10 = vmul.f32 0.5, %v2707_v42 }
0x1166   :  { %v6794_v22 = vpop.eup %6793  ;;  %v2809_v23 = vpop.f32.mrf.mxu0 }
0x1167   :  { %v2810_v27 = vadd.f32 %v8194_v41, %v2809_v23  ;;  %2614 = vrot.lane.b32.xlu1 %v6794_v22, %s7186_s0 }
0x1168   :  { %v6210_v39 = vpop.f32.mrf.mxu0  ;;  %v6796_v51 = vpop.eup %6795 }
0x1169   :  { %6797 = vtanh.f32 %v2810_v27  ;;  %v2912_v28 = vpop.f32.mrf.mxu1  ;;  %2717 = vrot.lane.b32.xlu0 %v6796_v51, %s7186_s0  ;;  %v2813_v19 = vmul.f32 0.5, %v2810_v27  ;;  %v2505_v51 = vrot.slane %v8013_v54, 6 }
0x116a   :  { %v2913_v13 = vadd.f32 %v8198_v47, %v2912_v28 }
0x116b   :  { %v6229_v52 = vpop.f32.mrf.mxu1 }
0x116c   :  { %6799 = vtanh.f32 %v2913_v13  ;;  %v2916_v6 = vmul.f32 0.5, %v2913_v13 }
0x1176   :  { %v6798_v45 = vpop.eup %6797 }
0x1177   :  { %v3015_v29 = vpop.f32.mrf.mxu0  ;;  %2820 = vrot.lane.b32.xlu1 %v6798_v45, %s7186_s0 }
0x1178   :  { %v3016_v50 = vadd.f32 %v7981_v58, %v3015_v29 }
0x1179   :  { %v6800_v31 = vpop.eup %6799  ;;  %v6248_v43 = vpop.f32.mrf.mxu0 }
0x117a   :  { %6801 = vtanh.f32 %v3016_v50  ;;  %2923 = vrot.lane.b32.xlu0 %v6800_v31, %s7186_s0  ;;  %v3019_v8 = vmul.f32 0.5, %v3016_v50 }
0x117b   :  { %6803 = vtanh.f32 %v2499_v49 }
0x117c   :  { %6805 = vtanh.f32 %v2607_v3 }
0x117d   :  { %6807 = vtanh.f32 %v2710_v10 }
0x117e   :  { %6809 = vtanh.f32 %v2813_v19 }
0x117f   :  { %6811 = vtanh.f32 %v2916_v6 }
0x1180   :  { %6813 = vtanh.f32 %v3019_v8 }
0x1187   :  { %v6802_v0 = vpop.eup %6801 }
0x1188   :  { %3026 = vrot.lane.b32.xlu1 %v6802_v0, %s7186_s0  ;;  %v6804_v53 = vpop.eup %6803 }
0x1189   :  { %v2501_v5 = vadd.f32 1.0, %v6804_v53  ;;  %v6806_v26 = vpop.eup %6805 }
0x118a   :  { %v6808_v20 = vpop.eup %6807  ;;  %v2609_v34 = vadd.f32 1.0, %v6806_v26 }
0x118b   :  { %v8206_v14 = vmul.f32 0.5, %v2501_v5  ;;  %v2712_v35 = vadd.f32 1.0, %v6808_v20  ;;  %v6810_v7 = vpop.eup %6809 }
0x118c   :  { %v8210_v56 = vmul.f32 0.5, %v2609_v34  ;;  %v6812_v12 = vpop.eup %6811  ;;  %v2815_v17 = vadd.f32 1.0, %v6810_v7 }
0x118d   :  { %v8213_v59 = vmul.f32 0.5, %v2712_v35  ;;  %v2918_v9 = vadd.f32 1.0, %v6812_v12  ;;  %v6814_v18 = vpop.eup %6813  ;;  %v2507_v28 = vmul.f32 %v2505_v51, %v8206_v14 }
0x118e   :  { %v8218_v40 = vmul.f32 0.5, %v2815_v17  ;;  %v3021_v22 = vadd.f32 1.0, %v6814_v18  ;;  %v2612_v29 = vmul.f32 %v8210_v56, %v8019_v60  ;;  %v8314_v18 = vld [vmem:[#allocation5] sm:$0xff] }
0x118f   :  { %v8221_v38 = vmul.f32 0.5, %v2918_v9  ;;  %v2715_v43 = vmul.f32 %v8213_v59, %v8024_v46  ;;  %v8284_v9 = vld [vmem:[#allocation5 + $0x38] sm:$0xff] }
0x1190   :  { %v8226_v23 = vmul.f32 0.5, %v3021_v22  ;;  %v2818_v49 = vmul.f32 %v8218_v40, %v8029_v24 }
0x1191   :  { %v2921_v5 = vmul.f32 %v8221_v38, %v8036_v55 }
0x11c7   :  { %v2510_v25 = vpop.permute.xlu0 %2509 }
0x11c8   :  { %v2512_v58 = vmul.f32 %v2510_v25, %v8206_v14 }
0x11ca   :  { %2514 = vrot.lane.b32.xlu0 %v2512_v58, %s7187_s24  ;;  %v3024_v58 = vmul.f32 %v8226_v23, %v8041_v33 }
0x11d9   :  { %v2615_v44 = vpop.permute.xlu1 %2614 }
0x11da   :  { %v2617_v57 = vmul.f32 %v2615_v44, %v8210_v56 }
0x11db   :  { %v2718_v61 = vpop.permute.xlu0 %2717 }
0x11dc   :  { %2619 = vrot.lane.b32.xlu1 %v2617_v57, %s7187_s24  ;;  %v2720_v1 = vmul.f32 %v2718_v61, %v8213_v59 }
0x11de   :  { %2722 = vrot.lane.b32.xlu0 %v2720_v1, %s7187_s24 }
0x11e9   :  { %v2821_v30 = vpop.permute.xlu1 %2820 }
0x11ea   :  { %v2823_v15 = vmul.f32 %v2821_v30, %v8218_v40  ;;  %v8294_v30 = vld [vmem:[#allocation5 + $0x28] sm:$0xff] }
0x11ec   :  { %v2924_v48 = vpop.permute.xlu0 %2923  ;;  %2825 = vrot.lane.b32.xlu1 %v2823_v15, %s7187_s24  ;;  %v8298_v15 = vld [vmem:[#allocation5 + $0x20] sm:$0xff] }
0x11ed   :  { %v2926_v42 = vmul.f32 %v2924_v48, %v8221_v38  ;;  %v8306_v48 = vld [vmem:[#allocation5 + $0x10] sm:$0xff] }
0x11ef   :  { %2928 = vrot.lane.b32.xlu0 %v2926_v42, %s7187_s24  ;;  %v8310_v42 = vld [vmem:[#allocation5 + $0x8] sm:$0xff] }
0x11fa   :  { %v3027_v27 = vpop.permute.xlu1 %3026 }
0x11fb   :  { %v3029_v39 = vmul.f32 %v3027_v27, %v8226_v23 }
0x11fd   :  { %3031 = vrot.lane.b32.xlu1 %v3029_v39, %s7187_s24 }
0x123c   :  { %v2515_v13 = vpop.permute.xlu0 %2514 }
0x123d   :  { %v8232_v52 = vadd.f32 %v2515_v13, %v2507_v28 }
0x123f   :  { %6815 = vtanh.f32 %v8232_v52 }
0x124c   :  { %v6816_v45 = vpop.eup %6815 }
0x124d   :  { %2520 = vrot.lane.b32.xlu0 %v6816_v45, %s7186_s0  ;;  %v8327_v45 = vld [vmem:[#allocation5 + $0xf8] sm:$0xff] }
0x124e   :  { %v2620_v50 = vpop.permute.xlu1 %2619 }
0x124f   :  { %v8238_v31 = vadd.f32 %v2620_v50, %v2612_v29  ;;  %v8357_v50 = vld [vmem:[#allocation5 + $0xd0] sm:$0xff] }
0x1250   :  { %v2723_v54 = vpop.permute.xlu0 %2722 }
0x1251   :  { %6817 = vtanh.f32 %v8238_v31  ;;  %v8243_v0 = vadd.f32 %v2723_v54, %v2715_v43  ;;  %v8364_v54 = vld [vmem:[#allocation5 + $0xc8] sm:$0xff] }
0x1253   :  { %6819 = vtanh.f32 %v8243_v0 }
0x125e   :  { %v6818_v53 = vpop.eup %6817  ;;  %v2826_v60 = vpop.permute.xlu1 %2825 }
0x125f   :  { %v8248_v3 = vadd.f32 %v2826_v60, %v2818_v49  ;;  %2625 = vrot.lane.b32.xlu1 %v6818_v53, %s7186_s0  ;;  %v8370_v49 = vld [vmem:[#allocation5 + $0xc0] sm:$0xff]  ;;  %v8381_v60 = vld [vmem:[#allocation5 + $0x130] sm:$0xff] }
0x1260   :  { %v6820_v46 = vpop.eup %6819 }
0x1261   :  { %6821 = vtanh.f32 %v8248_v3  ;;  %v2929_v10 = vpop.permute.xlu0 %2928  ;;  %2728 = vrot.lane.b32.xlu0 %v6820_v46, %s7186_s0  ;;  %v8394_v46 = vld [vmem:[#allocation5 + $0x120] sm:$0xff] }
0x1262   :  { %v8254_v25 = vadd.f32 %v2929_v10, %v2921_v5  ;;  %v8388_v5 = vld [vmem:[#allocation5 + $0x128] sm:$0xff]  ;;  %v8400_v10 = vld [vmem:[#allocation5 + $0x118] sm:$0xff] }
0x1264   :  { %6823 = vtanh.f32 %v8254_v25 }
0x126e   :  { %v6822_v24 = vpop.eup %6821 }
0x126f   :  { %v3032_v19 = vpop.permute.xlu1 %3031  ;;  %2831 = vrot.lane.b32.xlu1 %v6822_v24, %s7186_s0  ;;  %v8406_v24 = vld [vmem:[#allocation5 + $0x110] sm:$0xff] }
0x1270   :  { %v8261_v26 = vadd.f32 %v3032_v19, %v3024_v58  ;;  %v8412_v19 = vld [vmem:[#allocation5 + $0x108] sm:$0xff] }
0x1271   :  { %v6824_v55 = vpop.eup %6823 }
0x1272   :  { %6825 = vtanh.f32 %v8261_v26  ;;  %2934 = vrot.lane.b32.xlu0 %v6824_v55, %s7186_s0 }
0x127f   :  { %v6826_v6 = vpop.eup %6825 }
0x1280   :  { %3037 = vrot.lane.b32.xlu1 %v6826_v6, %s7186_s0 }
0x12bf   :  { %v2521_v20 = vpop.permute.xlu0 %2520 }
0x12c0   :  { %v2523_v34 = vmul.f32 %v2521_v20, %v8206_v14  ;;  %v8419_v20 = vld [vmem:[#allocation5 + $0x100] sm:$0xff] }
0x12c2   :  { %v3042_v35 = vrot.slane %v2523_v34, 4  ;;  %3146 = vrot.lane.b32.xlu1 %v2523_v34, %s7187_s24  ;;  %v8425_v34 = vld [vmem:[#allocation5 + $0x78] sm:$0xff] }
0x12c4   :  { %3043 = vrot.lane.b32.xlu0 %v3042_v35, %s7187_s24  ;;  %v8431_v35 = vld [vmem:[#allocation5 + $0x70] sm:$0xff] }
0x12d1   :  { %v2626_v33 = vpop.permute.xlu1 %2625 }
0x12d2   :  { %v2628_v44 = vmul.f32 %v2626_v33, %v8210_v56  ;;  %v8437_v33 = vld [vmem:[#allocation5 + $0x68] sm:$0xff] }
0x12d3   :  { %v2729_v61 = vpop.permute.xlu0 %2728 }
0x12d4   :  { %v3150_v57 = vrot.slane %v2628_v44, 4  ;;  %3251 = vrot.lane.b32.xlu1 %v2628_v44, %s7187_s24  ;;  %v2731_v1 = vmul.f32 %v2729_v61, %v8213_v59  ;;  %v8444_v44 = vld [vmem:[#allocation5 + $0x60] sm:$0xff]  ;;  %v8454_v61 = vld [vmem:[#allocation5 + $0x50] sm:$0xff] }
0x12d6   :  { %3151 = vrot.lane.b32.xlu0 %v3150_v57, %s7186_s0  ;;  %v8450_v57 = vld [vmem:[#allocation5 + $0x58] sm:$0xff] }
0x12d8   :  { %3354 = vrot.lane.b32.xlu1 %v2731_v1, %s7187_s24 }
0x12da   :  { %3255 = vrot.lane.b32.xlu0 %v2731_v1, %s7186_s0  ;;  %v8458_v1 = vld [vmem:[#allocation5 + $0x48] sm:$0xff] }
0x12e1   :  { %v2832_v14 = vpop.permute.xlu1 %2831 }
0x12e2   :  { %v2834_v7 = vmul.f32 %v2832_v14, %v8218_v40  ;;  %v8290_v40 = vld [vmem:[#allocation5 + $0x30] sm:$0xff]  ;;  %v8462_v14 = vld [vmem:[#allocation5 + $0x40] sm:$0xff] }
0x12e4   :  { %v2935_v8 = vpop.permute.xlu0 %2934  ;;  %3457 = vrot.lane.b32.xlu1 %v2834_v7, %s7187_s24  ;;  %3358 = vrot.lane.b32.xlu0 %v2834_v7, %s7186_s0 }
0x12e5   :  { %v2937_v56 = vmul.f32 %v2935_v8, %v8221_v38  ;;  %v8302_v38 = vld [vmem:[#allocation5 + $0x18] sm:$0xff] }
0x12e8   :  { %3560 = vrot.lane.b32.xlu1 %v2937_v56, %s7187_s24  ;;  %3461 = vrot.lane.b32.xlu0 %v2937_v56, %s7186_s0 }
0x12f2   :  { %v3038_v59 = vpop.permute.xlu1 %3037 }
0x12f3   :  { %v3040_v12 = vmul.f32 %v3038_v59, %v8226_v23 }
0x12f5   :  { %3564 = vrot.lane.b32.xlu0 %v3040_v12, %s7186_s0 }
0x1334   :  { %v3147_v22 = vpop.permute.xlu1 %3146 }
0x1336   :  { %v3044_v17 = vpop.permute.xlu0 %3043 }
0x1337   :  { %6258 = vmatmul.mubr.msk.f32.vlgmr.msra.gmra.mxu1 %vm191_vm2, %v3044_v17 }
0x1338   :  { %6261 = vmatpush3.msra.mxu1 %v8284_v9  ;;  %6276 = vmatprep.mubr.msk.f32.mxu1 %vm7185_vm0, %v9008_v62 }
0x1339   :  { %6262 = vmatprep.subr.mxu1 %v9008_v62 }
0x133a   :  { %6263 = vmatpush3.msra.mxu1 %v8290_v40 }
0x133b   :  { %6264 = vmatprep.subr.mxu1 %v9008_v62 }
0x133c   :  { %6265 = vmatpush3.msra.mxu1 %v8294_v30 }
0x133d   :  { %6266 = vmatprep.subr.mxu1 %v9008_v62 }
0x133e   :  { %6267 = vmatpush3.msra.mxu1 %v8298_v15 }
0x133f   :  { %6268 = vmatprep.subr.mxu1 %v9008_v62 }
0x1340   :  { %6269 = vmatpush3.msra.mxu1 %v8302_v38 }
0x1341   :  { %6270 = vmatprep.subr.mxu1 %v9008_v62 }
0x1342   :  { %6271 = vmatpush3.msra.mxu1 %v8306_v48 }
0x1343   :  { %6272 = vmatprep.subr.mxu1 %v9008_v62 }
0x1344   :  { %6273 = vmatpush3.msra.mxu1 %v8310_v42 }
0x1345   :  { %6274 = vmatprep.subr.mxu1 %v9008_v62 }
0x1346   :  { %6275 = vmatpush3.msra.mxu1 %v8314_v18  ;;  %v3252_v51 = vpop.permute.xlu1 %3251 }
0x1347   :  { %6298 = vmatprep.subr.mxu1 %v9008_v62 }
0x1348   :  { %v3152_v23 = vpop.permute.xlu0 %3151 }
0x1349   :  { %v3154_v27 = vsel %vm191_vm2, %v3147_v22, %v3152_v23 }
0x134a   :  { %v3156_v39 = vrot.slane %v3154_v27, 4 }
0x134c   :  { %6277 = vmatmul.mubr.msk.f32.vlgmr.msra.gmra.mxu1 %vm409_vm3, %v3156_v39  ;;  %v3256_v28 = vpop.permute.xlu0 %3255 }
0x134d   :  { %6299 = vmatpush3.msra.mxu1 %v8085_v63  ;;  %v3258_v13 = vsel %vm191_vm2, %v3252_v51, %v3256_v28  ;;  %6314 = vmatprep.mubr.msk.f32.mxu1 %vm7185_vm0, %v9008_v62  ;;  %v8333_v63 = vld [vmem:[#allocation5 + $0xf0] sm:$0xff] }
0x134e   :  { %6300 = vmatprep.subr.mxu1 %v9008_v62  ;;  %6296 = vmatmul.mubr.msk.f32.vlgmr.msra.gmra.mxu0 %vm409_vm3, %v3258_v13 }
0x134f   :  { %6301 = vmatpush3.msra.mxu1 %v8092_v21  ;;  %6318 = vmatpush3.msra.mxu0 %v8327_v45  ;;  %v8339_v21 = vld [vmem:[#allocation5 + $0xe8] sm:$0xff] }
0x1350   :  { %6302 = vmatprep.subr.mxu1 %v9008_v62  ;;  %6319 = vmatprep.subr.mxu0 %v9008_v62 }
0x1351   :  { %6303 = vmatpush3.msra.mxu1 %v8098_v37  ;;  %6320 = vmatpush3.msra.mxu0 %v8333_v63  ;;  %v8345_v37 = vld [vmem:[#allocation5 + $0xe0] sm:$0xff] }
0x1352   :  { %6304 = vmatprep.subr.mxu1 %v9008_v62  ;;  %6321 = vmatprep.subr.mxu0 %v9008_v62 }
0x1353   :  { %6305 = vmatpush3.msra.mxu1 %v8104_v16  ;;  %6322 = vmatpush3.msra.mxu0 %v8339_v21  ;;  %v8351_v16 = vld [vmem:[#allocation5 + $0xd8] sm:$0xff] }
0x1354   :  { %6306 = vmatprep.subr.mxu1 %v9008_v62  ;;  %6323 = vmatprep.subr.mxu0 %v9008_v62 }
0x1355   :  { %6307 = vmatpush3.msra.mxu1 %v8110_v32  ;;  %6324 = vmatpush3.msra.mxu0 %v8345_v37  ;;  %v3355_v32 = vpop.permute.xlu1 %3354 }
0x1356   :  { %6308 = vmatprep.subr.mxu1 %v9008_v62  ;;  %6325 = vmatprep.subr.mxu0 %v9008_v62  ;;  %v3359_v29 = vpop.permute.xlu0 %3358 }
0x1357   :  { %6309 = vmatpush3.msra.mxu1 %v8116_v36  ;;  %6326 = vmatpush3.msra.mxu0 %v8351_v16  ;;  %v3361_v36 = vsel %vm191_vm2, %v3355_v32, %v3359_v29  ;;  %v8479_v32 = vld [vmem:[#allocation7 + $0x4] ss:$0 sm:$0xff] }
0x1358   :  { %6310 = vmatprep.subr.mxu1 %v9008_v62  ;;  %6327 = vmatprep.subr.mxu0 %v9008_v62 }
0x1359   :  { %6311 = vmatpush3.msra.mxu1 %v8122_v2  ;;  %6328 = vmatpush3.msra.mxu0 %v8357_v50  ;;  %v3458_v2 = vpop.permute.xlu1 %3457 }
0x135a   :  { %6312 = vmatprep.subr.mxu1 %v9008_v62  ;;  %6329 = vmatprep.subr.mxu0 %v9008_v62  ;;  %v3462_v43 = vpop.permute.xlu0 %3461 }
0x135b   :  { %6313 = vmatpush3.msra.mxu1 %v8129_v4  ;;  %6330 = vmatpush3.msra.mxu0 %v8364_v54  ;;  %v3464_v53 = vsel %vm191_vm2, %v3458_v2, %v3462_v43  ;;  %v8376_v4 = vld [vmem:[#allocation5 + $0x138] sm:$0xff] }
0x135c   :  { %6315 = vmatmul.mubr.msk.f32.vlgmr.msra.gmra.mxu1 %vm409_vm3, %v3361_v36  ;;  %6331 = vmatprep.subr.mxu0 %v9008_v62 }
0x135d   :  { %6336 = vmatprep.subr.mxu1 %v9008_v62  ;;  %6332 = vmatpush3.msra.mxu0 %v8370_v49  ;;  %v3561_v55 = vpop.permute.xlu1 %3560 }
0x135e   :  { %6333 = vmatprep.mubr.msk.f32.mxu0 %vm7185_vm0, %v9008_v62  ;;  %6337 = vmatpush3.msra.mxu1 %v8376_v4 }
0x135f   :  { %6334 = vmatmul.mubr.msk.f32.vlgmr.msra.gmra.mxu0 %vm409_vm3, %v3464_v53  ;;  %6338 = vmatprep.subr.mxu1 %v9008_v62 }
0x1360   :  { %6339 = vmatpush3.msra.mxu1 %v8381_v60  ;;  %6352 = vmatprep.mubr.msk.f32.mxu1 %vm7185_vm0, %v9008_v62 }
0x1361   :  { %6340 = vmatprep.subr.mxu1 %v9008_v62  ;;  %6355 = vmatprep.subr.mxu0 %v9008_v62 }
0x1362   :  { %6341 = vmatpush3.msra.mxu1 %v8388_v5  ;;  %6356 = vmatpush3.msra.mxu0 %v8284_v9  ;;  %v8468_v9 = vld [vmem:[#allocation7] ss:$0 sm:$0xff] }
0x1363   :  { %6342 = vmatprep.subr.mxu1 %v9008_v62  ;;  %6357 = vmatprep.subr.mxu0 %v9008_v62 }
0x1364   :  { %6343 = vmatpush3.msra.mxu1 %v8394_v46  ;;  %6358 = vmatpush3.msra.mxu0 %v8290_v40 }
0x1365   :  { %6344 = vmatprep.subr.mxu1 %v9008_v62  ;;  %6359 = vmatprep.subr.mxu0 %v9008_v62 }
0x1366   :  { %6345 = vmatpush3.msra.mxu1 %v8400_v10  ;;  %6360 = vmatpush3.msra.mxu0 %v8294_v30 }
0x1367   :  { %6346 = vmatprep.subr.mxu1 %v9008_v62  ;;  %6361 = vmatprep.subr.mxu0 %v9008_v62  ;;  %v3565_v58 = vpop.permute.xlu0 %3564 }
0x1368   :  { %6347 = vmatpush3.msra.mxu1 %v8406_v24  ;;  %6362 = vmatpush3.msra.mxu0 %v8298_v15  ;;  %v3567_v6 = vsel %vm191_vm2, %v3561_v55, %v3565_v58 }
0x1369   :  { %6348 = vmatprep.subr.mxu1 %v9008_v62  ;;  %6363 = vmatprep.subr.mxu0 %v9008_v62 }
0x136a   :  { %6349 = vmatpush3.msra.mxu1 %v8412_v19  ;;  %6364 = vmatpush3.msra.mxu0 %v8302_v38  ;;  %v8471_v38 = vld [vmem:[#allocation7 + $0x1] ss:$0 sm:$0xff] }
0x136b   :  { %6350 = vmatprep.subr.mxu1 %v9008_v62  ;;  %6365 = vmatprep.subr.mxu0 %v9008_v62 }
0x136c   :  { %6351 = vmatpush3.msra.mxu1 %v8419_v20  ;;  %6366 = vmatpush3.msra.mxu0 %v8306_v48 }
0x136d   :  { %6353 = vmatmul.mubr.msk.f32.vlgmr.msra.gmra.mxu1 %vm409_vm3, %v3567_v6  ;;  %6374 = vmatprep.subr.mxu1 %v9008_v62 }
0x136e   :  { %6375 = vmatpush3.msra.mxu1 %v8425_v34  ;;  %6367 = vmatprep.subr.mxu0 %v9008_v62 }
0x136f   :  { %6376 = vmatprep.subr.mxu1 %v9008_v62  ;;  %6368 = vmatpush3.msra.mxu0 %v8310_v42 }
0x1370   :  { %6377 = vmatpush3.msra.mxu1 %v8431_v35  ;;  %6369 = vmatprep.subr.mxu0 %v9008_v62 }
0x1371   :  { %6378 = vmatprep.subr.mxu1 %v9008_v62  ;;  %6370 = vmatpush3.msra.mxu0 %v8314_v18 }
0x1372   :  { %6379 = vmatpush3.msra.mxu1 %v8437_v33  ;;  %6371 = vmatprep.mubr.msk.f32.mxu0 %vm7185_vm0, %v9008_v62 }
0x1373   :  { %6380 = vmatprep.subr.mxu1 %v9008_v62  ;;  %6393 = vmatprep.subr.mxu0 %v9008_v62 }
0x1374   :  { %6381 = vmatpush3.msra.mxu1 %v8444_v44  ;;  %6390 = vmatprep.mubr.msk.f32.mxu1 %vm7185_vm0, %v9008_v62 }
0x1375   :  { %6382 = vmatprep.subr.mxu1 %v9008_v62 }
0x1376   :  { %6383 = vmatpush3.msra.mxu1 %v8450_v57 }
0x1377   :  { %6384 = vmatprep.subr.mxu1 %v9008_v62 }
0x1378   :  { %6385 = vmatpush3.msra.mxu1 %v8454_v61 }
0x1379   :  { %6386 = vmatprep.subr.mxu1 %v9008_v62 }
0x137a   :  { %6387 = vmatpush3.msra.mxu1 %v8458_v1 }
0x137b   :  { %6388 = vmatprep.subr.mxu1 %v9008_v62 }
0x137c   :  { %6389 = vmatpush3.msra.mxu1 %v8462_v14 }
0x137d   :  { %6412 = vmatprep.subr.mxu1 %v9008_v62 }
0x13f7   :  { %v3113_v7 = vpop.f32.mrf.mxu1 }
0x13f8   :  { %v3118_v8 = vrot.slane %v3113_v7, 2 }
0x13f9   :  { %v6259_v56 = vpop.f32.mrf.mxu1 }
0x13fa   :  { %v3120_v59 = vadd.f32 %v3118_v8, %v7306_v11 }
0x13fc   :  { %6827 = vtanh.f32 %v3120_v59 }
0x1409   :  { %v6828_v12 = vpop.eup %6827 }
0x140a   :  { %3131 = vrot.lane.b32.xlu0 %v6828_v12, %s7186_s0 }
0x140c   :  { %v3225_v17 = vpop.f32.mrf.mxu1 }
0x140d   :  { %v3226_v40 = vadd.f32 %v8468_v9, %v3225_v17 }
0x140e   :  { %v6278_v30 = vpop.f32.mrf.mxu1  ;;  %v3328_v15 = vpop.f32.mrf.mxu0 }
0x140f   :  { %6829 = vtanh.f32 %v3226_v40  ;;  %v3329_v48 = vadd.f32 %v8471_v38, %v3328_v15  ;;  %v3229_v58 = vmul.f32 0.5, %v3226_v40 }
0x1410   :  { %v6297_v42 = vpop.f32.mrf.mxu0 }
0x1411   :  { %6831 = vtanh.f32 %v3329_v48  ;;  %v3332_v6 = vmul.f32 0.5, %v3329_v48 }
0x141c   :  { %v6830_v18 = vpop.eup %6829  ;;  %v3431_v11 = vpop.f32.mrf.mxu1 }
0x141d   :  { %v3432_v22 = vadd.f32 %v8194_v41, %v3431_v11  ;;  %3236 = vrot.lane.b32.xlu1 %v6830_v18, %s7186_s0 }
0x141e   :  { %v6316_v23 = vpop.f32.mrf.mxu1  ;;  %v6832_v39 = vpop.eup %6831 }
0x141f   :  { %6833 = vtanh.f32 %v3432_v22  ;;  %v3534_v27 = vpop.f32.mrf.mxu0  ;;  %v3435_v12 = vmul.f32 0.5, %v3432_v22 }
0x1420   :  { %v3535_v51 = vadd.f32 %v8198_v47, %v3534_v27  ;;  %v3121_v47 = vmul.f32 0.5, %v3120_v59 }
0x1421   :  { %v6335_v28 = vpop.f32.mrf.mxu0  ;;  %3339 = vrot.lane.b32.xlu1 %v6832_v39, %s7186_s0 }
0x1422   :  { %6835 = vtanh.f32 %v3535_v51  ;;  %v3538_v30 = vmul.f32 0.5, %v3535_v51 }
0x142c   :  { %v6834_v13 = vpop.eup %6833 }
0x142d   :  { %v3637_v29 = vpop.f32.mrf.mxu1  ;;  %3442 = vrot.lane.b32.xlu0 %v6834_v13, %s7186_s0 }
0x142e   :  { %v3638_v41 = vadd.f32 %v8479_v32, %v3637_v29 }
0x142f   :  { %v6836_v36 = vpop.eup %6835  ;;  %v6354_v43 = vpop.f32.mrf.mxu1 }
0x1430   :  { %6837 = vtanh.f32 %v3638_v41  ;;  %3545 = vrot.lane.b32.xlu1 %v6836_v36, %s7186_s0  ;;  %v3641_v39 = vmul.f32 0.5, %v3638_v41 }
0x1431   :  { %6839 = vtanh.f32 %v3121_v47 }
0x1432   :  { %6841 = vtanh.f32 %v3229_v58 }
0x1433   :  { %6843 = vtanh.f32 %v3332_v6 }
0x1434   :  { %6845 = vtanh.f32 %v3435_v12 }
0x1435   :  { %6847 = vtanh.f32 %v3538_v30 }
0x1436   :  { %6849 = vtanh.f32 %v3641_v39 }
0x143d   :  { %v6838_v2 = vpop.eup %6837 }
0x143e   :  { %3648 = vrot.lane.b32.xlu0 %v6838_v2, %s7186_s0  ;;  %v6840_v53 = vpop.eup %6839 }
0x143f   :  { %v3123_v55 = vadd.f32 1.0, %v6840_v53  ;;  %v6842_v17 = vpop.eup %6841 }
0x1440   :  { %v3231_v15 = vadd.f32 1.0, %v6842_v17  ;;  %v6844_v59 = vpop.eup %6843 }
0x1441   :  { %v8484_v7 = vmul.f32 0.5, %v3123_v55  ;;  %v3334_v40 = vadd.f32 1.0, %v6844_v59  ;;  %v6846_v22 = vpop.eup %6845 }
0x1442   :  { %v8488_v42 = vmul.f32 0.5, %v3231_v15  ;;  %v6848_v51 = vpop.eup %6847  ;;  %v3437_v28 = vadd.f32 1.0, %v6846_v22 }
0x1443   :  { %v8492_v11 = vmul.f32 0.5, %v3334_v40  ;;  %v3540_v13 = vadd.f32 1.0, %v6848_v51  ;;  %v6850_v58 = vpop.eup %6849 }
0x1444   :  { %v8496_v29 = vmul.f32 0.5, %v3437_v28  ;;  %v3643_v41 = vadd.f32 1.0, %v6850_v58  ;;  %v3234_v59 = vmul.f32 %v8488_v42, %v8238_v31 }
0x1445   :  { %v8499_v2 = vmul.f32 0.5, %v3540_v13 }
0x1446   :  { %v3644_v55 = vmul.f32 0.5, %v3643_v41 }
0x1447   :  { %v3543_v31 = vmul.f32 %v8499_v2, %v8254_v25 }
0x147c   :  { %v3132_v8 = vpop.permute.xlu0 %3131 }
0x147d   :  { %v3134_v56 = vmul.f32 %v3132_v8, %v8484_v7 }
0x147f   :  { %3136 = vrot.lane.b32.xlu0 %v3134_v56, %s7187_s24  ;;  %v3127_v56 = vrot.slane %v8232_v52, 6 }
0x1481   :  { %v3129_v12 = vmul.f32 %v3127_v56, %v8484_v7 }
0x148f   :  { %v3237_v18 = vpop.permute.xlu1 %3236 }
0x1490   :  { %v3239_v48 = vmul.f32 %v3237_v18, %v8488_v42 }
0x1492   :  { %3241 = vrot.lane.b32.xlu1 %v3239_v48, %s7187_s24  ;;  %v3337_v48 = vmul.f32 %v8492_v11, %v8243_v0 }
0x1493   :  { %v3340_v23 = vpop.permute.xlu1 %3339 }
0x1494   :  { %v3342_v27 = vmul.f32 %v3340_v23, %v8492_v11 }
0x1496   :  { %3344 = vrot.lane.b32.xlu1 %v3342_v27, %s7187_s24  ;;  %v3440_v27 = vmul.f32 %v8496_v29, %v8248_v3 }
0x149f   :  { %v3443_v36 = vpop.permute.xlu0 %3442 }
0x14a0   :  { %v3445_v43 = vmul.f32 %v3443_v36, %v8496_v29  ;;  %v3646_v36 = vmul.f32 %v3644_v55, %v8261_v26 }
0x14a2   :  { %v3546_v47 = vpop.permute.xlu1 %3545  ;;  %3447 = vrot.lane.b32.xlu0 %v3445_v43, %s7187_s24 }
0x14a3   :  { %v3548_v53 = vmul.f32 %v3546_v47, %v8499_v2 }
0x14a5   :  { %3550 = vrot.lane.b32.xlu1 %v3548_v53, %s7187_s24 }
0x14b0   :  { %v3649_v6 = vpop.permute.xlu0 %3648 }
0x14b1   :  { %v3651_v8 = vmul.f32 %v3649_v6, %v3644_v55 }
0x14b3   :  { %3653 = vrot.lane.b32.xlu0 %v3651_v8, %s7187_s24 }
0x14f1   :  { %v3137_v17 = vpop.permute.xlu0 %3136 }
0x14f2   :  { %v3139_v30 = vadd.f32 %v3137_v17, %v3129_v12 }
0x14f4   :  { %6851 = vtanh.f32 %v3139_v30 }
0x1501   :  { %v6852_v15 = vpop.eup %6851 }
0x1502   :  { %3142 = vrot.lane.b32.xlu0 %v6852_v15, %s7186_s0 }
0x1504   :  { %v3242_v40 = vpop.permute.xlu1 %3241 }
0x1505   :  { %v8510_v18 = vadd.f32 %v3242_v40, %v3234_v59 }
0x1507   :  { %6853 = vtanh.f32 %v8510_v18 }
0x1508   :  { %v3345_v52 = vpop.permute.xlu1 %3344 }
0x1509   :  { %v8515_v23 = vadd.f32 %v3345_v52, %v3337_v48 }
0x150b   :  { %6855 = vtanh.f32 %v8515_v23 }
0x1514   :  { %v6854_v22 = vpop.eup %6853  ;;  %v3448_v39 = vpop.permute.xlu0 %3447 }
0x1515   :  { %v8520_v51 = vadd.f32 %v3448_v39, %v3440_v27  ;;  %3247 = vrot.lane.b32.xlu1 %v6854_v22, %s7186_s0  ;;  %v8554_v22 = vld [vmem:[#allocation5 + $0xb8] sm:$0xff]  ;;  %v8568_v39 = vld [vmem:[#allocation5 + $0xa8] sm:$0xff] }
0x1517   :  { %6857 = vtanh.f32 %v8520_v51  ;;  %v3551_v0 = vpop.permute.xlu1 %3550 }
0x1518   :  { %v6856_v28 = vpop.eup %6855  ;;  %v8526_v13 = vadd.f32 %v3551_v0, %v3543_v31  ;;  %v8574_v31 = vld [vmem:[#allocation5 + $0xa0] sm:$0xff]  ;;  %v8580_v0 = vld [vmem:[#allocation5 + $0x98] sm:$0xff] }
0x1519   :  { %3350 = vrot.lane.b32.xlu1 %v6856_v28, %s7186_s0 }
0x151a   :  { %6859 = vtanh.f32 %v8526_v13 }
0x1524   :  { %v6858_v3 = vpop.eup %6857 }
0x1525   :  { %v3654_v43 = vpop.permute.xlu0 %3653  ;;  %3453 = vrot.lane.b32.xlu0 %v6858_v3, %s7186_s0  ;;  %v8586_v3 = vld [vmem:[#allocation5 + $0x90] sm:$0xff] }
0x1526   :  { %v8532_v47 = vadd.f32 %v3654_v43, %v3646_v36  ;;  %v8592_v43 = vld [vmem:[#allocation5 + $0x88] sm:$0xff] }
0x1527   :  { %v6860_v53 = vpop.eup %6859 }
0x1528   :  { %6861 = vtanh.f32 %v8532_v47  ;;  %3556 = vrot.lane.b32.xlu1 %v6860_v53, %s7186_s0 }
0x1535   :  { %v6862_v25 = vpop.eup %6861 }
0x1536   :  { %3659 = vrot.lane.b32.xlu0 %v6862_v25, %s7186_s0 }
0x1574   :  { %v3143_v58 = vpop.permute.xlu0 %3142 }
0x1575   :  { %v3145_v41 = vmul.f32 %v3143_v58, %v8484_v7  ;;  %v8599_v58 = vld [vmem:[#allocation5 + $0x80] sm:$0xff] }
0x1577   :  { %3664 = vrot.lane.b32.xlu1 %v3145_v41, %s7187_s24 }
0x1587   :  { %v3248_v6 = vpop.permute.xlu1 %3247 }
0x1588   :  { %v3250_v26 = vmul.f32 %v3248_v6, %v8488_v42 }
0x158a   :  { %v3668_v8 = vrot.slane %v3250_v26, 2  ;;  %3769 = vrot.lane.b32.xlu1 %v3250_v26, %s7187_s24 }
0x158b   :  { %v3351_v56 = vpop.permute.xlu1 %3350 }
0x158c   :  { %v3353_v12 = vmul.f32 %v3351_v56, %v8492_v11  ;;  %3669 = vrot.lane.b32.xlu0 %v3668_v8, %s7186_s0 }
0x158e   :  { %3872 = vrot.lane.b32.xlu1 %v3353_v12, %s7187_s24 }
0x1590   :  { %3773 = vrot.lane.b32.xlu0 %v3353_v12, %s7186_s0  ;;  %v8670_v12 = vld [vmem:[#allocation7 + $0x2] ss:$0 sm:$0xff] }
0x1597   :  { %v3454_v17 = vpop.permute.xlu0 %3453 }
0x1598   :  { %v3456_v7 = vmul.f32 %v3454_v17, %v8496_v29 }
0x159a   :  { %v3557_v30 = vpop.permute.xlu1 %3556  ;;  %3975 = vrot.lane.b32.xlu1 %v3456_v7, %s7187_s24  ;;  %3876 = vrot.lane.b32.xlu0 %v3456_v7, %s7186_s0 }
0x159b   :  { %v3559_v42 = vmul.f32 %v3557_v30, %v8499_v2 }
0x159e   :  { %4078 = vrot.lane.b32.xlu1 %v3559_v42, %s7187_s24  ;;  %3979 = vrot.lane.b32.xlu0 %v3559_v42, %s7186_s0 }
0x15a8   :  { %v3660_v11 = vpop.permute.xlu0 %3659 }
0x15a9   :  { %v3662_v15 = vmul.f32 %v3660_v11, %v3644_v55  ;;  %v8562_v55 = vld [vmem:[#allocation5 + $0xb0] sm:$0xff] }
0x15ab   :  { %4082 = vrot.lane.b32.xlu0 %v3662_v15, %s7186_s0 }
0x15e9   :  { %v3665_v59 = vpop.permute.xlu1 %3664 }
0x15fc   :  { %v3770_v52 = vpop.permute.xlu1 %3769 }
0x15fe   :  { %v3670_v40 = vpop.permute.xlu0 %3669 }
0x15ff   :  { %v3672_v48 = vsel %vm191_vm2, %v3665_v59, %v3670_v40 }
0x1600   :  { %v3674_v29 = vrot.slane %v3672_v48, 6  ;;  %v3873_v36 = vpop.permute.xlu1 %3872 }
0x1602   :  { %6372 = vmatmul.mubr.msk.f32.vlgmr.msra.gmra.mxu0 %vm409_vm3, %v3674_v29  ;;  %v3774_v27 = vpop.permute.xlu0 %3773 }
0x1603   :  { %6394 = vmatpush3.msra.mxu0 %v8554_v22  ;;  %v3776_v2 = vsel %vm191_vm2, %v3770_v52, %v3774_v27  ;;  %6409 = vmatprep.mubr.msk.f32.mxu0 %vm7185_vm0, %v9008_v62 }
0x1604   :  { %6395 = vmatprep.subr.mxu0 %v9008_v62  ;;  %6391 = vmatmul.mubr.msk.f32.vlgmr.msra.gmra.mxu1 %vm409_vm3, %v3776_v2 }
0x1605   :  { %6396 = vmatpush3.msra.mxu0 %v8562_v55  ;;  %6413 = vmatpush3.msra.mxu1 %v8327_v45 }
0x1606   :  { %6397 = vmatprep.subr.mxu0 %v9008_v62  ;;  %6414 = vmatprep.subr.mxu1 %v9008_v62 }
0x1607   :  { %6398 = vmatpush3.msra.mxu0 %v8568_v39  ;;  %6415 = vmatpush3.msra.mxu1 %v8333_v63 }
0x1608   :  { %6399 = vmatprep.subr.mxu0 %v9008_v62  ;;  %6416 = vmatprep.subr.mxu1 %v9008_v62 }
0x1609   :  { %6400 = vmatpush3.msra.mxu0 %v8574_v31  ;;  %6417 = vmatpush3.msra.mxu1 %v8339_v21 }
0x160a   :  { %6401 = vmatprep.subr.mxu0 %v9008_v62  ;;  %6418 = vmatprep.subr.mxu1 %v9008_v62 }
0x160b   :  { %6402 = vmatpush3.msra.mxu0 %v8580_v0  ;;  %6419 = vmatpush3.msra.mxu1 %v8345_v37 }
0x160c   :  { %6403 = vmatprep.subr.mxu0 %v9008_v62  ;;  %6420 = vmatprep.subr.mxu1 %v9008_v62  ;;  %v3877_v28 = vpop.permute.xlu0 %3876  ;;  %v3976_v41 = vpop.permute.xlu1 %3975 }
0x160d   :  { %6404 = vmatpush3.msra.mxu0 %v8586_v3  ;;  %6421 = vmatpush3.msra.mxu1 %v8351_v16  ;;  %v3879_v53 = vsel %vm191_vm2, %v3873_v36, %v3877_v28 }
0x160e   :  { %6405 = vmatprep.subr.mxu0 %v9008_v62  ;;  %6422 = vmatprep.subr.mxu1 %v9008_v62 }
0x160f   :  { %6406 = vmatpush3.msra.mxu0 %v8592_v43  ;;  %6423 = vmatpush3.msra.mxu1 %v8357_v50 }
0x1610   :  { %6407 = vmatprep.subr.mxu0 %v9008_v62  ;;  %6424 = vmatprep.subr.mxu1 %v9008_v62  ;;  %v3980_v25 = vpop.permute.xlu0 %3979 }
0x1611   :  { %6408 = vmatpush3.msra.mxu0 %v8599_v58  ;;  %6425 = vmatpush3.msra.mxu1 %v8364_v54  ;;  %v3982_v6 = vsel %vm191_vm2, %v3976_v41, %v3980_v25 }
0x1612   :  { %6410 = vmatmul.mubr.msk.f32.vlgmr.msra.gmra.mxu0 %vm409_vm3, %v3879_v53  ;;  %6426 = vmatprep.subr.mxu1 %v9008_v62 }
0x1613   :  { %6431 = vmatprep.subr.mxu0 %v9008_v62  ;;  %6427 = vmatpush3.msra.mxu1 %v8370_v49 }
0x1614   :  { %6428 = vmatprep.mubr.msk.f32.mxu1 %vm7185_vm0, %v9008_v62  ;;  %6432 = vmatpush3.msra.mxu0 %v8376_v4 }
0x1615   :  { %6429 = vmatmul.mubr.msk.f32.vlgmr.msra.gmra.mxu1 %vm409_vm3, %v3982_v6  ;;  %6433 = vmatprep.subr.mxu0 %v9008_v62 }
0x1616   :  { %6434 = vmatpush3.msra.mxu0 %v8381_v60  ;;  %6447 = vmatprep.mubr.msk.f32.mxu0 %vm7185_vm0, %v9008_v62 }
0x1617   :  { %6435 = vmatprep.subr.mxu0 %v9008_v62  ;;  %6450 = vmatprep.subr.mxu1 %v9008_v62 }
0x1618   :  { %6436 = vmatpush3.msra.mxu0 %v8388_v5  ;;  %6451 = vmatpush3.msra.mxu1 %v8425_v34 }
0x1619   :  { %6437 = vmatprep.subr.mxu0 %v9008_v62  ;;  %6452 = vmatprep.subr.mxu1 %v9008_v62 }
0x161a   :  { %6438 = vmatpush3.msra.mxu0 %v8394_v46  ;;  %6453 = vmatpush3.msra.mxu1 %v8431_v35  ;;  %v4079_v35 = vpop.permute.xlu1 %4078 }
0x161b   :  { %6439 = vmatprep.subr.mxu0 %v9008_v62  ;;  %6454 = vmatprep.subr.mxu1 %v9008_v62 }
0x161c   :  { %6440 = vmatpush3.msra.mxu0 %v8400_v10  ;;  %6455 = vmatpush3.msra.mxu1 %v8437_v33 }
0x161d   :  { %6441 = vmatprep.subr.mxu0 %v9008_v62  ;;  %6456 = vmatprep.subr.mxu1 %v9008_v62  ;;  %v4083_v34 = vpop.permute.xlu0 %4082 }
0x161e   :  { %6442 = vmatpush3.msra.mxu0 %v8406_v24  ;;  %6457 = vmatpush3.msra.mxu1 %v8444_v44  ;;  %v4085_v33 = vsel %vm191_vm2, %v4079_v35, %v4083_v34 }
0x161f   :  { %6443 = vmatprep.subr.mxu0 %v9008_v62  ;;  %6458 = vmatprep.subr.mxu1 %v9008_v62 }
0x1620   :  { %6444 = vmatpush3.msra.mxu0 %v8412_v19  ;;  %6459 = vmatpush3.msra.mxu1 %v8450_v57 }
0x1621   :  { %6445 = vmatprep.subr.mxu0 %v9008_v62  ;;  %6460 = vmatprep.subr.mxu1 %v9008_v62 }
0x1622   :  { %6446 = vmatpush3.msra.mxu0 %v8419_v20  ;;  %6461 = vmatpush3.msra.mxu1 %v8454_v61 }
0x1623   :  { %6448 = vmatmul.mubr.msk.f32.vlgmr.msra.gmra.mxu0 %vm409_vm3, %v4085_v33  ;;  %6462 = vmatprep.subr.mxu1 %v9008_v62 }
0x1624   :  { %6463 = vmatpush3.msra.mxu1 %v8458_v1  ;;  %6469 = vmatprep.subr.mxu0 %v9008_v62 }
0x1625   :  { %6464 = vmatprep.subr.mxu1 %v9008_v62  ;;  %6470 = vmatpush3.msra.mxu0 %v8554_v22 }
0x1626   :  { %6465 = vmatpush3.msra.mxu1 %v8462_v14  ;;  %6466 = vmatprep.mubr.msk.f32.mxu1 %vm7185_vm0, %v9008_v62 }
0x1627   :  { %6471 = vmatprep.subr.mxu0 %v9008_v62  ;;  %6488 = vmatprep.subr.mxu1 %v9008_v62 }
0x1628   :  { %6472 = vmatpush3.msra.mxu0 %v8562_v55  ;;  %6485 = vmatprep.mubr.msk.f32.mxu0 %vm7185_vm0, %v9008_v62 }
0x1629   :  { %6473 = vmatprep.subr.mxu0 %v9008_v62 }
0x162a   :  { %6474 = vmatpush3.msra.mxu0 %v8568_v39 }
0x162b   :  { %6475 = vmatprep.subr.mxu0 %v9008_v62 }
0x162c   :  { %6476 = vmatpush3.msra.mxu0 %v8574_v31 }
0x162d   :  { %6477 = vmatprep.subr.mxu0 %v9008_v62 }
0x162e   :  { %6478 = vmatpush3.msra.mxu0 %v8580_v0 }
0x162f   :  { %6479 = vmatprep.subr.mxu0 %v9008_v62 }
0x1630   :  { %6480 = vmatpush3.msra.mxu0 %v8586_v3 }
0x1631   :  { %6481 = vmatprep.subr.mxu0 %v9008_v62 }
0x1632   :  { %6482 = vmatpush3.msra.mxu0 %v8592_v43 }
0x1633   :  { %6483 = vmatprep.subr.mxu0 %v9008_v62 }
0x1634   :  { %6484 = vmatpush3.msra.mxu0 %v8599_v58 }
0x1635   :  { %6507 = vmatprep.subr.mxu0 %v9008_v62 }
0x16c2   :  { %v3743_v44 = vpop.f32.mrf.mxu0 }
0x16c3   :  { %v3744_v57 = vadd.f32 %v8468_v9, %v3743_v44  ;;  %v8674_v9 = vld [vmem:[#allocation7 + $0x3] ss:$0 sm:$0xff] }
0x16c4   :  { %v6373_v61 = vpop.f32.mrf.mxu0  ;;  %v3846_v1 = vpop.f32.mrf.mxu1 }
0x16c5   :  { %6863 = vtanh.f32 %v3744_v57  ;;  %v3847_v14 = vadd.f32 %v8471_v38, %v3846_v1  ;;  %v3747_v2 = vmul.f32 0.5, %v3744_v57 }
0x16c6   :  { %v6392_v26 = vpop.f32.mrf.mxu1 }
0x16c7   :  { %6865 = vtanh.f32 %v3847_v14  ;;  %v3850_v28 = vmul.f32 0.5, %v3847_v14 }
0x16d2   :  { %v6864_v8 = vpop.eup %6863  ;;  %v3949_v56 = vpop.f32.mrf.mxu0 }
0x16d3   :  { %v3950_v17 = vadd.f32 %v8670_v12, %v3949_v56  ;;  %3754 = vrot.lane.b32.xlu1 %v6864_v8, %s7186_s0 }
0x16d4   :  { %v6411_v7 = vpop.f32.mrf.mxu0  ;;  %v6866_v30 = vpop.eup %6865 }
0x16d5   :  { %6867 = vtanh.f32 %v3950_v17  ;;  %v4052_v42 = vpop.f32.mrf.mxu1  ;;  %3857 = vrot.lane.b32.xlu0 %v6866_v30, %s7186_s0  ;;  %v3953_v36 = vmul.f32 0.5, %v3950_v17 }
0x16d6   :  { %v4053_v11 = vadd.f32 %v8674_v9, %v4052_v42 }
0x16d7   :  { %v6430_v15 = vpop.f32.mrf.mxu1 }
0x16d8   :  { %6869 = vtanh.f32 %v4053_v11  ;;  %v4056_v25 = vmul.f32 0.5, %v4053_v11 }
0x16e2   :  { %v6868_v59 = vpop.eup %6867 }
0x16e3   :  { %v4155_v40 = vpop.f32.mrf.mxu0  ;;  %3960 = vrot.lane.b32.xlu1 %v6868_v59, %s7186_s0 }
0x16e4   :  { %v4156_v48 = vadd.f32 %v8479_v32, %v4155_v40 }
0x16e5   :  { %v6870_v29 = vpop.eup %6869  ;;  %v6449_v52 = vpop.f32.mrf.mxu0 }
0x16e6   :  { %6871 = vtanh.f32 %v4156_v48  ;;  %4063 = vrot.lane.b32.xlu0 %v6870_v29, %s7186_s0  ;;  %v4159_v14 = vmul.f32 0.5, %v4156_v48 }
0x16e7   :  { %6873 = vtanh.f32 %v3747_v2 }
0x16e8   :  { %6875 = vtanh.f32 %v3850_v28 }
0x16e9   :  { %6877 = vtanh.f32 %v3953_v36 }
0x16ea   :  { %6879 = vtanh.f32 %v4056_v25 }
0x16eb   :  { %6881 = vtanh.f32 %v4159_v14 }
0x16f3   :  { %v6872_v27 = vpop.eup %6871 }
0x16f4   :  { %4166 = vrot.lane.b32.xlu1 %v6872_v27, %s7186_s0  ;;  %v6874_v53 = vpop.eup %6873 }
0x16f5   :  { %v6876_v41 = vpop.eup %6875  ;;  %v3749_v6 = vadd.f32 1.0, %v6874_v53 }
0x16f6   :  { %v3852_v34 = vadd.f32 1.0, %v6876_v41  ;;  %v6878_v57 = vpop.eup %6877 }
0x16f7   :  { %v3750_v35 = vmul.f32 0.5, %v3749_v6  ;;  %v6880_v8 = vpop.eup %6879  ;;  %v3955_v56 = vadd.f32 1.0, %v6878_v57 }
0x16f8   :  { %v3853_v61 = vmul.f32 0.5, %v3852_v34  ;;  %v4058_v17 = vadd.f32 1.0, %v6880_v8  ;;  %v6882_v40 = vpop.eup %6881 }
0x16f9   :  { %v3956_v7 = vmul.f32 0.5, %v3955_v56  ;;  %v4161_v29 = vadd.f32 1.0, %v6882_v40  ;;  %v3752_v48 = vmul.f32 %v3750_v35, %v8510_v18 }
0x16fa   :  { %v4059_v11 = vmul.f32 0.5, %v4058_v17  ;;  %v3855_v53 = vmul.f32 %v3853_v61, %v8515_v23 }
0x16fb   :  { %v4162_v52 = vmul.f32 0.5, %v4161_v29  ;;  %v3958_v6 = vmul.f32 %v3956_v7, %v8520_v51 }
0x16fc   :  { %v4061_v18 = vmul.f32 %v4059_v11, %v8526_v13 }
0x16fd   :  { %v4164_v51 = vmul.f32 %v4162_v52, %v8532_v47 }
0x1745   :  { %v3755_v33 = vpop.permute.xlu1 %3754 }
0x1746   :  { %v3757_v44 = vmul.f32 %v3755_v33, %v3750_v35 }
0x1747   :  { %v3858_v1 = vpop.permute.xlu0 %3857 }
0x1748   :  { %3759 = vrot.lane.b32.xlu0 %v3757_v44, %s7187_s24  ;;  %v3860_v26 = vmul.f32 %v3858_v1, %v3853_v61 }
0x174a   :  { %3862 = vrot.lane.b32.xlu1 %v3860_v26, %s7187_s24 }
0x1755   :  { %v3961_v30 = vpop.permute.xlu1 %3960 }
0x1756   :  { %v3963_v42 = vmul.f32 %v3961_v30, %v3956_v7 }
0x1758   :  { %v4064_v15 = vpop.permute.xlu0 %4063  ;;  %3965 = vrot.lane.b32.xlu0 %v3963_v42, %s7187_s24 }
0x1759   :  { %v4066_v59 = vmul.f32 %v4064_v15, %v4059_v11 }
0x175b   :  { %4068 = vrot.lane.b32.xlu1 %v4066_v59, %s7187_s24 }
0x1766   :  { %v4167_v27 = vpop.permute.xlu1 %4166 }
0x1767   :  { %v4169_v2 = vmul.f32 %v4167_v27, %v4162_v52 }
0x1769   :  { %4171 = vrot.lane.b32.xlu0 %v4169_v2, %s7187_s24 }
0x17ba   :  { %v3760_v28 = vpop.permute.xlu0 %3759 }
0x17bb   :  { %v3762_v36 = vadd.f32 %v3760_v28, %v3752_v48 }
0x17bc   :  { %v3863_v25 = vpop.permute.xlu1 %3862 }
0x17bd   :  { %6883 = vtanh.f32 %v3762_v36  ;;  %v8689_v41 = vadd.f32 %v3863_v25, %v3855_v53 }
0x17bf   :  { %6885 = vtanh.f32 %v8689_v41 }
0x17ca   :  { %v6884_v34 = vpop.eup %6883  ;;  %v3966_v33 = vpop.permute.xlu0 %3965 }
0x17cb   :  { %v8693_v44 = vadd.f32 %v3966_v33, %v3958_v6  ;;  %3765 = vrot.lane.b32.xlu1 %v6884_v34, %s7186_s0 }
0x17cc   :  { %v6886_v1 = vpop.eup %6885 }
0x17cd   :  { %6887 = vtanh.f32 %v8693_v44  ;;  %v4069_v23 = vpop.permute.xlu1 %4068  ;;  %3868 = vrot.lane.b32.xlu0 %v6886_v1, %s7186_s0 }
0x17ce   :  { %v8698_v26 = vadd.f32 %v4069_v23, %v4061_v18 }
0x17d0   :  { %6889 = vtanh.f32 %v8698_v26 }
0x17da   :  { %v6888_v57 = vpop.eup %6887 }
0x17db   :  { %v4172_v14 = vpop.permute.xlu0 %4171  ;;  %3971 = vrot.lane.b32.xlu1 %v6888_v57, %s7186_s0 }
0x17dc   :  { %v8704_v8 = vadd.f32 %v4172_v14, %v4164_v51 }
0x17dd   :  { %v6890_v56 = vpop.eup %6889 }
0x17de   :  { %6891 = vtanh.f32 %v8704_v8  ;;  %4074 = vrot.lane.b32.xlu0 %v6890_v56, %s7186_s0 }
0x17eb   :  { %v6892_v13 = vpop.eup %6891 }
0x17ec   :  { %4177 = vrot.lane.b32.xlu1 %v6892_v13, %s7186_s0 }
0x183d   :  { %v3766_v17 = vpop.permute.xlu1 %3765 }
0x183e   :  { %v3768_v30 = vmul.f32 %v3766_v17, %v3750_v35 }
0x183f   :  { %v3869_v42 = vpop.permute.xlu0 %3868 }
0x1840   :  { %4182 = vrot.lane.b32.xlu0 %v3768_v30, %s7187_s24  ;;  %v3871_v15 = vmul.f32 %v3869_v42, %v3853_v61 }
0x1842   :  { %4186 = vrot.lane.b32.xlu1 %v3871_v15, %s7186_s0 }
0x1844   :  { %4285 = vrot.lane.b32.xlu0 %v3871_v15, %s7187_s24 }
0x184d   :  { %v3972_v47 = vpop.permute.xlu1 %3971 }
0x184e   :  { %v3974_v59 = vmul.f32 %v3972_v47, %v3956_v7 }
0x1850   :  { %v4075_v40 = vpop.permute.xlu0 %4074  ;;  %4289 = vrot.lane.b32.xlu1 %v3974_v59, %s7186_s0  ;;  %4388 = vrot.lane.b32.xlu0 %v3974_v59, %s7187_s24 }
0x1851   :  { %v4077_v29 = vmul.f32 %v4075_v40, %v4059_v11 }
0x1854   :  { %4491 = vrot.lane.b32.xlu0 %v4077_v29, %s7187_s24  ;;  %4392 = vrot.lane.b32.xlu1 %v4077_v29, %s7186_s0 }
0x185e   :  { %v4178_v35 = vpop.permute.xlu1 %4177 }
0x185f   :  { %v4180_v27 = vmul.f32 %v4178_v35, %v4162_v52 }
0x1861   :  { %4495 = vrot.lane.b32.xlu1 %v4180_v27, %s7186_s0 }
0x18b2   :  { %v4183_v61 = vpop.permute.xlu0 %4182 }
0x18b4   :  { %v4187_v2 = vpop.permute.xlu1 %4186 }
0x18b5   :  { %v4189_v48 = vsel %vm191_vm2, %v4183_v61, %v4187_v2 }
0x18b6   :  { %6467 = vmatmul.mubr.msk.f32.vlgmr.msra.gmra.mxu1 %vm409_vm3, %v4189_v48 }
0x18b7   :  { %6489 = vmatpush3.msra.mxu1 %v8327_v45  ;;  %6504 = vmatprep.mubr.msk.f32.mxu1 %vm7185_vm0, %v9008_v62  ;;  %v4286_v45 = vpop.permute.xlu0 %4285 }
0x18b8   :  { %6490 = vmatprep.subr.mxu1 %v9008_v62 }
0x18b9   :  { %6491 = vmatpush3.msra.mxu1 %v8333_v63 }
0x18ba   :  { %6492 = vmatprep.subr.mxu1 %v9008_v62 }
0x18bb   :  { %6493 = vmatpush3.msra.mxu1 %v8339_v21 }
0x18bc   :  { %6494 = vmatprep.subr.mxu1 %v9008_v62 }
0x18bd   :  { %6495 = vmatpush3.msra.mxu1 %v8345_v37 }
0x18be   :  { %6496 = vmatprep.subr.mxu1 %v9008_v62 }
0x18bf   :  { %6497 = vmatpush3.msra.mxu1 %v8351_v16 }
0x18c0   :  { %6498 = vmatprep.subr.mxu1 %v9008_v62 }
0x18c1   :  { %6499 = vmatpush3.msra.mxu1 %v8357_v50 }
0x18c2   :  { %v4290_v7 = vpop.permute.xlu1 %4289  ;;  %6500 = vmatprep.subr.mxu1 %v9008_v62  ;;  %v4389_v21 = vpop.permute.xlu0 %4388 }
0x18c3   :  { %v4292_v63 = vsel %vm191_vm2, %v4286_v45, %v4290_v7  ;;  %6501 = vmatpush3.msra.mxu1 %v8364_v54 }
0x18c4   :  { %6486 = vmatmul.mubr.msk.f32.vlgmr.msra.gmra.mxu0 %vm409_vm3, %v4292_v63  ;;  %6502 = vmatprep.subr.mxu1 %v9008_v62 }
0x18c5   :  { %6508 = vmatpush3.msra.mxu0 %v8376_v4  ;;  %6503 = vmatpush3.msra.mxu1 %v8370_v49 }
0x18c6   :  { %v4393_v37 = vpop.permute.xlu1 %4392  ;;  %6509 = vmatprep.subr.mxu0 %v9008_v62  ;;  %6523 = vmatprep.mubr.msk.f32.mxu0 %vm7185_vm0, %v9008_v62  ;;  %v4492_v50 = vpop.permute.xlu0 %4491 }
0x18c7   :  { %v4395_v16 = vsel %vm191_vm2, %v4389_v21, %v4393_v37  ;;  %6510 = vmatpush3.msra.mxu0 %v8381_v60  ;;  %6526 = vmatprep.subr.mxu1 %v9008_v62  ;;  %v8773_v60 = vld [vmem:[#allocation5 + $0xf8] sm:$0xff] }
0x18c8   :  { %6505 = vmatmul.mubr.msk.f32.vlgmr.msra.gmra.mxu1 %vm409_vm3, %v4395_v16  ;;  %6511 = vmatprep.subr.mxu0 %v9008_v62 }
0x18c9   :  { %6512 = vmatpush3.msra.mxu0 %v8388_v5  ;;  %6527 = vmatpush3.msra.mxu1 %v8554_v22  ;;  %v8779_v5 = vld [vmem:[#allocation5 + $0xf0] sm:$0xff] }
0x18ca   :  { %6513 = vmatprep.subr.mxu0 %v9008_v62  ;;  %6528 = vmatprep.subr.mxu1 %v9008_v62 }
0x18cb   :  { %6514 = vmatpush3.msra.mxu0 %v8394_v46  ;;  %6529 = vmatpush3.msra.mxu1 %v8562_v55  ;;  %v8786_v46 = vld [vmem:[#allocation5 + $0xe8] sm:$0xff] }
0x18cc   :  { %6515 = vmatprep.subr.mxu0 %v9008_v62  ;;  %6530 = vmatprep.subr.mxu1 %v9008_v62 }
0x18cd   :  { %6516 = vmatpush3.msra.mxu0 %v8400_v10  ;;  %6531 = vmatpush3.msra.mxu1 %v8568_v39  ;;  %v8793_v10 = vld [vmem:[#allocation5 + $0xe0] sm:$0xff] }
0x18ce   :  { %6517 = vmatprep.subr.mxu0 %v9008_v62  ;;  %6532 = vmatprep.subr.mxu1 %v9008_v62 }
0x18cf   :  { %6518 = vmatpush3.msra.mxu0 %v8406_v24  ;;  %6533 = vmatpush3.msra.mxu1 %v8574_v31  ;;  %v8797_v24 = vld [vmem:[#allocation5 + $0xd8] sm:$0xff] }
0x18d0   :  { %6519 = vmatprep.subr.mxu0 %v9008_v62  ;;  %6534 = vmatprep.subr.mxu1 %v9008_v62 }
0x18d1   :  { %6520 = vmatpush3.msra.mxu0 %v8412_v19  ;;  %6535 = vmatpush3.msra.mxu1 %v8580_v0  ;;  %v8801_v19 = vld [vmem:[#allocation5 + $0xd0] sm:$0xff] }
0x18d2   :  { %6521 = vmatprep.subr.mxu0 %v9008_v62  ;;  %6536 = vmatprep.subr.mxu1 %v9008_v62 }
0x18d3   :  { %v4496_v54 = vpop.permute.xlu1 %4495  ;;  %6522 = vmatpush3.msra.mxu0 %v8419_v20  ;;  %6537 = vmatpush3.msra.mxu1 %v8586_v3  ;;  %v8805_v20 = vld [vmem:[#allocation5 + $0xc8] sm:$0xff] }
0x18d4   :  { %v4498_v4 = vsel %vm191_vm2, %v4492_v50, %v4496_v54  ;;  %6545 = vmatprep.subr.mxu0 %v9008_v62  ;;  %6538 = vmatprep.subr.mxu1 %v9008_v62 }
0x18d5   :  { %6524 = vmatmul.mubr.msk.f32.vlgmr.msra.gmra.mxu0 %vm409_vm3, %v4498_v4  ;;  %6539 = vmatpush3.msra.mxu1 %v8592_v43 }
0x18d6   :  { %6546 = vmatpush3.msra.mxu0 %v8773_v60  ;;  %6540 = vmatprep.subr.mxu1 %v9008_v62 }
0x18d7   :  { %6547 = vmatprep.subr.mxu0 %v9008_v62  ;;  %6541 = vmatpush3.msra.mxu1 %v8599_v58 }
0x18d8   :  { %6548 = vmatpush3.msra.mxu0 %v8779_v5  ;;  %6542 = vmatprep.mubr.msk.f32.mxu1 %vm7185_vm0, %v9008_v62 }
0x18d9   :  { %6549 = vmatprep.subr.mxu0 %v9008_v62  ;;  %6564 = vmatprep.subr.mxu1 %v9008_v62 }
0x18da   :  { %6550 = vmatpush3.msra.mxu0 %v8786_v46  ;;  %6561 = vmatprep.mubr.msk.f32.mxu0 %vm7185_vm0, %v9008_v62 }
0x18db   :  { %6551 = vmatprep.subr.mxu0 %v9008_v62 }
0x18dc   :  { %6552 = vmatpush3.msra.mxu0 %v8793_v10 }
0x18dd   :  { %6553 = vmatprep.subr.mxu0 %v9008_v62 }
0x18de   :  { %6554 = vmatpush3.msra.mxu0 %v8797_v24 }
0x18df   :  { %6555 = vmatprep.subr.mxu0 %v9008_v62 }
0x18e0   :  { %6556 = vmatpush3.msra.mxu0 %v8801_v19 }
0x18e1   :  { %6557 = vmatprep.subr.mxu0 %v9008_v62 }
0x18e2   :  { %6558 = vmatpush3.msra.mxu0 %v8805_v20 }
0x18e3   :  { %6559 = vmatprep.subr.mxu0 %v9008_v62 }
0x18e4   :  { %6560 = vmatpush3.msra.mxu0 %v8370_v49 }
0x18e5   :  { %6583 = vmatprep.subr.mxu0 %v9008_v62 }
0x1976   :  { %v4259_v22 = vpop.f32.mrf.mxu1 }
0x1977   :  { %v4260_v55 = vadd.f32 %v8471_v38, %v4259_v22 }
0x1978   :  { %v6468_v39 = vpop.f32.mrf.mxu1 }
0x1979   :  { %6893 = vtanh.f32 %v4260_v55  ;;  %v4263_v6 = vmul.f32 0.5, %v4260_v55 }
0x1984   :  { %v4362_v31 = vpop.f32.mrf.mxu0 }
0x1985   :  { %v4363_v0 = vadd.f32 %v8670_v12, %v4362_v31 }
0x1986   :  { %v6487_v3 = vpop.f32.mrf.mxu0  ;;  %v6894_v43 = vpop.eup %6893 }
0x1987   :  { %6895 = vtanh.f32 %v4363_v0  ;;  %4270 = vrot.lane.b32.xlu0 %v6894_v43, %s7186_s0  ;;  %v4366_v34 = vmul.f32 0.5, %v4363_v0 }
0x1988   :  { %v4465_v58 = vpop.f32.mrf.mxu1 }
0x1989   :  { %v4466_v11 = vadd.f32 %v8674_v9, %v4465_v58 }
0x198a   :  { %v6506_v52 = vpop.f32.mrf.mxu1 }
0x198b   :  { %6897 = vtanh.f32 %v4466_v11  ;;  %v4469_v18 = vmul.f32 0.5, %v4466_v11 }
0x1994   :  { %v6896_v49 = vpop.eup %6895 }
0x1995   :  { %v4568_v28 = vpop.f32.mrf.mxu0  ;;  %4373 = vrot.lane.b32.xlu1 %v6896_v49, %s7186_s0 }
0x1996   :  { %v4569_v38 = vadd.f32 %v8479_v32, %v4568_v28 }
0x1997   :  { %v6525_v36 = vpop.f32.mrf.mxu0 }
0x1998   :  { %v6898_v53 = vpop.eup %6897  ;;  %6899 = vtanh.f32 %v4569_v38  ;;  %v4572_v14 = vmul.f32 0.5, %v4569_v38  ;;  %v8848_v36 = vld [vmem:[#allocation5 + $0x138] sm:$0xff] }
0x1999   :  { %4476 = vrot.lane.b32.xlu0 %v6898_v53, %s7186_s0  ;;  %6901 = vtanh.f32 %v4263_v6 }
0x199a   :  { %6903 = vtanh.f32 %v4366_v34  ;;  %v8855_v34 = vld [vmem:[#allocation5 + $0x130] sm:$0xff] }
0x199b   :  { %6905 = vtanh.f32 %v4469_v18  ;;  %v8866_v18 = vld [vmem:[#allocation5 + $0x120] sm:$0xff] }
0x199c   :  { %6907 = vtanh.f32 %v4572_v14 }
0x19a5   :  { %v6900_v25 = vpop.eup %6899 }
0x19a6   :  { %4579 = vrot.lane.b32.xlu1 %v6900_v25, %s7186_s0  ;;  %v6902_v33 = vpop.eup %6901 }
0x19a7   :  { %v4265_v1 = vadd.f32 1.0, %v6902_v33  ;;  %v6904_v32 = vpop.eup %6903  ;;  %v8860_v33 = vld [vmem:[#allocation5 + $0x128] sm:$0xff] }
0x19a8   :  { %v4368_v56 = vadd.f32 1.0, %v6904_v32  ;;  %v6906_v13 = vpop.eup %6905 }
0x19a9   :  { %v4266_v23 = vmul.f32 0.5, %v4265_v1  ;;  %v4471_v30 = vadd.f32 1.0, %v6906_v13  ;;  %v6908_v29 = vpop.eup %6907  ;;  %v8872_v1 = vld [vmem:[#allocation5 + $0x118] sm:$0xff] }
0x19aa   :  { %v4369_v17 = vmul.f32 0.5, %v4368_v56  ;;  %v4574_v35 = vadd.f32 1.0, %v6908_v29 }
0x19ab   :  { %v4472_v47 = vmul.f32 0.5, %v4471_v30  ;;  %v4268_v48 = vmul.f32 %v4266_v23, %v8689_v41  ;;  %v8924_v30 = vld [vmem:[#allocation7 + $0x4] ss:$0 sm:$0xff] }
0x19ac   :  { %v4575_v27 = vmul.f32 0.5, %v4574_v35  ;;  %v4371_v63 = vmul.f32 %v4369_v17, %v8693_v44 }
0x19ad   :  { %v4474_v50 = vmul.f32 %v4472_v47, %v8698_v26 }
0x19ae   :  { %v4577_v22 = vmul.f32 %v4575_v27, %v8704_v8 }
0x19f9   :  { %v4271_v57 = vpop.permute.xlu0 %4270 }
0x19fa   :  { %v4273_v51 = vmul.f32 %v4271_v57, %v4266_v23  ;;  %v8890_v57 = vld [vmem:[#allocation5 + $0x100] sm:$0xff] }
0x19fc   :  { %4275 = vrot.lane.b32.xlu0 %v4273_v51, %s7187_s24 }
0x1a07   :  { %v4374_v42 = vpop.permute.xlu1 %4373 }
0x1a08   :  { %v4376_v15 = vmul.f32 %v4374_v42, %v4369_v17 }
0x1a0a   :  { %4378 = vrot.lane.b32.xlu1 %v4376_v15, %s7187_s24 }
0x1a0b   :  { %v4477_v59 = vpop.permute.xlu0 %4476 }
0x1a0c   :  { %v4479_v40 = vmul.f32 %v4477_v59, %v4472_v47 }
0x1a0e   :  { %4481 = vrot.lane.b32.xlu0 %v4479_v40, %s7187_s24 }
0x1a18   :  { %v4580_v61 = vpop.permute.xlu1 %4579 }
0x1a19   :  { %v4582_v2 = vmul.f32 %v4580_v61, %v4575_v27 }
0x1a1b   :  { %4584 = vrot.lane.b32.xlu1 %v4582_v2, %s7187_s24 }
0x1a6e   :  { %v4276_v45 = vpop.permute.xlu0 %4275 }
0x1a6f   :  { %v4278_v7 = vadd.f32 %v4276_v45, %v4268_v48 }
0x1a71   :  { %6909 = vtanh.f32 %v4278_v7 }
0x1a7c   :  { %v4379_v21 = vpop.permute.xlu1 %4378 }
0x1a7d   :  { %v8825_v37 = vadd.f32 %v4379_v21, %v4371_v63 }
0x1a7e   :  { %v6910_v16 = vpop.eup %6909 }
0x1a7f   :  { %6911 = vtanh.f32 %v8825_v37  ;;  %4281 = vrot.lane.b32.xlu0 %v6910_v16, %s7186_s0 }
0x1a80   :  { %v4482_v54 = vpop.permute.xlu0 %4481 }
0x1a81   :  { %v8830_v4 = vadd.f32 %v4482_v54, %v4474_v50 }
0x1a83   :  { %6913 = vtanh.f32 %v8830_v4 }
0x1a8c   :  { %v6912_v41 = vpop.eup %6911 }
0x1a8d   :  { %v4585_v55 = vpop.permute.xlu1 %4584  ;;  %4384 = vrot.lane.b32.xlu1 %v6912_v41, %s7186_s0 }
0x1a8e   :  { %v8835_v44 = vadd.f32 %v4585_v55, %v4577_v22 }
0x1a90   :  { %v6914_v39 = vpop.eup %6913  ;;  %6915 = vtanh.f32 %v8835_v44 }
0x1a91   :  { %4487 = vrot.lane.b32.xlu0 %v6914_v39, %s7186_s0 }
0x1a9d   :  { %v6916_v26 = vpop.eup %6915 }
0x1a9e   :  { %4590 = vrot.lane.b32.xlu1 %v6916_v26, %s7186_s0 }
0x1af1   :  { %v4282_v31 = vpop.permute.xlu0 %4281 }
0x1af2   :  { %v4284_v0 = vmul.f32 %v4282_v31, %v4266_v23 }
0x1af4   :  { %4595 = vrot.lane.b32.xlu0 %v4284_v0, %s7187_s24 }
0x1aff   :  { %v4385_v3 = vpop.permute.xlu1 %4384 }
0x1b00   :  { %v4387_v43 = vmul.f32 %v4385_v3, %v4369_v17 }
0x1b02   :  { %4599 = vrot.lane.b32.xlu1 %v4387_v43, %s7186_s0  ;;  %4698 = vrot.lane.b32.xlu0 %v4387_v43, %s7187_s24 }
0x1b03   :  { %v4488_v8 = vpop.permute.xlu0 %4487 }
0x1b04   :  { %v4490_v58 = vmul.f32 %v4488_v8, %v4472_v47 }
0x1b06   :  { %4801 = vrot.lane.b32.xlu0 %v4490_v58, %s7187_s24  ;;  %4702 = vrot.lane.b32.xlu1 %v4490_v58, %s7186_s0 }
0x1b10   :  { %v4591_v11 = vpop.permute.xlu1 %4590 }
0x1b11   :  { %v4593_v52 = vmul.f32 %v4591_v11, %v4575_v27 }
0x1b13   :  { %4805 = vrot.lane.b32.xlu1 %v4593_v52, %s7186_s0 }
0x1b66   :  { %v4596_v49 = vpop.permute.xlu0 %4595 }
0x1b74   :  { %v4600_v28 = vpop.permute.xlu1 %4599  ;;  %v4699_v53 = vpop.permute.xlu0 %4698 }
0x1b75   :  { %v4602_v38 = vsel %vm191_vm2, %v4596_v49, %v4600_v28 }
0x1b76   :  { %6543 = vmatmul.mubr.msk.f32.vlgmr.msra.gmra.mxu1 %vm409_vm3, %v4602_v38 }
0x1b77   :  { %6565 = vmatpush3.msra.mxu1 %v8848_v36  ;;  %6580 = vmatprep.mubr.msk.f32.mxu1 %vm7185_vm0, %v9008_v62 }
0x1b78   :  { %v4703_v25 = vpop.permute.xlu1 %4702  ;;  %6566 = vmatprep.subr.mxu1 %v9008_v62 }
0x1b79   :  { %v4705_v6 = vsel %vm191_vm2, %v4699_v53, %v4703_v25  ;;  %6567 = vmatpush3.msra.mxu1 %v8855_v34 }
0x1b7a   :  { %6562 = vmatmul.mubr.msk.f32.vlgmr.msra.gmra.mxu0 %vm409_vm3, %v4705_v6  ;;  %6568 = vmatprep.subr.mxu1 %v9008_v62 }
0x1b7b   :  { %6569 = vmatpush3.msra.mxu1 %v8860_v33  ;;  %6584 = vmatpush3.msra.mxu0 %v8773_v60  ;;  %v8878_v60 = vld [vmem:[#allocation5 + $0x110] sm:$0xff] }
0x1b7c   :  { %6570 = vmatprep.subr.mxu1 %v9008_v62  ;;  %6585 = vmatprep.subr.mxu0 %v9008_v62 }
0x1b7d   :  { %6571 = vmatpush3.msra.mxu1 %v8866_v18  ;;  %6586 = vmatpush3.msra.mxu0 %v8779_v5  ;;  %v8884_v5 = vld [vmem:[#allocation5 + $0x108] sm:$0xff] }
0x1b7e   :  { %6572 = vmatprep.subr.mxu1 %v9008_v62  ;;  %6587 = vmatprep.subr.mxu0 %v9008_v62 }
0x1b7f   :  { %6573 = vmatpush3.msra.mxu1 %v8872_v1  ;;  %6588 = vmatpush3.msra.mxu0 %v8786_v46  ;;  %v4802_v46 = vpop.permute.xlu0 %4801 }
0x1b80   :  { %6574 = vmatprep.subr.mxu1 %v9008_v62  ;;  %6589 = vmatprep.subr.mxu0 %v9008_v62 }
0x1b81   :  { %6575 = vmatpush3.msra.mxu1 %v8878_v60  ;;  %6590 = vmatpush3.msra.mxu0 %v8793_v10 }
0x1b82   :  { %6576 = vmatprep.subr.mxu1 %v9008_v62  ;;  %6591 = vmatprep.subr.mxu0 %v9008_v62 }
0x1b83   :  { %6577 = vmatpush3.msra.mxu1 %v8884_v5  ;;  %6592 = vmatpush3.msra.mxu0 %v8797_v24  ;;  %v7045_v24 = vld [vmem:[#allocation5 + $0xc0] sm:$0xff] }
0x1b84   :  { %6578 = vmatprep.subr.mxu1 %v9008_v62  ;;  %6593 = vmatprep.subr.mxu0 %v9008_v62 }
0x1b85   :  { %v4806_v23 = vpop.permute.xlu1 %4805  ;;  %6579 = vmatpush3.msra.mxu1 %v8890_v57  ;;  %6594 = vmatpush3.msra.mxu0 %v8801_v19 }
0x1b86   :  { %v4808_v10 = vsel %vm191_vm2, %v4802_v46, %v4806_v23  ;;  %6595 = vmatprep.subr.mxu0 %v9008_v62  ;;  %6602 = vmatprep.subr.mxu1 %v9008_v62 }
0x1b87   :  { %6581 = vmatmul.mubr.msk.f32.vlgmr.msra.gmra.mxu1 %vm409_vm3, %v4808_v10  ;;  %6596 = vmatpush3.msra.mxu0 %v8805_v20 }
0x1b88   :  { %6603 = vmatpush3.msra.mxu1 %v8848_v36  ;;  %6597 = vmatprep.subr.mxu0 %v9008_v62 }
0x1b89   :  { %6604 = vmatprep.subr.mxu1 %v9008_v62  ;;  %6598 = vmatpush3.msra.mxu0 %v7045_v24 }
0x1b8a   :  { %6599 = vmatprep.mubr.msk.f32.mxu0 %vm7185_vm0, %v9008_v62  ;;  %6605 = vmatpush3.msra.mxu1 %v8855_v34 }
0x1b8b   :  { %6606 = vmatprep.subr.mxu1 %v9008_v62  ;;  %6618 = vmatprep.mubr.msk.f32.mxu1 %vm7185_vm0, %v9008_v62 }
0x1b8c   :  { %6607 = vmatpush3.msra.mxu1 %v8860_v33  ;;  %6621 = vmatprep.subr.mxu0 %v9008_v62 }
0x1b8d   :  { %6608 = vmatprep.subr.mxu1 %v9008_v62 }
0x1b8e   :  { %6609 = vmatpush3.msra.mxu1 %v8866_v18 }
0x1b8f   :  { %6610 = vmatprep.subr.mxu1 %v9008_v62 }
0x1b90   :  { %6611 = vmatpush3.msra.mxu1 %v8872_v1 }
0x1b91   :  { %6612 = vmatprep.subr.mxu1 %v9008_v62 }
0x1b92   :  { %6613 = vmatpush3.msra.mxu1 %v8878_v60 }
0x1b93   :  { %6614 = vmatprep.subr.mxu1 %v9008_v62 }
0x1b94   :  { %6615 = vmatpush3.msra.mxu1 %v8884_v5 }
0x1b95   :  { %6616 = vmatprep.subr.mxu1 %v9008_v62 }
0x1b96   :  { %6617 = vmatpush3.msra.mxu1 %v8890_v57 }
0x1b97   :  { %6640 = vmatprep.subr.mxu1 %v9008_v62 }
0x1c36   :  { %v4672_v19 = vpop.f32.mrf.mxu1 }
0x1c37   :  { %v4673_v20 = vadd.f32 %v8670_v12, %v4672_v19 }
0x1c38   :  { %v6544_v51 = vpop.f32.mrf.mxu1 }
0x1c39   :  { %6917 = vtanh.f32 %v4673_v20  ;;  %v4676_v59 = vmul.f32 0.5, %v4673_v20 }
0x1c3a   :  { %v4775_v32 = vpop.f32.mrf.mxu0 }
0x1c3b   :  { %v4776_v14 = vadd.f32 %v8674_v9, %v4775_v32 }
0x1c3c   :  { %v6563_v56 = vpop.f32.mrf.mxu0 }
0x1c3d   :  { %6919 = vtanh.f32 %v4776_v14  ;;  %v4779_v40 = vmul.f32 0.5, %v4776_v14 }
0x1c46   :  { %v6918_v13 = vpop.eup %6917 }
0x1c47   :  { %v4878_v17 = vpop.f32.mrf.mxu1  ;;  %4683 = vrot.lane.b32.xlu0 %v6918_v13, %s7186_s0 }
0x1c48   :  { %v4879_v42 = vadd.f32 %v8924_v30, %v4878_v17 }
0x1c49   :  { %v6582_v15 = vpop.f32.mrf.mxu1 }
0x1c4a   :  { %v6920_v47 = vpop.eup %6919  ;;  %6921 = vtanh.f32 %v4879_v42  ;;  %v4882_v35 = vmul.f32 0.5, %v4879_v42 }
0x1c4b   :  { %4786 = vrot.lane.b32.xlu1 %v6920_v47, %s7186_s0  ;;  %6923 = vtanh.f32 %v4676_v59 }
0x1c4c   :  { %6925 = vtanh.f32 %v4779_v40 }
0x1c4d   :  { %6927 = vtanh.f32 %v4882_v35 }
0x1c57   :  { %v6922_v12 = vpop.eup %6921 }
0x1c58   :  { %4889 = vrot.lane.b32.xlu0 %v6922_v12, %s7186_s0  ;;  %v6924_v29 = vpop.eup %6923 }
0x1c59   :  { %v4678_v27 = vadd.f32 1.0, %v6924_v29  ;;  %v6926_v61 = vpop.eup %6925 }
0x1c5a   :  { %v4781_v48 = vadd.f32 1.0, %v6926_v61  ;;  %v6928_v50 = vpop.eup %6927 }
0x1c5b   :  { %v4679_v2 = vmul.f32 0.5, %v4678_v27  ;;  %v4884_v54 = vadd.f32 1.0, %v6928_v50 }
0x1c5c   :  { %v4782_v63 = vmul.f32 0.5, %v4781_v48 }
0x1c5d   :  { %v4885_v41 = vmul.f32 0.5, %v4884_v54  ;;  %v4681_v39 = vmul.f32 %v4679_v2, %v8825_v37 }
0x1c5e   :  { %v4784_v0 = vmul.f32 %v4782_v63, %v8830_v4 }
0x1c5f   :  { %v4887_v58 = vmul.f32 %v4885_v41, %v8835_v44 }
0x1cb9   :  { %v4684_v45 = vpop.permute.xlu0 %4683 }
0x1cba   :  { %v4686_v7 = vmul.f32 %v4684_v45, %v4679_v2 }
0x1cbc   :  { %4688 = vrot.lane.b32.xlu1 %v4686_v7, %s7187_s24 }
0x1cbd   :  { %v4787_v21 = vpop.permute.xlu1 %4786 }
0x1cbe   :  { %v4789_v16 = vmul.f32 %v4787_v21, %v4782_v63 }
0x1cc0   :  { %4791 = vrot.lane.b32.xlu0 %v4789_v16, %s7187_s24 }
0x1cca   :  { %v4890_v22 = vpop.permute.xlu0 %4889 }
0x1ccb   :  { %v4892_v55 = vmul.f32 %v4890_v22, %v4885_v41 }
0x1ccd   :  { %4894 = vrot.lane.b32.xlu1 %v4892_v55, %s7187_s24 }
0x1d2e   :  { %v4689_v26 = vpop.permute.xlu1 %4688 }
0x1d2f   :  { %v4691_v31 = vadd.f32 %v4689_v26, %v4681_v39 }
0x1d31   :  { %6929 = vtanh.f32 %v4691_v31 }
0x1d32   :  { %v4792_v3 = vpop.permute.xlu0 %4791 }
0x1d33   :  { %v8934_v43 = vadd.f32 %v4792_v3, %v4784_v0 }
0x1d35   :  { %6931 = vtanh.f32 %v8934_v43 }
0x1d3e   :  { %v6930_v8 = vpop.eup %6929 }
0x1d3f   :  { %v4895_v11 = vpop.permute.xlu1 %4894  ;;  %4694 = vrot.lane.b32.xlu0 %v6930_v8, %s7186_s0 }
0x1d40   :  { %v8939_v52 = vadd.f32 %v4895_v11, %v4887_v58 }
0x1d42   :  { %v6932_v49 = vpop.eup %6931  ;;  %6933 = vtanh.f32 %v8939_v52 }
0x1d43   :  { %4797 = vrot.lane.b32.xlu1 %v6932_v49, %s7186_s0  ;;  %v5218_v49 = vld [vmem:[#allocation8 + $0x18] sm:$0xff] }
0x1d4f   :  { %v6934_v37 = vpop.eup %6933 }
0x1d50   :  { %4900 = vrot.lane.b32.xlu0 %v6934_v37, %s7186_s0  ;;  %v5216_v37 = vld [vmem:[#allocation8 + $0x8] sm:$0xff] }
0x1db1   :  { %v4695_v4 = vpop.permute.xlu0 %4694 }
0x1db2   :  { %v4697_v28 = vmul.f32 %v4695_v4, %v4679_v2  ;;  %v5215_v4 = vld [vmem:[#allocation8] sm:$0xff] }
0x1db4   :  { %4905 = vrot.lane.b32.xlu1 %v4697_v28, %s7187_s24 }
0x1db5   :  { %v4798_v38 = vpop.permute.xlu1 %4797 }
0x1db6   :  { %v4800_v53 = vmul.f32 %v4798_v38, %v4782_v63 }
0x1db8   :  { %5008 = vrot.lane.b32.xlu1 %v4800_v53, %s7187_s24  ;;  %4909 = vrot.lane.b32.xlu0 %v4800_v53, %s7186_s0 }
0x1dc2   :  { %v4901_v44 = vpop.permute.xlu0 %4900 }
0x1dc3   :  { %v4903_v25 = vmul.f32 %v4901_v44, %v4885_v41 }
0x1dc5   :  { %5012 = vrot.lane.b32.xlu0 %v4903_v25, %s7186_s0  ;;  %v5374_v25 = vld [vmem:[#allocation10] ss:$0 sm:$0xff] }
0x1e26   :  { %v4906_v6 = vpop.permute.xlu1 %4905 }
0x1e2a   :  { %v4910_v46 = vpop.permute.xlu0 %4909 }
0x1e2b   :  { %v4912_v23 = vsel %vm191_vm2, %v4906_v6, %v4910_v46 }
0x1e2c   :  { %6600 = vmatmul.mubr.msk.f32.vlgmr.msra.gmra.mxu0 %vm409_vm3, %v4912_v23 }
0x1e2d   :  { %6622 = vmatpush3.msra.mxu0 %v8848_v36  ;;  %6637 = vmatprep.mubr.msk.f32.mxu0 %vm7185_vm0, %v9008_v62  ;;  %v5009_v36 = vpop.permute.xlu1 %5008 }
0x1e2e   :  { %6623 = vmatprep.subr.mxu0 %v9008_v62 }
0x1e2f   :  { %6624 = vmatpush3.msra.mxu0 %v8855_v34 }
0x1e30   :  { %6625 = vmatprep.subr.mxu0 %v9008_v62 }
0x1e31   :  { %6626 = vmatpush3.msra.mxu0 %v8860_v33 }
0x1e32   :  { %6627 = vmatprep.subr.mxu0 %v9008_v62 }
0x1e33   :  { %6628 = vmatpush3.msra.mxu0 %v8866_v18 }
0x1e34   :  { %6629 = vmatprep.subr.mxu0 %v9008_v62 }
0x1e35   :  { %6630 = vmatpush3.msra.mxu0 %v8872_v1 }
0x1e36   :  { %6631 = vmatprep.subr.mxu0 %v9008_v62 }
0x1e37   :  { %v5013_v10 = vpop.permute.xlu0 %5012  ;;  %6632 = vmatpush3.msra.mxu0 %v8878_v60 }
0x1e38   :  { %v5015_v34 = vsel %vm191_vm2, %v5009_v36, %v5013_v10  ;;  %6633 = vmatprep.subr.mxu0 %v9008_v62 }
0x1e39   :  { %6619 = vmatmul.mubr.msk.f32.vlgmr.msra.gmra.mxu1 %vm409_vm3, %v5015_v34  ;;  %6634 = vmatpush3.msra.mxu0 %v8884_v5 }
0x1e3a   :  { %6635 = vmatprep.subr.mxu0 %v9008_v62  ;;  %6648 = vmatprep.mubr.msk.f32.mxu1 %vm7185_vm0, %v9008_v62 }
0x1e3b   :  { %6636 = vmatpush3.msra.mxu0 %v8890_v57  ;;  %6641 = vmatpush3.msra.mxu1 %v5218_v49 }
0x1e3c   :  { %6642 = vmatprep.subr.mxu1 %v9008_v62 }
0x1eec   :  { %v4982_v33 = vpop.f32.mrf.mxu0 }
0x1eed   :  { %v4983_v18 = vadd.f32 %v8674_v9, %v4982_v33 }
0x1eee   :  { %v6601_v1 = vpop.f32.mrf.mxu0 }
0x1eef   :  { %6935 = vtanh.f32 %v4983_v18  ;;  %v4986_v51 = vmul.f32 0.5, %v4983_v18 }
0x1ef9   :  { %v5085_v60 = vpop.f32.mrf.mxu1 }
0x1efa   :  { %v5086_v24 = vadd.f32 %v8924_v30, %v5085_v60 }
0x1efb   :  { %v6620_v19 = vpop.f32.mrf.mxu1 }
0x1efc   :  { %v6936_v20 = vpop.eup %6935  ;;  %6937 = vtanh.f32 %v5086_v24  ;;  %v5089_v32 = vmul.f32 0.5, %v5086_v24 }
0x1efd   :  { %4993 = vrot.lane.b32.xlu1 %v6936_v20, %s7186_s0  ;;  %6939 = vtanh.f32 %v4986_v51 }
0x1efe   :  { %6941 = vtanh.f32 %v5089_v32 }
0x1f09   :  { %v6938_v5 = vpop.eup %6937 }
0x1f0a   :  { %5096 = vrot.lane.b32.xlu0 %v6938_v5, %s7186_s0  ;;  %v6940_v57 = vpop.eup %6939 }
0x1f0b   :  { %v4988_v14 = vadd.f32 1.0, %v6940_v57  ;;  %v6942_v17 = vpop.eup %6941 }
0x1f0c   :  { %v5091_v42 = vadd.f32 1.0, %v6942_v17 }
0x1f0d   :  { %v4989_v9 = vmul.f32 0.5, %v4988_v14 }
0x1f0e   :  { %v5092_v15 = vmul.f32 0.5, %v5091_v42 }
0x1f0f   :  { %v4991_v59 = vmul.f32 %v4989_v9, %v8934_v43 }
0x1f10   :  { %v5094_v35 = vmul.f32 %v5092_v15, %v8939_v52 }
0x1f6f   :  { %v4994_v56 = vpop.permute.xlu1 %4993 }
0x1f70   :  { %v4996_v13 = vmul.f32 %v4994_v56, %v4989_v9 }
0x1f72   :  { %4998 = vrot.lane.b32.xlu1 %v4996_v13, %s7187_s24 }
0x1f7c   :  { %v5097_v47 = vpop.permute.xlu0 %5096 }
0x1f7d   :  { %v5099_v12 = vmul.f32 %v5097_v47, %v5092_v15 }
0x1f7f   :  { %5101 = vrot.lane.b32.xlu0 %v5099_v12, %s7187_s24 }
0x1fe4   :  { %v4999_v40 = vpop.permute.xlu1 %4998 }
0x1fe5   :  { %v5001_v29 = vadd.f32 %v4999_v40, %v4991_v59 }
0x1fe7   :  { %6943 = vtanh.f32 %v5001_v29 }
0x1ff1   :  { %v5102_v27 = vpop.permute.xlu0 %5101 }
0x1ff2   :  { %v5104_v61 = vadd.f32 %v5102_v27, %v5094_v35 }
0x1ff4   :  { %v6944_v2 = vpop.eup %6943  ;;  %6945 = vtanh.f32 %v5104_v61 }
0x1ff5   :  { %5004 = vrot.lane.b32.xlu1 %v6944_v2, %s7186_s0 }
0x2001   :  { %v6946_v48 = vpop.eup %6945 }
0x2002   :  { %5107 = vrot.lane.b32.xlu0 %v6946_v48, %s7186_s0 }
0x2067   :  { %v5005_v45 = vpop.permute.xlu1 %5004 }
0x2068   :  { %v5007_v7 = vmul.f32 %v5005_v45, %v4989_v9 }
0x206a   :  { %5112 = vrot.lane.b32.xlu1 %v5007_v7, %s7187_s24 }
0x2074   :  { %v5108_v63 = vpop.permute.xlu0 %5107 }
0x2075   :  { %v5110_v21 = vmul.f32 %v5108_v63, %v5092_v15 }
0x2077   :  { %5116 = vrot.lane.b32.xlu0 %v5110_v21, %s7186_s0 }
0x20dc   :  { %v5113_v16 = vpop.permute.xlu1 %5112 }
0x20e9   :  { %v5117_v50 = vpop.permute.xlu0 %5116 }
0x20ea   :  { %v5119_v54 = vsel %vm191_vm2, %v5113_v16, %v5117_v50 }
0x20eb   :  { %6638 = vmatmul.mubr.msk.f32.vlgmr.msra.gmra.mxu0 %vm409_vm3, %v5119_v54 }
0x21ab   :  { %v5189_v41 = vpop.f32.mrf.mxu0 }
0x21ac   :  { %v5190_v22 = vadd.f32 %v8924_v30, %v5189_v41  ;;  %v5217_v30 = vld [vmem:[#allocation8 + $0x10] sm:$0xff] }
0x21ad   :  { %v6639_v55 = vpop.f32.mrf.mxu0  ;;  %6643 = vmatpush3.msra.mxu1 %v5217_v30 }
0x21ae   :  { %6947 = vtanh.f32 %v5190_v22  ;;  %v5193_v26 = vmul.f32 0.5, %v5190_v22  ;;  %6644 = vmatprep.subr.mxu1 %v9008_v62 }
0x21af   :  { %6645 = vmatpush3.msra.mxu1 %v5216_v37 }
0x21b0   :  { %6949 = vtanh.f32 %v5193_v26  ;;  %6646 = vmatprep.subr.mxu1 %v9008_v62 }
0x21b1   :  { %6647 = vmatpush3.msra.mxu1 %v5215_v4 }
0x21bb   :  { %v6948_v39 = vpop.eup %6947 }
0x21bc   :  { %5200 = vrot.lane.b32.xlu1 %v6948_v39, %s7186_s0 }
0x21bd   :  { %v6950_v31 = vpop.eup %6949 }
0x21be   :  { %v5195_v0 = vadd.f32 1.0, %v6950_v31 }
0x21c0   :  { %v5196_v3 = vmul.f32 0.5, %v5195_v0 }
0x21c2   :  { %v5198_v58 = vmul.f32 %v5196_v3, %v5104_v61 }
0x222e   :  { %v5201_v43 = vpop.permute.xlu1 %5200 }
0x222f   :  { %v5203_v8 = vmul.f32 %v5201_v43, %v5196_v3 }
0x2231   :  { %5205 = vrot.lane.b32.xlu0 %v5203_v8, %s7187_s24 }
0x22a3   :  { %v5206_v11 = vpop.permute.xlu0 %5205 }
0x22a4   :  { %v5208_v52 = vadd.f32 %v5206_v11, %v5198_v58 }
0x22a6   :  { %6951 = vtanh.f32 %v5208_v52 }
0x22b3   :  { %v6952_v28 = vpop.eup %6951 }
0x22b4   :  { %5211 = vrot.lane.b32.xlu1 %v6952_v28, %s7186_s0 }
0x2326   :  { %v5212_v38 = vpop.permute.xlu1 %5211 }
0x2327   :  { %v5214_v53 = vmul.f32 %v5212_v38, %v5196_v3 }
0x2329   :  { %5227 = vrot.lane.b32.xlu0 %v5214_v53, %s7187_s24 }
0x239b   :  { %v5228_v44 = vpop.permute.xlu0 %5227 }
0x239c   :  { %6649 = vmatmul.mubr.msk.f32.vlgmr.msra.gmra.mxu1 %vm191_vm2, %v5228_v44 }
0x245c   :  { %v5297_v6 = vpop.f32.mrf.mxu1 }
0x245d   :  { %v5298_v46 = vadd.f32 %v5374_v25, %v5297_v6 }
0x245e   :  { %v6650_v23 = vpop.f32.mrf.mxu1 }
0x245f   :  { %5301 = vst [vmem:[#allocation11] sm:$0x3] %v5298_v46 }
0x2460   :  { %7158 = shalt.err (!%p7155_p1)
}
0x2461   :  { %5311 = dma.vmem_to_hbm [thread:$0]  %s5309_s9, 32, %s9005_s8, [#allocation4]  }
0x2462   :  { %7173 = dma.done.wait [#allocation4], 32  }
0x2463   :  { %7174 = vsyncadd [#allocation4], 4294967264 }
0x2464   :  { %5315 = vsyncpa [#allocation3], 1 }
0x2465   :  { %5316 = vsyncpa [#allocation6], 1 }
0x2466   :  { %5317 = vsyncpa [#allocation9], 1 }
0x2467   :  { %5318 = vsyncpa [#allocation4], 1 }

</bundles_post_ra>
